<compile_context>
chip_gen: v7x
topology: tpu7x:2x2x1
jax: 0.10.0
libtpu: 0.0.40
codegen_flags: <defaults>
</compile_context>

<pallas_src>
import jax
import jax.numpy as jnp
from jax.experimental import pallas as pl
from jax.experimental.pallas import tpu as pltpu

# ------------------------- small model configuration -------------------------
B, T, C, N = 8, 8, 4, 16          # input tensor (B, T, C, N); B multiple of 8 (sublanes)
CN = C * N                        # input_features = C*N = 64
HIDDEN = 128                      # hidden_size (gate slices are exactly 128 lanes wide)
NUM_LAYERS = 2                    # stacked LSTM layers

_VMEM = pl.BlockSpec(memory_space=pltpu.MemorySpace.VMEM)
_ANY = pl.BlockSpec(memory_space=pl.ANY)


# ---------------------------------- kernel ----------------------------------
def lstm_kernel(*refs):
    """Fused multi-layer LSTM.

    refs layout:
      refs[0]                      x_ref     (T*B, CN) bf16  time-major, flattened
      refs[1 + 3l .. 3 + 3l]       wih (in,4H) bf16, whh (H,4H) bf16, b (1,4H) f32
                                   (layer 0 weights: VMEM; layers>=1: HBM/ANY)
      refs[1 + 3L]                 out_ref   (B, H) f32      h_T of the last layer
      scratch:
        seq_ref   (T*B, H) f32     previous layer's output sequence (VMEM)
        per layer>=1: wih_vmem (H,4H) bf16, whh_vmem (H,4H) bf16   DMA targets
        sem       DMA semaphores (NUM_LAYERS-1, 2)
    """
    x_ref = refs[0]
    out_ref = refs[1 + 3 * NUM_LAYERS]
    scratch = refs[2 + 3 * NUM_LAYERS:]
    seq_ref = scratch[0]
    wvmem = scratch[1:1 + 2 * (NUM_LAYERS - 1)]
    sem = scratch[1 + 2 * (NUM_LAYERS - 1)] if NUM_LAYERS > 1 else None

    # Kick off the upper-layer weight DMAs (HBM -> VMEM) immediately so they
    # stream in while layer 0 computes.
    copies = []
    for l in range(1, NUM_LAYERS):
        wih_hbm = refs[1 + 3 * l]
        whh_hbm = refs[2 + 3 * l]
        wih_v = wvmem[2 * (l - 1)]
        whh_v = wvmem[2 * (l - 1) + 1]
        cp_ih = pltpu.make_async_copy(wih_hbm, wih_v, sem.at[l - 1, 0])
        cp_hh = pltpu.make_async_copy(whh_hbm, whh_v, sem.at[l - 1, 1])
        cp_ih.start()
        cp_hh.start()
        copies.append((cp_ih, cp_hh, wih_v, whh_v))

    def run_layer(x_seq_bf16, wih, whh, bias, write_seq):
        # Hoisted input projection: one dense (T*B, in) @ (in, 4H) matmul + one
        # bias broadcast, instead of T tiny matmuls inside the serial recurrence.
        gates_x = jnp.dot(x_seq_bf16, wih, preferred_element_type=jnp.float32) + bias

        h = jnp.zeros((B, HIDDEN), jnp.float32)
        c = jnp.zeros((B, HIDDEN), jnp.float32)
        for t in range(T):  # T is tiny & static: full unroll, all slice offsets static
            gates = gates_x[t * B:(t + 1) * B] + jnp.dot(
                h.astype(jnp.bfloat16), whh, preferred_element_type=jnp.float32)
            # PyTorch gate order: input, forget, cell (g), output.
            i = jax.nn.sigmoid(gates[:, 0 * HIDDEN:1 * HIDDEN])
            f = jax.nn.sigmoid(gates[:, 1 * HIDDEN:2 * HIDDEN])
            g = jnp.tanh(gates[:, 2 * HIDDEN:3 * HIDDEN])
            o = jax.nn.sigmoid(gates[:, 3 * HIDDEN:4 * HIDDEN])
            c = f * c + i * g
            h = o * jnp.tanh(c)
            if write_seq:
                # dense, sublane-aligned f32 store (B == 8 rows) into the flat buffer
                seq_ref[t * B:(t + 1) * B, :] = h
        return h

    # Layer 0: weights already VMEM-resident (auto-copied inputs).
    h = run_layer(x_ref[...], refs[1][...], refs[2][...], refs[3][...],
                  write_seq=(NUM_LAYERS > 1))

    # Layers >= 1: wait on their (overlapped) weight DMA, then run.
    for l in range(1, NUM_LAYERS):
        cp_ih, cp_hh, wih_v, whh_v = copies[l - 1]
        cp_ih.wait()
        cp_hh.wait()
        bias = refs[3 + 3 * l][...]
        h = run_layer(seq_ref[...].astype(jnp.bfloat16),
                      wih_v[...], whh_v[...], bias,
                      write_seq=(l < NUM_LAYERS - 1))

    out_ref[...] = h  # lane-dense (B, 128) f32 store


# ------------------------------- params / wrapper -------------------------------
def init_params(key):
    """LSTM weights, pre-transposed (kernel computes x @ W^T as x @ w_t), bf16 storage."""
    layers = []
    keys = jax.random.split(key, NUM_LAYERS)
    bound = 1.0 / (HIDDEN ** 0.5)
    for l in range(NUM_LAYERS):
        in_dim = CN if l == 0 else HIDDEN
        k = jax.random.split(keys[l], 4)
        wih_t = jax.random.uniform(k[0], (in_dim, 4 * HIDDEN), jnp.float32, -bound, bound)
        whh_t = jax.random.uniform(k[1], (HIDDEN, 4 * HIDDEN), jnp.float32, -bound, bound)
        b_ih = jax.random.uniform(k[2], (1, 4 * HIDDEN), jnp.float32, -bound, bound)
        b_hh = jax.random.uniform(k[3], (1, 4 * HIDDEN), jnp.float32, -bound, bound)
        layers.append({
            "wih_t": wih_t.astype(jnp.bfloat16),   # bf16 weights: half DMA, native MXU path
            "whh_t": whh_t.astype(jnp.bfloat16),
            "b": b_ih + b_hh,                      # combined bias kept in f32
        })
    return {"layers": layers}


@jax.jit
def forward(params, x):
    """x: (B, T, C, N) float32 -> (B, HIDDEN) float32 == hidden[-1] of the last layer."""
    b_, t_, c_, n_ = x.shape
    # (B,T,C,N) -> (B,T,CN) -> time-major flattened (T*B, CN); row t*B + b == (t, b).
    x_flat = (x.reshape(b_, t_, c_ * n_)
               .transpose(1, 0, 2)
               .reshape(t_ * b_, c_ * n_)
               .astype(jnp.bfloat16))

    args = [x_flat]
    in_specs = [_VMEM]
    for l, lp in enumerate(params["layers"]):
        args += [lp["wih_t"], lp["whh_t"], lp["b"]]
        if l == 0:
            in_specs += [_VMEM, _VMEM, _VMEM]
        else:
            # stay in HBM; the kernel DMAs these into VMEM scratch, overlapped with layer-0
            in_specs += [_ANY, _ANY, _VMEM]

    scratch = [pltpu.VMEM((t_ * b_, HIDDEN), jnp.float32)]        # flat layer-output sequence
    for _ in range(1, NUM_LAYERS):
        scratch += [pltpu.VMEM((HIDDEN, 4 * HIDDEN), jnp.bfloat16),
                    pltpu.VMEM((HIDDEN, 4 * HIDDEN), jnp.bfloat16)]
    if NUM_LAYERS > 1:
        scratch += [pltpu.SemaphoreType.DMA((NUM_LAYERS - 1, 2))]

    return pl.pallas_call(
        lstm_kernel,
        out_shape=jax.ShapeDtypeStruct((b_, HIDDEN), jnp.float32),
        in_specs=in_specs,
        out_specs=_VMEM,
        scratch_shapes=scratch,
    )(*args)


# pure-JAX reference (same math / same bf16 quantization points) for correctness
def forward_ref(params, x):
    b_, t_, c_, n_ = x.shape
    seq = x.reshape(b_, t_, c_ * n_).astype(jnp.bfloat16).astype(jnp.float32)
    h = None
    for lp in params["layers"]:
        wih = lp["wih_t"].astype(jnp.float32)
        whh = lp["whh_t"].astype(jnp.float32)
        bias = lp["b"]
        h = jnp.zeros((b_, HIDDEN), jnp.float32)
        c = jnp.zeros((b_, HIDDEN), jnp.float32)
        outs = []
        for t in range(t_):
            h_bf = h.astype(jnp.bfloat16).astype(jnp.float32)
            gates = seq[:, t] @ wih + h_bf @ whh + bias
            i = jax.nn.sigmoid(gates[:, 0 * HIDDEN:1 * HIDDEN])
            f = jax.nn.sigmoid(gates[:, 1 * HIDDEN:2 * HIDDEN])
            g = jnp.tanh(gates[:, 2 * HIDDEN:3 * HIDDEN])
            o = jax.nn.sigmoid(gates[:, 3 * HIDDEN:4 * HIDDEN])
            c = f * c + i * g
            h = o * jnp.tanh(c)
            outs.append(h)
        seq = jnp.stack(outs, axis=1).astype(jnp.bfloat16).astype(jnp.float32)
    return h


if __name__ == "__main__":
    key = jax.random.PRNGKey(0)
    kx, kp = jax.random.split(key)
    x = jax.random.uniform(kx, (B, T, C, N), dtype=jnp.float32)
    params = init_params(kp)

    out = forward(params, x)
    jax.block_until_ready(out)
    assert out.shape == (B, HIDDEN) and out.dtype == jnp.float32

    ref = forward_ref(params, x)
    max_err = float(jnp.max(jnp.abs(out - ref)))
    assert jnp.allclose(out, ref, rtol=1e-2, atol=1e-2), max_err
    # nn.LSTM inter-layer dropout defaults to 0 (identity in eval), so no RNG op is emitted.
    print("KERNEL_OK")
</pallas_src>

<mosaic_0001>
module attributes {stable_mosaic.version = 11 : i64} {
  func.func @lstm_kernel(%arg0: memref<64x64xbf16, #tpu.memory_space<vmem>>, %arg1: memref<64x512xbf16, #tpu.memory_space<vmem>>, %arg2: memref<128x512xbf16, #tpu.memory_space<vmem>>, %arg3: memref<1x512xf32, #tpu.memory_space<vmem>>, %arg4: memref<128x512xbf16, #tpu.memory_space<any>>, %arg5: memref<128x512xbf16, #tpu.memory_space<any>>, %arg6: memref<1x512xf32, #tpu.memory_space<vmem>>, %arg7: memref<8x128xf32, #tpu.memory_space<vmem>>, %arg8: memref<64x128xf32, #tpu.memory_space<vmem>>, %arg9: memref<128x512xbf16, #tpu.memory_space<vmem>>, %arg10: memref<128x512xbf16, #tpu.memory_space<vmem>>, %arg11: memref<1x2x!tpu.dma_semaphore, #tpu.memory_space<semaphore_mem>>) attributes {dimension_semantics = [], scalar_prefetch = 0 : i64, scratch_operands = 4 : i64, tpu.core_type = #tpu.core_type<tc>} {
    %c0_i32 = arith.constant 0 : i32
    %c0_i32_0 = arith.constant 0 : i32
    %0 = tpu.memref_slice %arg11[%c0_i32, %c0_i32_0] : memref<1x2x!tpu.dma_semaphore, #tpu.memory_space<semaphore_mem>> -> memref<1x1x!tpu.dma_semaphore, #tpu.memory_space<semaphore_mem>>
    %1 = tpu.memref_squeeze %0 : memref<1x1x!tpu.dma_semaphore, #tpu.memory_space<semaphore_mem>> -> memref<!tpu.dma_semaphore, #tpu.memory_space<semaphore_mem>>
    tpu.enqueue_dma source(%arg4 : memref<128x512xbf16, #tpu.memory_space<any>>) target(%arg9 : memref<128x512xbf16, #tpu.memory_space<vmem>>) target_semaphore(%1 : memref<!tpu.dma_semaphore, #tpu.memory_space<semaphore_mem>>)
    %c0_i32_1 = arith.constant 0 : i32
    %c1_i32 = arith.constant 1 : i32
    %2 = tpu.memref_slice %arg11[%c0_i32_1, %c1_i32] : memref<1x2x!tpu.dma_semaphore, #tpu.memory_space<semaphore_mem>> -> memref<1x1x!tpu.dma_semaphore, #tpu.memory_space<semaphore_mem>>
    %3 = tpu.memref_squeeze %2 : memref<1x1x!tpu.dma_semaphore, #tpu.memory_space<semaphore_mem>> -> memref<!tpu.dma_semaphore, #tpu.memory_space<semaphore_mem>>
    tpu.enqueue_dma source(%arg5 : memref<128x512xbf16, #tpu.memory_space<any>>) target(%arg10 : memref<128x512xbf16, #tpu.memory_space<vmem>>) target_semaphore(%3 : memref<!tpu.dma_semaphore, #tpu.memory_space<semaphore_mem>>)
    %c0 = arith.constant 0 : index
    %c0_2 = arith.constant 0 : index
    %4 = vector.load %arg0[%c0, %c0_2] : memref<64x64xbf16, #tpu.memory_space<vmem>>, vector<64x64xbf16>
    %c0_3 = arith.constant 0 : index
    %c0_4 = arith.constant 0 : index
    %5 = vector.load %arg1[%c0_3, %c0_4] : memref<64x512xbf16, #tpu.memory_space<vmem>>, vector<64x512xbf16>
    %c0_5 = arith.constant 0 : index
    %c0_6 = arith.constant 0 : index
    %6 = vector.load %arg2[%c0_5, %c0_6] : memref<128x512xbf16, #tpu.memory_space<vmem>>, vector<128x512xbf16>
    %c0_7 = arith.constant 0 : index
    %c0_8 = arith.constant 0 : index
    %7 = vector.load %arg3[%c0_7, %c0_8] : memref<1x512xf32, #tpu.memory_space<vmem>>, vector<1x512xf32>
    %cst = arith.constant dense<0.000000e+00> : vector<64x512xf32>
    %8 = tpu.matmul %4, %5, %cst {dimension_numbers = #tpu.dot_dimension_numbers<[1], [0], [0], [1], [0, 0, 1, 1], [], []>} : vector<64x64xbf16>, vector<64x512xbf16>, vector<64x512xf32> -> vector<64x512xf32>
    %9 = vector.broadcast %7 : vector<1x512xf32> to vector<64x512xf32>
    %10 = arith.addf %8, %9 : vector<64x512xf32>
    %cst_9 = arith.constant 0.000000e+00 : f32
    %11 = vector.broadcast %cst_9 : f32 to vector<8x128xf32>
    %cst_10 = arith.constant 0.000000e+00 : f32
    %12 = vector.broadcast %cst_10 : f32 to vector<8x128xf32>
    %13 = vector.extract_strided_slice %10 {offsets = [0, 0], sizes = [8, 512], strides = [1, 1]} : vector<64x512xf32> to vector<8x512xf32>
    %14 = arith.truncf %11 : vector<8x128xf32> to vector<8x128xbf16>
    %cst_11 = arith.constant dense<0.000000e+00> : vector<8x512xf32>
    %15 = tpu.matmul %14, %6, %cst_11 {dimension_numbers = #tpu.dot_dimension_numbers<[1], [0], [0], [1], [0, 0, 1, 1], [], []>} : vector<8x128xbf16>, vector<128x512xbf16>, vector<8x512xf32> -> vector<8x512xf32>
    %16 = arith.addf %13, %15 : vector<8x512xf32>
    %17 = vector.extract_strided_slice %16 {offsets = [0, 0], sizes = [8, 128], strides = [1, 1]} : vector<8x512xf32> to vector<8x128xf32>
    %18 = arith.negf %17 : vector<8x128xf32>
    %19 = math.exp %18 : vector<8x128xf32>
    %cst_12 = arith.constant 1.000000e+00 : f32
    %20 = vector.broadcast %cst_12 : f32 to vector<8x128xf32>
    %21 = arith.addf %20, %19 : vector<8x128xf32>
    %22 = arith.divf %20, %21 : vector<8x128xf32>
    %23 = vector.extract_strided_slice %16 {offsets = [0, 128], sizes = [8, 128], strides = [1, 1]} : vector<8x512xf32> to vector<8x128xf32>
    %24 = arith.negf %23 : vector<8x128xf32>
    %25 = math.exp %24 : vector<8x128xf32>
    %cst_13 = arith.constant 1.000000e+00 : f32
    %26 = vector.broadcast %cst_13 : f32 to vector<8x128xf32>
    %27 = arith.addf %26, %25 : vector<8x128xf32>
    %28 = arith.divf %26, %27 : vector<8x128xf32>
    %29 = vector.extract_strided_slice %16 {offsets = [0, 256], sizes = [8, 128], strides = [1, 1]} : vector<8x512xf32> to vector<8x128xf32>
    %30 = math.tanh %29 : vector<8x128xf32>
    %31 = vector.extract_strided_slice %16 {offsets = [0, 384], sizes = [8, 128], strides = [1, 1]} : vector<8x512xf32> to vector<8x128xf32>
    %32 = arith.negf %31 : vector<8x128xf32>
    %33 = math.exp %32 : vector<8x128xf32>
    %cst_14 = arith.constant 1.000000e+00 : f32
    %34 = vector.broadcast %cst_14 : f32 to vector<8x128xf32>
    %35 = arith.addf %34, %33 : vector<8x128xf32>
    %36 = arith.divf %34, %35 : vector<8x128xf32>
    %37 = arith.mulf %28, %12 : vector<8x128xf32>
    %38 = arith.mulf %22, %30 : vector<8x128xf32>
    %39 = arith.addf %37, %38 : vector<8x128xf32>
    %40 = math.tanh %39 : vector<8x128xf32>
    %41 = arith.mulf %36, %40 : vector<8x128xf32>
    %c0_15 = arith.constant 0 : index
    %c0_16 = arith.constant 0 : index
    %42 = vector.load %arg8[%c0_15, %c0_16] : memref<64x128xf32, #tpu.memory_space<vmem>>, vector<8x128xf32>
    tpu.vector_store %arg8[%c0_15, %c0_16], %41 {strides = array<i32>} : memref<64x128xf32, #tpu.memory_space<vmem>>, vector<8x128xf32>,
    %43 = vector.extract_strided_slice %10 {offsets = [8, 0], sizes = [8, 512], strides = [1, 1]} : vector<64x512xf32> to vector<8x512xf32>
    %44 = arith.truncf %41 : vector<8x128xf32> to vector<8x128xbf16>
    %cst_17 = arith.constant dense<0.000000e+00> : vector<8x512xf32>
    %45 = tpu.matmul %44, %6, %cst_17 {dimension_numbers = #tpu.dot_dimension_numbers<[1], [0], [0], [1], [0, 0, 1, 1], [], []>} : vector<8x128xbf16>, vector<128x512xbf16>, vector<8x512xf32> -> vector<8x512xf32>
    %46 = arith.addf %43, %45 : vector<8x512xf32>
    %47 = vector.extract_strided_slice %46 {offsets = [0, 0], sizes = [8, 128], strides = [1, 1]} : vector<8x512xf32> to vector<8x128xf32>
    %48 = arith.negf %47 : vector<8x128xf32>
    %49 = math.exp %48 : vector<8x128xf32>
    %cst_18 = arith.constant 1.000000e+00 : f32
    %50 = vector.broadcast %cst_18 : f32 to vector<8x128xf32>
    %51 = arith.addf %50, %49 : vector<8x128xf32>
    %52 = arith.divf %50, %51 : vector<8x128xf32>
    %53 = vector.extract_strided_slice %46 {offsets = [0, 128], sizes = [8, 128], strides = [1, 1]} : vector<8x512xf32> to vector<8x128xf32>
    %54 = arith.negf %53 : vector<8x128xf32>
    %55 = math.exp %54 : vector<8x128xf32>
    %cst_19 = arith.constant 1.000000e+00 : f32
    %56 = vector.broadcast %cst_19 : f32 to vector<8x128xf32>
    %57 = arith.addf %56, %55 : vector<8x128xf32>
    %58 = arith.divf %56, %57 : vector<8x128xf32>
    %59 = vector.extract_strided_slice %46 {offsets = [0, 256], sizes = [8, 128], strides = [1, 1]} : vector<8x512xf32> to vector<8x128xf32>
    %60 = math.tanh %59 : vector<8x128xf32>
    %61 = vector.extract_strided_slice %46 {offsets = [0, 384], sizes = [8, 128], strides = [1, 1]} : vector<8x512xf32> to vector<8x128xf32>
    %62 = arith.negf %61 : vector<8x128xf32>
    %63 = math.exp %62 : vector<8x128xf32>
    %cst_20 = arith.constant 1.000000e+00 : f32
    %64 = vector.broadcast %cst_20 : f32 to vector<8x128xf32>
    %65 = arith.addf %64, %63 : vector<8x128xf32>
    %66 = arith.divf %64, %65 : vector<8x128xf32>
    %67 = arith.mulf %58, %39 : vector<8x128xf32>
    %68 = arith.mulf %52, %60 : vector<8x128xf32>
    %69 = arith.addf %67, %68 : vector<8x128xf32>
    %70 = math.tanh %69 : vector<8x128xf32>
    %71 = arith.mulf %66, %70 : vector<8x128xf32>
    %c8 = arith.constant 8 : index
    %c0_21 = arith.constant 0 : index
    %72 = vector.load %arg8[%c8, %c0_21] : memref<64x128xf32, #tpu.memory_space<vmem>>, vector<8x128xf32>
    tpu.vector_store %arg8[%c8, %c0_21], %71 {strides = array<i32>} : memref<64x128xf32, #tpu.memory_space<vmem>>, vector<8x128xf32>,
    %73 = vector.extract_strided_slice %10 {offsets = [16, 0], sizes = [8, 512], strides = [1, 1]} : vector<64x512xf32> to vector<8x512xf32>
    %74 = arith.truncf %71 : vector<8x128xf32> to vector<8x128xbf16>
    %cst_22 = arith.constant dense<0.000000e+00> : vector<8x512xf32>
    %75 = tpu.matmul %74, %6, %cst_22 {dimension_numbers = #tpu.dot_dimension_numbers<[1], [0], [0], [1], [0, 0, 1, 1], [], []>} : vector<8x128xbf16>, vector<128x512xbf16>, vector<8x512xf32> -> vector<8x512xf32>
    %76 = arith.addf %73, %75 : vector<8x512xf32>
    %77 = vector.extract_strided_slice %76 {offsets = [0, 0], sizes = [8, 128], strides = [1, 1]} : vector<8x512xf32> to vector<8x128xf32>
    %78 = arith.negf %77 : vector<8x128xf32>
    %79 = math.exp %78 : vector<8x128xf32>
    %cst_23 = arith.constant 1.000000e+00 : f32
    %80 = vector.broadcast %cst_23 : f32 to vector<8x128xf32>
    %81 = arith.addf %80, %79 : vector<8x128xf32>
    %82 = arith.divf %80, %81 : vector<8x128xf32>
    %83 = vector.extract_strided_slice %76 {offsets = [0, 128], sizes = [8, 128], strides = [1, 1]} : vector<8x512xf32> to vector<8x128xf32>
    %84 = arith.negf %83 : vector<8x128xf32>
    %85 = math.exp %84 : vector<8x128xf32>
    %cst_24 = arith.constant 1.000000e+00 : f32
    %86 = vector.broadcast %cst_24 : f32 to vector<8x128xf32>
    %87 = arith.addf %86, %85 : vector<8x128xf32>
    %88 = arith.divf %86, %87 : vector<8x128xf32>
    %89 = vector.extract_strided_slice %76 {offsets = [0, 256], sizes = [8, 128], strides = [1, 1]} : vector<8x512xf32> to vector<8x128xf32>
    %90 = math.tanh %89 : vector<8x128xf32>
    %91 = vector.extract_strided_slice %76 {offsets = [0, 384], sizes = [8, 128], strides = [1, 1]} : vector<8x512xf32> to vector<8x128xf32>
    %92 = arith.negf %91 : vector<8x128xf32>
    %93 = math.exp %92 : vector<8x128xf32>
    %cst_25 = arith.constant 1.000000e+00 : f32
    %94 = vector.broadcast %cst_25 : f32 to vector<8x128xf32>
    %95 = arith.addf %94, %93 : vector<8x128xf32>
    %96 = arith.divf %94, %95 : vector<8x128xf32>
    %97 = arith.mulf %88, %69 : vector<8x128xf32>
    %98 = arith.mulf %82, %90 : vector<8x128xf32>
    %99 = arith.addf %97, %98 : vector<8x128xf32>
    %100 = math.tanh %99 : vector<8x128xf32>
    %101 = arith.mulf %96, %100 : vector<8x128xf32>
    %c16 = arith.constant 16 : index
    %c0_26 = arith.constant 0 : index
    %102 = vector.load %arg8[%c16, %c0_26] : memref<64x128xf32, #tpu.memory_space<vmem>>, vector<8x128xf32>
    tpu.vector_store %arg8[%c16, %c0_26], %101 {strides = array<i32>} : memref<64x128xf32, #tpu.memory_space<vmem>>, vector<8x128xf32>,
    %103 = vector.extract_strided_slice %10 {offsets = [24, 0], sizes = [8, 512], strides = [1, 1]} : vector<64x512xf32> to vector<8x512xf32>
    %104 = arith.truncf %101 : vector<8x128xf32> to vector<8x128xbf16>
    %cst_27 = arith.constant dense<0.000000e+00> : vector<8x512xf32>
    %105 = tpu.matmul %104, %6, %cst_27 {dimension_numbers = #tpu.dot_dimension_numbers<[1], [0], [0], [1], [0, 0, 1, 1], [], []>} : vector<8x128xbf16>, vector<128x512xbf16>, vector<8x512xf32> -> vector<8x512xf32>
    %106 = arith.addf %103, %105 : vector<8x512xf32>
    %107 = vector.extract_strided_slice %106 {offsets = [0, 0], sizes = [8, 128], strides = [1, 1]} : vector<8x512xf32> to vector<8x128xf32>
    %108 = arith.negf %107 : vector<8x128xf32>
    %109 = math.exp %108 : vector<8x128xf32>
    %cst_28 = arith.constant 1.000000e+00 : f32
    %110 = vector.broadcast %cst_28 : f32 to vector<8x128xf32>
    %111 = arith.addf %110, %109 : vector<8x128xf32>
    %112 = arith.divf %110, %111 : vector<8x128xf32>
    %113 = vector.extract_strided_slice %106 {offsets = [0, 128], sizes = [8, 128], strides = [1, 1]} : vector<8x512xf32> to vector<8x128xf32>
    %114 = arith.negf %113 : vector<8x128xf32>
    %115 = math.exp %114 : vector<8x128xf32>
    %cst_29 = arith.constant 1.000000e+00 : f32
    %116 = vector.broadcast %cst_29 : f32 to vector<8x128xf32>
    %117 = arith.addf %116, %115 : vector<8x128xf32>
    %118 = arith.divf %116, %117 : vector<8x128xf32>
    %119 = vector.extract_strided_slice %106 {offsets = [0, 256], sizes = [8, 128], strides = [1, 1]} : vector<8x512xf32> to vector<8x128xf32>
    %120 = math.tanh %119 : vector<8x128xf32>
    %121 = vector.extract_strided_slice %106 {offsets = [0, 384], sizes = [8, 128], strides = [1, 1]} : vector<8x512xf32> to vector<8x128xf32>
    %122 = arith.negf %121 : vector<8x128xf32>
    %123 = math.exp %122 : vector<8x128xf32>
    %cst_30 = arith.constant 1.000000e+00 : f32
    %124 = vector.broadcast %cst_30 : f32 to vector<8x128xf32>
    %125 = arith.addf %124, %123 : vector<8x128xf32>
    %126 = arith.divf %124, %125 : vector<8x128xf32>
    %127 = arith.mulf %118, %99 : vector<8x128xf32>
    %128 = arith.mulf %112, %120 : vector<8x128xf32>
    %129 = arith.addf %127, %128 : vector<8x128xf32>
    %130 = math.tanh %129 : vector<8x128xf32>
    %131 = arith.mulf %126, %130 : vector<8x128xf32>
    %c24 = arith.constant 24 : index
    %c0_31 = arith.constant 0 : index
    %132 = vector.load %arg8[%c24, %c0_31] : memref<64x128xf32, #tpu.memory_space<vmem>>, vector<8x128xf32>
    tpu.vector_store %arg8[%c24, %c0_31], %131 {strides = array<i32>} : memref<64x128xf32, #tpu.memory_space<vmem>>, vector<8x128xf32>,
    %133 = vector.extract_strided_slice %10 {offsets = [32, 0], sizes = [8, 512], strides = [1, 1]} : vector<64x512xf32> to vector<8x512xf32>
    %134 = arith.truncf %131 : vector<8x128xf32> to vector<8x128xbf16>
    %cst_32 = arith.constant dense<0.000000e+00> : vector<8x512xf32>
    %135 = tpu.matmul %134, %6, %cst_32 {dimension_numbers = #tpu.dot_dimension_numbers<[1], [0], [0], [1], [0, 0, 1, 1], [], []>} : vector<8x128xbf16>, vector<128x512xbf16>, vector<8x512xf32> -> vector<8x512xf32>
    %136 = arith.addf %133, %135 : vector<8x512xf32>
    %137 = vector.extract_strided_slice %136 {offsets = [0, 0], sizes = [8, 128], strides = [1, 1]} : vector<8x512xf32> to vector<8x128xf32>
    %138 = arith.negf %137 : vector<8x128xf32>
    %139 = math.exp %138 : vector<8x128xf32>
    %cst_33 = arith.constant 1.000000e+00 : f32
    %140 = vector.broadcast %cst_33 : f32 to vector<8x128xf32>
    %141 = arith.addf %140, %139 : vector<8x128xf32>
    %142 = arith.divf %140, %141 : vector<8x128xf32>
    %143 = vector.extract_strided_slice %136 {offsets = [0, 128], sizes = [8, 128], strides = [1, 1]} : vector<8x512xf32> to vector<8x128xf32>
    %144 = arith.negf %143 : vector<8x128xf32>
    %145 = math.exp %144 : vector<8x128xf32>
    %cst_34 = arith.constant 1.000000e+00 : f32
    %146 = vector.broadcast %cst_34 : f32 to vector<8x128xf32>
    %147 = arith.addf %146, %145 : vector<8x128xf32>
    %148 = arith.divf %146, %147 : vector<8x128xf32>
    %149 = vector.extract_strided_slice %136 {offsets = [0, 256], sizes = [8, 128], strides = [1, 1]} : vector<8x512xf32> to vector<8x128xf32>
    %150 = math.tanh %149 : vector<8x128xf32>
    %151 = vector.extract_strided_slice %136 {offsets = [0, 384], sizes = [8, 128], strides = [1, 1]} : vector<8x512xf32> to vector<8x128xf32>
    %152 = arith.negf %151 : vector<8x128xf32>
    %153 = math.exp %152 : vector<8x128xf32>
    %cst_35 = arith.constant 1.000000e+00 : f32
    %154 = vector.broadcast %cst_35 : f32 to vector<8x128xf32>
    %155 = arith.addf %154, %153 : vector<8x128xf32>
    %156 = arith.divf %154, %155 : vector<8x128xf32>
    %157 = arith.mulf %148, %129 : vector<8x128xf32>
    %158 = arith.mulf %142, %150 : vector<8x128xf32>
    %159 = arith.addf %157, %158 : vector<8x128xf32>
    %160 = math.tanh %159 : vector<8x128xf32>
    %161 = arith.mulf %156, %160 : vector<8x128xf32>
    %c32 = arith.constant 32 : index
    %c0_36 = arith.constant 0 : index
    %162 = vector.load %arg8[%c32, %c0_36] : memref<64x128xf32, #tpu.memory_space<vmem>>, vector<8x128xf32>
    tpu.vector_store %arg8[%c32, %c0_36], %161 {strides = array<i32>} : memref<64x128xf32, #tpu.memory_space<vmem>>, vector<8x128xf32>,
    %163 = vector.extract_strided_slice %10 {offsets = [40, 0], sizes = [8, 512], strides = [1, 1]} : vector<64x512xf32> to vector<8x512xf32>
    %164 = arith.truncf %161 : vector<8x128xf32> to vector<8x128xbf16>
    %cst_37 = arith.constant dense<0.000000e+00> : vector<8x512xf32>
    %165 = tpu.matmul %164, %6, %cst_37 {dimension_numbers = #tpu.dot_dimension_numbers<[1], [0], [0], [1], [0, 0, 1, 1], [], []>} : vector<8x128xbf16>, vector<128x512xbf16>, vector<8x512xf32> -> vector<8x512xf32>
    %166 = arith.addf %163, %165 : vector<8x512xf32>
    %167 = vector.extract_strided_slice %166 {offsets = [0, 0], sizes = [8, 128], strides = [1, 1]} : vector<8x512xf32> to vector<8x128xf32>
    %168 = arith.negf %167 : vector<8x128xf32>
    %169 = math.exp %168 : vector<8x128xf32>
    %cst_38 = arith.constant 1.000000e+00 : f32
    %170 = vector.broadcast %cst_38 : f32 to vector<8x128xf32>
    %171 = arith.addf %170, %169 : vector<8x128xf32>
    %172 = arith.divf %170, %171 : vector<8x128xf32>
    %173 = vector.extract_strided_slice %166 {offsets = [0, 128], sizes = [8, 128], strides = [1, 1]} : vector<8x512xf32> to vector<8x128xf32>
    %174 = arith.negf %173 : vector<8x128xf32>
    %175 = math.exp %174 : vector<8x128xf32>
    %cst_39 = arith.constant 1.000000e+00 : f32
    %176 = vector.broadcast %cst_39 : f32 to vector<8x128xf32>
    %177 = arith.addf %176, %175 : vector<8x128xf32>
    %178 = arith.divf %176, %177 : vector<8x128xf32>
    %179 = vector.extract_strided_slice %166 {offsets = [0, 256], sizes = [8, 128], strides = [1, 1]} : vector<8x512xf32> to vector<8x128xf32>
    %180 = math.tanh %179 : vector<8x128xf32>
    %181 = vector.extract_strided_slice %166 {offsets = [0, 384], sizes = [8, 128], strides = [1, 1]} : vector<8x512xf32> to vector<8x128xf32>
    %182 = arith.negf %181 : vector<8x128xf32>
    %183 = math.exp %182 : vector<8x128xf32>
    %cst_40 = arith.constant 1.000000e+00 : f32
    %184 = vector.broadcast %cst_40 : f32 to vector<8x128xf32>
    %185 = arith.addf %184, %183 : vector<8x128xf32>
    %186 = arith.divf %184, %185 : vector<8x128xf32>
    %187 = arith.mulf %178, %159 : vector<8x128xf32>
    %188 = arith.mulf %172, %180 : vector<8x128xf32>
    %189 = arith.addf %187, %188 : vector<8x128xf32>
    %190 = math.tanh %189 : vector<8x128xf32>
    %191 = arith.mulf %186, %190 : vector<8x128xf32>
    %c40 = arith.constant 40 : index
    %c0_41 = arith.constant 0 : index
    %192 = vector.load %arg8[%c40, %c0_41] : memref<64x128xf32, #tpu.memory_space<vmem>>, vector<8x128xf32>
    tpu.vector_store %arg8[%c40, %c0_41], %191 {strides = array<i32>} : memref<64x128xf32, #tpu.memory_space<vmem>>, vector<8x128xf32>,
    %193 = vector.extract_strided_slice %10 {offsets = [48, 0], sizes = [8, 512], strides = [1, 1]} : vector<64x512xf32> to vector<8x512xf32>
    %194 = arith.truncf %191 : vector<8x128xf32> to vector<8x128xbf16>
    %cst_42 = arith.constant dense<0.000000e+00> : vector<8x512xf32>
    %195 = tpu.matmul %194, %6, %cst_42 {dimension_numbers = #tpu.dot_dimension_numbers<[1], [0], [0], [1], [0, 0, 1, 1], [], []>} : vector<8x128xbf16>, vector<128x512xbf16>, vector<8x512xf32> -> vector<8x512xf32>
    %196 = arith.addf %193, %195 : vector<8x512xf32>
    %197 = vector.extract_strided_slice %196 {offsets = [0, 0], sizes = [8, 128], strides = [1, 1]} : vector<8x512xf32> to vector<8x128xf32>
    %198 = arith.negf %197 : vector<8x128xf32>
    %199 = math.exp %198 : vector<8x128xf32>
    %cst_43 = arith.constant 1.000000e+00 : f32
    %200 = vector.broadcast %cst_43 : f32 to vector<8x128xf32>
    %201 = arith.addf %200, %199 : vector<8x128xf32>
    %202 = arith.divf %200, %201 : vector<8x128xf32>
    %203 = vector.extract_strided_slice %196 {offsets = [0, 128], sizes = [8, 128], strides = [1, 1]} : vector<8x512xf32> to vector<8x128xf32>
    %204 = arith.negf %203 : vector<8x128xf32>
    %205 = math.exp %204 : vector<8x128xf32>
    %cst_44 = arith.constant 1.000000e+00 : f32
    %206 = vector.broadcast %cst_44 : f32 to vector<8x128xf32>
    %207 = arith.addf %206, %205 : vector<8x128xf32>
    %208 = arith.divf %206, %207 : vector<8x128xf32>
    %209 = vector.extract_strided_slice %196 {offsets = [0, 256], sizes = [8, 128], strides = [1, 1]} : vector<8x512xf32> to vector<8x128xf32>
    %210 = math.tanh %209 : vector<8x128xf32>
    %211 = vector.extract_strided_slice %196 {offsets = [0, 384], sizes = [8, 128], strides = [1, 1]} : vector<8x512xf32> to vector<8x128xf32>
    %212 = arith.negf %211 : vector<8x128xf32>
    %213 = math.exp %212 : vector<8x128xf32>
    %cst_45 = arith.constant 1.000000e+00 : f32
    %214 = vector.broadcast %cst_45 : f32 to vector<8x128xf32>
    %215 = arith.addf %214, %213 : vector<8x128xf32>
    %216 = arith.divf %214, %215 : vector<8x128xf32>
    %217 = arith.mulf %208, %189 : vector<8x128xf32>
    %218 = arith.mulf %202, %210 : vector<8x128xf32>
    %219 = arith.addf %217, %218 : vector<8x128xf32>
    %220 = math.tanh %219 : vector<8x128xf32>
    %221 = arith.mulf %216, %220 : vector<8x128xf32>
    %c48 = arith.constant 48 : index
    %c0_46 = arith.constant 0 : index
    %222 = vector.load %arg8[%c48, %c0_46] : memref<64x128xf32, #tpu.memory_space<vmem>>, vector<8x128xf32>
    tpu.vector_store %arg8[%c48, %c0_46], %221 {strides = array<i32>} : memref<64x128xf32, #tpu.memory_space<vmem>>, vector<8x128xf32>,
    %223 = vector.extract_strided_slice %10 {offsets = [56, 0], sizes = [8, 512], strides = [1, 1]} : vector<64x512xf32> to vector<8x512xf32>
    %224 = arith.truncf %221 : vector<8x128xf32> to vector<8x128xbf16>
    %cst_47 = arith.constant dense<0.000000e+00> : vector<8x512xf32>
    %225 = tpu.matmul %224, %6, %cst_47 {dimension_numbers = #tpu.dot_dimension_numbers<[1], [0], [0], [1], [0, 0, 1, 1], [], []>} : vector<8x128xbf16>, vector<128x512xbf16>, vector<8x512xf32> -> vector<8x512xf32>
    %226 = arith.addf %223, %225 : vector<8x512xf32>
    %227 = vector.extract_strided_slice %226 {offsets = [0, 0], sizes = [8, 128], strides = [1, 1]} : vector<8x512xf32> to vector<8x128xf32>
    %228 = arith.negf %227 : vector<8x128xf32>
    %229 = math.exp %228 : vector<8x128xf32>
    %cst_48 = arith.constant 1.000000e+00 : f32
    %230 = vector.broadcast %cst_48 : f32 to vector<8x128xf32>
    %231 = arith.addf %230, %229 : vector<8x128xf32>
    %232 = arith.divf %230, %231 : vector<8x128xf32>
    %233 = vector.extract_strided_slice %226 {offsets = [0, 128], sizes = [8, 128], strides = [1, 1]} : vector<8x512xf32> to vector<8x128xf32>
    %234 = arith.negf %233 : vector<8x128xf32>
    %235 = math.exp %234 : vector<8x128xf32>
    %cst_49 = arith.constant 1.000000e+00 : f32
    %236 = vector.broadcast %cst_49 : f32 to vector<8x128xf32>
    %237 = arith.addf %236, %235 : vector<8x128xf32>
    %238 = arith.divf %236, %237 : vector<8x128xf32>
    %239 = vector.extract_strided_slice %226 {offsets = [0, 256], sizes = [8, 128], strides = [1, 1]} : vector<8x512xf32> to vector<8x128xf32>
    %240 = math.tanh %239 : vector<8x128xf32>
    %241 = vector.extract_strided_slice %226 {offsets = [0, 384], sizes = [8, 128], strides = [1, 1]} : vector<8x512xf32> to vector<8x128xf32>
    %242 = arith.negf %241 : vector<8x128xf32>
    %243 = math.exp %242 : vector<8x128xf32>
    %cst_50 = arith.constant 1.000000e+00 : f32
    %244 = vector.broadcast %cst_50 : f32 to vector<8x128xf32>
    %245 = arith.addf %244, %243 : vector<8x128xf32>
    %246 = arith.divf %244, %245 : vector<8x128xf32>
    %247 = arith.mulf %238, %219 : vector<8x128xf32>
    %248 = arith.mulf %232, %240 : vector<8x128xf32>
    %249 = arith.addf %247, %248 : vector<8x128xf32>
    %250 = math.tanh %249 : vector<8x128xf32>
    %251 = arith.mulf %246, %250 : vector<8x128xf32>
    %c56 = arith.constant 56 : index
    %c0_51 = arith.constant 0 : index
    %252 = vector.load %arg8[%c56, %c0_51] : memref<64x128xf32, #tpu.memory_space<vmem>>, vector<8x128xf32>
    tpu.vector_store %arg8[%c56, %c0_51], %251 {strides = array<i32>} : memref<64x128xf32, #tpu.memory_space<vmem>>, vector<8x128xf32>,
    %c0_i32_52 = arith.constant 0 : i32
    %c0_i32_53 = arith.constant 0 : i32
    %253 = tpu.memref_slice %arg11[%c0_i32_52, %c0_i32_53] : memref<1x2x!tpu.dma_semaphore, #tpu.memory_space<semaphore_mem>> -> memref<1x1x!tpu.dma_semaphore, #tpu.memory_space<semaphore_mem>>
    %254 = tpu.memref_squeeze %253 : memref<1x1x!tpu.dma_semaphore, #tpu.memory_space<semaphore_mem>> -> memref<!tpu.dma_semaphore, #tpu.memory_space<semaphore_mem>>
    tpu.wait_dma2 semaphore(%254 : memref<!tpu.dma_semaphore, #tpu.memory_space<semaphore_mem>>) src(%arg4 : memref<128x512xbf16, #tpu.memory_space<any>>) dst(%arg9 : memref<128x512xbf16, #tpu.memory_space<vmem>>)
    %c0_i32_54 = arith.constant 0 : i32
    %c1_i32_55 = arith.constant 1 : i32
    %255 = tpu.memref_slice %arg11[%c0_i32_54, %c1_i32_55] : memref<1x2x!tpu.dma_semaphore, #tpu.memory_space<semaphore_mem>> -> memref<1x1x!tpu.dma_semaphore, #tpu.memory_space<semaphore_mem>>
    %256 = tpu.memref_squeeze %255 : memref<1x1x!tpu.dma_semaphore, #tpu.memory_space<semaphore_mem>> -> memref<!tpu.dma_semaphore, #tpu.memory_space<semaphore_mem>>
    tpu.wait_dma2 semaphore(%256 : memref<!tpu.dma_semaphore, #tpu.memory_space<semaphore_mem>>) src(%arg5 : memref<128x512xbf16, #tpu.memory_space<any>>) dst(%arg10 : memref<128x512xbf16, #tpu.memory_space<vmem>>)
    %c0_56 = arith.constant 0 : index
    %c0_57 = arith.constant 0 : index
    %257 = vector.load %arg6[%c0_56, %c0_57] : memref<1x512xf32, #tpu.memory_space<vmem>>, vector<1x512xf32>
    %c0_58 = arith.constant 0 : index
    %c0_59 = arith.constant 0 : index
    %258 = vector.load %arg8[%c0_58, %c0_59] : memref<64x128xf32, #tpu.memory_space<vmem>>, vector<64x128xf32>
    %259 = arith.truncf %258 : vector<64x128xf32> to vector<64x128xbf16>
    %c0_60 = arith.constant 0 : index
    %c0_61 = arith.constant 0 : index
    %260 = vector.load %arg9[%c0_60, %c0_61] : memref<128x512xbf16, #tpu.memory_space<vmem>>, vector<128x512xbf16>
    %c0_62 = arith.constant 0 : index
    %c0_63 = arith.constant 0 : index
    %261 = vector.load %arg10[%c0_62, %c0_63] : memref<128x512xbf16, #tpu.memory_space<vmem>>, vector<128x512xbf16>
    %cst_64 = arith.constant dense<0.000000e+00> : vector<64x512xf32>
    %262 = tpu.matmul %259, %260, %cst_64 {dimension_numbers = #tpu.dot_dimension_numbers<[1], [0], [0], [1], [0, 0, 1, 1], [], []>} : vector<64x128xbf16>, vector<128x512xbf16>, vector<64x512xf32> -> vector<64x512xf32>
    %263 = vector.broadcast %257 : vector<1x512xf32> to vector<64x512xf32>
    %264 = arith.addf %262, %263 : vector<64x512xf32>
    %cst_65 = arith.constant 0.000000e+00 : f32
    %265 = vector.broadcast %cst_65 : f32 to vector<8x128xf32>
    %cst_66 = arith.constant 0.000000e+00 : f32
    %266 = vector.broadcast %cst_66 : f32 to vector<8x128xf32>
    %267 = vector.extract_strided_slice %264 {offsets = [0, 0], sizes = [8, 512], strides = [1, 1]} : vector<64x512xf32> to vector<8x512xf32>
    %268 = arith.truncf %265 : vector<8x128xf32> to vector<8x128xbf16>
    %cst_67 = arith.constant dense<0.000000e+00> : vector<8x512xf32>
    %269 = tpu.matmul %268, %261, %cst_67 {dimension_numbers = #tpu.dot_dimension_numbers<[1], [0], [0], [1], [0, 0, 1, 1], [], []>} : vector<8x128xbf16>, vector<128x512xbf16>, vector<8x512xf32> -> vector<8x512xf32>
    %270 = arith.addf %267, %269 : vector<8x512xf32>
    %271 = vector.extract_strided_slice %270 {offsets = [0, 0], sizes = [8, 128], strides = [1, 1]} : vector<8x512xf32> to vector<8x128xf32>
    %272 = arith.negf %271 : vector<8x128xf32>
    %273 = math.exp %272 : vector<8x128xf32>
    %cst_68 = arith.constant 1.000000e+00 : f32
    %274 = vector.broadcast %cst_68 : f32 to vector<8x128xf32>
    %275 = arith.addf %274, %273 : vector<8x128xf32>
    %276 = arith.divf %274, %275 : vector<8x128xf32>
    %277 = vector.extract_strided_slice %270 {offsets = [0, 128], sizes = [8, 128], strides = [1, 1]} : vector<8x512xf32> to vector<8x128xf32>
    %278 = arith.negf %277 : vector<8x128xf32>
    %279 = math.exp %278 : vector<8x128xf32>
    %cst_69 = arith.constant 1.000000e+00 : f32
    %280 = vector.broadcast %cst_69 : f32 to vector<8x128xf32>
    %281 = arith.addf %280, %279 : vector<8x128xf32>
    %282 = arith.divf %280, %281 : vector<8x128xf32>
    %283 = vector.extract_strided_slice %270 {offsets = [0, 256], sizes = [8, 128], strides = [1, 1]} : vector<8x512xf32> to vector<8x128xf32>
    %284 = math.tanh %283 : vector<8x128xf32>
    %285 = vector.extract_strided_slice %270 {offsets = [0, 384], sizes = [8, 128], strides = [1, 1]} : vector<8x512xf32> to vector<8x128xf32>
    %286 = arith.negf %285 : vector<8x128xf32>
    %287 = math.exp %286 : vector<8x128xf32>
    %cst_70 = arith.constant 1.000000e+00 : f32
    %288 = vector.broadcast %cst_70 : f32 to vector<8x128xf32>
    %289 = arith.addf %288, %287 : vector<8x128xf32>
    %290 = arith.divf %288, %289 : vector<8x128xf32>
    %291 = arith.mulf %282, %266 : vector<8x128xf32>
    %292 = arith.mulf %276, %284 : vector<8x128xf32>
    %293 = arith.addf %291, %292 : vector<8x128xf32>
    %294 = math.tanh %293 : vector<8x128xf32>
    %295 = arith.mulf %290, %294 : vector<8x128xf32>
    %296 = vector.extract_strided_slice %264 {offsets = [8, 0], sizes = [8, 512], strides = [1, 1]} : vector<64x512xf32> to vector<8x512xf32>
    %297 = arith.truncf %295 : vector<8x128xf32> to vector<8x128xbf16>
    %cst_71 = arith.constant dense<0.000000e+00> : vector<8x512xf32>
    %298 = tpu.matmul %297, %261, %cst_71 {dimension_numbers = #tpu.dot_dimension_numbers<[1], [0], [0], [1], [0, 0, 1, 1], [], []>} : vector<8x128xbf16>, vector<128x512xbf16>, vector<8x512xf32> -> vector<8x512xf32>
    %299 = arith.addf %296, %298 : vector<8x512xf32>
    %300 = vector.extract_strided_slice %299 {offsets = [0, 0], sizes = [8, 128], strides = [1, 1]} : vector<8x512xf32> to vector<8x128xf32>
    %301 = arith.negf %300 : vector<8x128xf32>
    %302 = math.exp %301 : vector<8x128xf32>
    %cst_72 = arith.constant 1.000000e+00 : f32
    %303 = vector.broadcast %cst_72 : f32 to vector<8x128xf32>
    %304 = arith.addf %303, %302 : vector<8x128xf32>
    %305 = arith.divf %303, %304 : vector<8x128xf32>
    %306 = vector.extract_strided_slice %299 {offsets = [0, 128], sizes = [8, 128], strides = [1, 1]} : vector<8x512xf32> to vector<8x128xf32>
    %307 = arith.negf %306 : vector<8x128xf32>
    %308 = math.exp %307 : vector<8x128xf32>
    %cst_73 = arith.constant 1.000000e+00 : f32
    %309 = vector.broadcast %cst_73 : f32 to vector<8x128xf32>
    %310 = arith.addf %309, %308 : vector<8x128xf32>
    %311 = arith.divf %309, %310 : vector<8x128xf32>
    %312 = vector.extract_strided_slice %299 {offsets = [0, 256], sizes = [8, 128], strides = [1, 1]} : vector<8x512xf32> to vector<8x128xf32>
    %313 = math.tanh %312 : vector<8x128xf32>
    %314 = vector.extract_strided_slice %299 {offsets = [0, 384], sizes = [8, 128], strides = [1, 1]} : vector<8x512xf32> to vector<8x128xf32>
    %315 = arith.negf %314 : vector<8x128xf32>
    %316 = math.exp %315 : vector<8x128xf32>
    %cst_74 = arith.constant 1.000000e+00 : f32
    %317 = vector.broadcast %cst_74 : f32 to vector<8x128xf32>
    %318 = arith.addf %317, %316 : vector<8x128xf32>
    %319 = arith.divf %317, %318 : vector<8x128xf32>
    %320 = arith.mulf %311, %293 : vector<8x128xf32>
    %321 = arith.mulf %305, %313 : vector<8x128xf32>
    %322 = arith.addf %320, %321 : vector<8x128xf32>
    %323 = math.tanh %322 : vector<8x128xf32>
    %324 = arith.mulf %319, %323 : vector<8x128xf32>
    %325 = vector.extract_strided_slice %264 {offsets = [16, 0], sizes = [8, 512], strides = [1, 1]} : vector<64x512xf32> to vector<8x512xf32>
    %326 = arith.truncf %324 : vector<8x128xf32> to vector<8x128xbf16>
    %cst_75 = arith.constant dense<0.000000e+00> : vector<8x512xf32>
    %327 = tpu.matmul %326, %261, %cst_75 {dimension_numbers = #tpu.dot_dimension_numbers<[1], [0], [0], [1], [0, 0, 1, 1], [], []>} : vector<8x128xbf16>, vector<128x512xbf16>, vector<8x512xf32> -> vector<8x512xf32>
    %328 = arith.addf %325, %327 : vector<8x512xf32>
    %329 = vector.extract_strided_slice %328 {offsets = [0, 0], sizes = [8, 128], strides = [1, 1]} : vector<8x512xf32> to vector<8x128xf32>
    %330 = arith.negf %329 : vector<8x128xf32>
    %331 = math.exp %330 : vector<8x128xf32>
    %cst_76 = arith.constant 1.000000e+00 : f32
    %332 = vector.broadcast %cst_76 : f32 to vector<8x128xf32>
    %333 = arith.addf %332, %331 : vector<8x128xf32>
    %334 = arith.divf %332, %333 : vector<8x128xf32>
    %335 = vector.extract_strided_slice %328 {offsets = [0, 128], sizes = [8, 128], strides = [1, 1]} : vector<8x512xf32> to vector<8x128xf32>
    %336 = arith.negf %335 : vector<8x128xf32>
    %337 = math.exp %336 : vector<8x128xf32>
    %cst_77 = arith.constant 1.000000e+00 : f32
    %338 = vector.broadcast %cst_77 : f32 to vector<8x128xf32>
    %339 = arith.addf %338, %337 : vector<8x128xf32>
    %340 = arith.divf %338, %339 : vector<8x128xf32>
    %341 = vector.extract_strided_slice %328 {offsets = [0, 256], sizes = [8, 128], strides = [1, 1]} : vector<8x512xf32> to vector<8x128xf32>
    %342 = math.tanh %341 : vector<8x128xf32>
    %343 = vector.extract_strided_slice %328 {offsets = [0, 384], sizes = [8, 128], strides = [1, 1]} : vector<8x512xf32> to vector<8x128xf32>
    %344 = arith.negf %343 : vector<8x128xf32>
    %345 = math.exp %344 : vector<8x128xf32>
    %cst_78 = arith.constant 1.000000e+00 : f32
    %346 = vector.broadcast %cst_78 : f32 to vector<8x128xf32>
    %347 = arith.addf %346, %345 : vector<8x128xf32>
    %348 = arith.divf %346, %347 : vector<8x128xf32>
    %349 = arith.mulf %340, %322 : vector<8x128xf32>
    %350 = arith.mulf %334, %342 : vector<8x128xf32>
    %351 = arith.addf %349, %350 : vector<8x128xf32>
    %352 = math.tanh %351 : vector<8x128xf32>
    %353 = arith.mulf %348, %352 : vector<8x128xf32>
    %354 = vector.extract_strided_slice %264 {offsets = [24, 0], sizes = [8, 512], strides = [1, 1]} : vector<64x512xf32> to vector<8x512xf32>
    %355 = arith.truncf %353 : vector<8x128xf32> to vector<8x128xbf16>
    %cst_79 = arith.constant dense<0.000000e+00> : vector<8x512xf32>
    %356 = tpu.matmul %355, %261, %cst_79 {dimension_numbers = #tpu.dot_dimension_numbers<[1], [0], [0], [1], [0, 0, 1, 1], [], []>} : vector<8x128xbf16>, vector<128x512xbf16>, vector<8x512xf32> -> vector<8x512xf32>
    %357 = arith.addf %354, %356 : vector<8x512xf32>
    %358 = vector.extract_strided_slice %357 {offsets = [0, 0], sizes = [8, 128], strides = [1, 1]} : vector<8x512xf32> to vector<8x128xf32>
    %359 = arith.negf %358 : vector<8x128xf32>
    %360 = math.exp %359 : vector<8x128xf32>
    %cst_80 = arith.constant 1.000000e+00 : f32
    %361 = vector.broadcast %cst_80 : f32 to vector<8x128xf32>
    %362 = arith.addf %361, %360 : vector<8x128xf32>
    %363 = arith.divf %361, %362 : vector<8x128xf32>
    %364 = vector.extract_strided_slice %357 {offsets = [0, 128], sizes = [8, 128], strides = [1, 1]} : vector<8x512xf32> to vector<8x128xf32>
    %365 = arith.negf %364 : vector<8x128xf32>
    %366 = math.exp %365 : vector<8x128xf32>
    %cst_81 = arith.constant 1.000000e+00 : f32
    %367 = vector.broadcast %cst_81 : f32 to vector<8x128xf32>
    %368 = arith.addf %367, %366 : vector<8x128xf32>
    %369 = arith.divf %367, %368 : vector<8x128xf32>
    %370 = vector.extract_strided_slice %357 {offsets = [0, 256], sizes = [8, 128], strides = [1, 1]} : vector<8x512xf32> to vector<8x128xf32>
    %371 = math.tanh %370 : vector<8x128xf32>
    %372 = vector.extract_strided_slice %357 {offsets = [0, 384], sizes = [8, 128], strides = [1, 1]} : vector<8x512xf32> to vector<8x128xf32>
    %373 = arith.negf %372 : vector<8x128xf32>
    %374 = math.exp %373 : vector<8x128xf32>
    %cst_82 = arith.constant 1.000000e+00 : f32
    %375 = vector.broadcast %cst_82 : f32 to vector<8x128xf32>
    %376 = arith.addf %375, %374 : vector<8x128xf32>
    %377 = arith.divf %375, %376 : vector<8x128xf32>
    %378 = arith.mulf %369, %351 : vector<8x128xf32>
    %379 = arith.mulf %363, %371 : vector<8x128xf32>
    %380 = arith.addf %378, %379 : vector<8x128xf32>
    %381 = math.tanh %380 : vector<8x128xf32>
    %382 = arith.mulf %377, %381 : vector<8x128xf32>
    %383 = vector.extract_strided_slice %264 {offsets = [32, 0], sizes = [8, 512], strides = [1, 1]} : vector<64x512xf32> to vector<8x512xf32>
    %384 = arith.truncf %382 : vector<8x128xf32> to vector<8x128xbf16>
    %cst_83 = arith.constant dense<0.000000e+00> : vector<8x512xf32>
    %385 = tpu.matmul %384, %261, %cst_83 {dimension_numbers = #tpu.dot_dimension_numbers<[1], [0], [0], [1], [0, 0, 1, 1], [], []>} : vector<8x128xbf16>, vector<128x512xbf16>, vector<8x512xf32> -> vector<8x512xf32>
    %386 = arith.addf %383, %385 : vector<8x512xf32>
    %387 = vector.extract_strided_slice %386 {offsets = [0, 0], sizes = [8, 128], strides = [1, 1]} : vector<8x512xf32> to vector<8x128xf32>
    %388 = arith.negf %387 : vector<8x128xf32>
    %389 = math.exp %388 : vector<8x128xf32>
    %cst_84 = arith.constant 1.000000e+00 : f32
    %390 = vector.broadcast %cst_84 : f32 to vector<8x128xf32>
    %391 = arith.addf %390, %389 : vector<8x128xf32>
    %392 = arith.divf %390, %391 : vector<8x128xf32>
    %393 = vector.extract_strided_slice %386 {offsets = [0, 128], sizes = [8, 128], strides = [1, 1]} : vector<8x512xf32> to vector<8x128xf32>
    %394 = arith.negf %393 : vector<8x128xf32>
    %395 = math.exp %394 : vector<8x128xf32>
    %cst_85 = arith.constant 1.000000e+00 : f32
    %396 = vector.broadcast %cst_85 : f32 to vector<8x128xf32>
    %397 = arith.addf %396, %395 : vector<8x128xf32>
    %398 = arith.divf %396, %397 : vector<8x128xf32>
    %399 = vector.extract_strided_slice %386 {offsets = [0, 256], sizes = [8, 128], strides = [1, 1]} : vector<8x512xf32> to vector<8x128xf32>
    %400 = math.tanh %399 : vector<8x128xf32>
    %401 = vector.extract_strided_slice %386 {offsets = [0, 384], sizes = [8, 128], strides = [1, 1]} : vector<8x512xf32> to vector<8x128xf32>
    %402 = arith.negf %401 : vector<8x128xf32>
    %403 = math.exp %402 : vector<8x128xf32>
    %cst_86 = arith.constant 1.000000e+00 : f32
    %404 = vector.broadcast %cst_86 : f32 to vector<8x128xf32>
    %405 = arith.addf %404, %403 : vector<8x128xf32>
    %406 = arith.divf %404, %405 : vector<8x128xf32>
    %407 = arith.mulf %398, %380 : vector<8x128xf32>
    %408 = arith.mulf %392, %400 : vector<8x128xf32>
    %409 = arith.addf %407, %408 : vector<8x128xf32>
    %410 = math.tanh %409 : vector<8x128xf32>
    %411 = arith.mulf %406, %410 : vector<8x128xf32>
    %412 = vector.extract_strided_slice %264 {offsets = [40, 0], sizes = [8, 512], strides = [1, 1]} : vector<64x512xf32> to vector<8x512xf32>
    %413 = arith.truncf %411 : vector<8x128xf32> to vector<8x128xbf16>
    %cst_87 = arith.constant dense<0.000000e+00> : vector<8x512xf32>
    %414 = tpu.matmul %413, %261, %cst_87 {dimension_numbers = #tpu.dot_dimension_numbers<[1], [0], [0], [1], [0, 0, 1, 1], [], []>} : vector<8x128xbf16>, vector<128x512xbf16>, vector<8x512xf32> -> vector<8x512xf32>
    %415 = arith.addf %412, %414 : vector<8x512xf32>
    %416 = vector.extract_strided_slice %415 {offsets = [0, 0], sizes = [8, 128], strides = [1, 1]} : vector<8x512xf32> to vector<8x128xf32>
    %417 = arith.negf %416 : vector<8x128xf32>
    %418 = math.exp %417 : vector<8x128xf32>
    %cst_88 = arith.constant 1.000000e+00 : f32
    %419 = vector.broadcast %cst_88 : f32 to vector<8x128xf32>
    %420 = arith.addf %419, %418 : vector<8x128xf32>
    %421 = arith.divf %419, %420 : vector<8x128xf32>
    %422 = vector.extract_strided_slice %415 {offsets = [0, 128], sizes = [8, 128], strides = [1, 1]} : vector<8x512xf32> to vector<8x128xf32>
    %423 = arith.negf %422 : vector<8x128xf32>
    %424 = math.exp %423 : vector<8x128xf32>
    %cst_89 = arith.constant 1.000000e+00 : f32
    %425 = vector.broadcast %cst_89 : f32 to vector<8x128xf32>
    %426 = arith.addf %425, %424 : vector<8x128xf32>
    %427 = arith.divf %425, %426 : vector<8x128xf32>
    %428 = vector.extract_strided_slice %415 {offsets = [0, 256], sizes = [8, 128], strides = [1, 1]} : vector<8x512xf32> to vector<8x128xf32>
    %429 = math.tanh %428 : vector<8x128xf32>
    %430 = vector.extract_strided_slice %415 {offsets = [0, 384], sizes = [8, 128], strides = [1, 1]} : vector<8x512xf32> to vector<8x128xf32>
    %431 = arith.negf %430 : vector<8x128xf32>
    %432 = math.exp %431 : vector<8x128xf32>
    %cst_90 = arith.constant 1.000000e+00 : f32
    %433 = vector.broadcast %cst_90 : f32 to vector<8x128xf32>
    %434 = arith.addf %433, %432 : vector<8x128xf32>
    %435 = arith.divf %433, %434 : vector<8x128xf32>
    %436 = arith.mulf %427, %409 : vector<8x128xf32>
    %437 = arith.mulf %421, %429 : vector<8x128xf32>
    %438 = arith.addf %436, %437 : vector<8x128xf32>
    %439 = math.tanh %438 : vector<8x128xf32>
    %440 = arith.mulf %435, %439 : vector<8x128xf32>
    %441 = vector.extract_strided_slice %264 {offsets = [48, 0], sizes = [8, 512], strides = [1, 1]} : vector<64x512xf32> to vector<8x512xf32>
    %442 = arith.truncf %440 : vector<8x128xf32> to vector<8x128xbf16>
    %cst_91 = arith.constant dense<0.000000e+00> : vector<8x512xf32>
    %443 = tpu.matmul %442, %261, %cst_91 {dimension_numbers = #tpu.dot_dimension_numbers<[1], [0], [0], [1], [0, 0, 1, 1], [], []>} : vector<8x128xbf16>, vector<128x512xbf16>, vector<8x512xf32> -> vector<8x512xf32>
    %444 = arith.addf %441, %443 : vector<8x512xf32>
    %445 = vector.extract_strided_slice %444 {offsets = [0, 0], sizes = [8, 128], strides = [1, 1]} : vector<8x512xf32> to vector<8x128xf32>
    %446 = arith.negf %445 : vector<8x128xf32>
    %447 = math.exp %446 : vector<8x128xf32>
    %cst_92 = arith.constant 1.000000e+00 : f32
    %448 = vector.broadcast %cst_92 : f32 to vector<8x128xf32>
    %449 = arith.addf %448, %447 : vector<8x128xf32>
    %450 = arith.divf %448, %449 : vector<8x128xf32>
    %451 = vector.extract_strided_slice %444 {offsets = [0, 128], sizes = [8, 128], strides = [1, 1]} : vector<8x512xf32> to vector<8x128xf32>
    %452 = arith.negf %451 : vector<8x128xf32>
    %453 = math.exp %452 : vector<8x128xf32>
    %cst_93 = arith.constant 1.000000e+00 : f32
    %454 = vector.broadcast %cst_93 : f32 to vector<8x128xf32>
    %455 = arith.addf %454, %453 : vector<8x128xf32>
    %456 = arith.divf %454, %455 : vector<8x128xf32>
    %457 = vector.extract_strided_slice %444 {offsets = [0, 256], sizes = [8, 128], strides = [1, 1]} : vector<8x512xf32> to vector<8x128xf32>
    %458 = math.tanh %457 : vector<8x128xf32>
    %459 = vector.extract_strided_slice %444 {offsets = [0, 384], sizes = [8, 128], strides = [1, 1]} : vector<8x512xf32> to vector<8x128xf32>
    %460 = arith.negf %459 : vector<8x128xf32>
    %461 = math.exp %460 : vector<8x128xf32>
    %cst_94 = arith.constant 1.000000e+00 : f32
    %462 = vector.broadcast %cst_94 : f32 to vector<8x128xf32>
    %463 = arith.addf %462, %461 : vector<8x128xf32>
    %464 = arith.divf %462, %463 : vector<8x128xf32>
    %465 = arith.mulf %456, %438 : vector<8x128xf32>
    %466 = arith.mulf %450, %458 : vector<8x128xf32>
    %467 = arith.addf %465, %466 : vector<8x128xf32>
    %468 = math.tanh %467 : vector<8x128xf32>
    %469 = arith.mulf %464, %468 : vector<8x128xf32>
    %470 = vector.extract_strided_slice %264 {offsets = [56, 0], sizes = [8, 512], strides = [1, 1]} : vector<64x512xf32> to vector<8x512xf32>
    %471 = arith.truncf %469 : vector<8x128xf32> to vector<8x128xbf16>
    %cst_95 = arith.constant dense<0.000000e+00> : vector<8x512xf32>
    %472 = tpu.matmul %471, %261, %cst_95 {dimension_numbers = #tpu.dot_dimension_numbers<[1], [0], [0], [1], [0, 0, 1, 1], [], []>} : vector<8x128xbf16>, vector<128x512xbf16>, vector<8x512xf32> -> vector<8x512xf32>
    %473 = arith.addf %470, %472 : vector<8x512xf32>
    %474 = vector.extract_strided_slice %473 {offsets = [0, 0], sizes = [8, 128], strides = [1, 1]} : vector<8x512xf32> to vector<8x128xf32>
    %475 = arith.negf %474 : vector<8x128xf32>
    %476 = math.exp %475 : vector<8x128xf32>
    %cst_96 = arith.constant 1.000000e+00 : f32
    %477 = vector.broadcast %cst_96 : f32 to vector<8x128xf32>
    %478 = arith.addf %477, %476 : vector<8x128xf32>
    %479 = arith.divf %477, %478 : vector<8x128xf32>
    %480 = vector.extract_strided_slice %473 {offsets = [0, 128], sizes = [8, 128], strides = [1, 1]} : vector<8x512xf32> to vector<8x128xf32>
    %481 = arith.negf %480 : vector<8x128xf32>
    %482 = math.exp %481 : vector<8x128xf32>
    %cst_97 = arith.constant 1.000000e+00 : f32
    %483 = vector.broadcast %cst_97 : f32 to vector<8x128xf32>
    %484 = arith.addf %483, %482 : vector<8x128xf32>
    %485 = arith.divf %483, %484 : vector<8x128xf32>
    %486 = vector.extract_strided_slice %473 {offsets = [0, 256], sizes = [8, 128], strides = [1, 1]} : vector<8x512xf32> to vector<8x128xf32>
    %487 = math.tanh %486 : vector<8x128xf32>
    %488 = vector.extract_strided_slice %473 {offsets = [0, 384], sizes = [8, 128], strides = [1, 1]} : vector<8x512xf32> to vector<8x128xf32>
    %489 = arith.negf %488 : vector<8x128xf32>
    %490 = math.exp %489 : vector<8x128xf32>
    %cst_98 = arith.constant 1.000000e+00 : f32
    %491 = vector.broadcast %cst_98 : f32 to vector<8x128xf32>
    %492 = arith.addf %491, %490 : vector<8x128xf32>
    %493 = arith.divf %491, %492 : vector<8x128xf32>
    %494 = arith.mulf %485, %467 : vector<8x128xf32>
    %495 = arith.mulf %479, %487 : vector<8x128xf32>
    %496 = arith.addf %494, %495 : vector<8x128xf32>
    %497 = math.tanh %496 : vector<8x128xf32>
    %498 = arith.mulf %493, %497 : vector<8x128xf32>
    %c0_99 = arith.constant 0 : index
    %c0_100 = arith.constant 0 : index
    %499 = vector.load %arg7[%c0_99, %c0_100] : memref<8x128xf32, #tpu.memory_space<vmem>>, vector<8x128xf32>
    tpu.vector_store %arg7[%c0_99, %c0_100], %498 {strides = array<i32>} : memref<8x128xf32, #tpu.memory_space<vmem>>, vector<8x128xf32>,
    return
  }
}

</mosaic_0001>

<bundles_post_ra>
// kernel: forward.1
= control target key start
LH: loop header
LB: loop body
LE: loop exit
PB: predicated region body
PF: predicated region fallthrough
CT: control target
= control target key end

     0   :  { %12 = vsyncpa [#allocation7], 0  ;;  %s5053_s0 = inlined_call_operand.vmem [shape: bf16[64,64], index: 0, kind: input, shape index: {}]   ;;  %s5054_s1 = inlined_call_operand.hbm [shape: bf16[64,512], index: 1, kind: input, shape index: {}]   ;;  %s5055_s2 = inlined_call_operand.vmem [shape: bf16[128,512], index: 2, kind: input, shape index: {}]   ;;  %s5056_s3 = inlined_call_operand.vmem [shape: f32[1,512], index: 3, kind: input, shape index: {}]   ;;  %s5057_s4 = inlined_call_operand.vmem [shape: bf16[128,512], index: 4, kind: input, shape index: {}]   ;;  %s5058_s5 = inlined_call_operand.hbm [shape: bf16[128,512], index: 5, kind: input, shape index: {}]   ;;  %s5059_s6 = inlined_call_operand.vmem [shape: f32[1,512], index: 6, kind: input, shape index: {}]   ;;  %s5060_s7 = inlined_call_operand.hbm [shape: f32[8,128], index: 7, kind: output, shape index: {}]  }
   0x1   :  { %13 = vsyncpa [#allocation8], 0  ;;  %s3523_s24 = smov [#allocation6]   ;;  %s3471_s28 = scalar_lea.hbm %s5054_s1, 2048 }
   0x2   :  { %s21_s25 = sshll.u32 %s3523_s24, 4  ;;  %p3472_p0 = scmp.ne.s32.totalorder %s5054_s1, %s3471_s28  ;;  %s22_s25 = int_to_ptr.vmem [resolvable:$true] %s21_s25 }
   0x3   :  { %p3475_p1 = scmp.lt.u32.totalorder %s3471_s28, %s5054_s1 }
   0x5   :  { %p3477_p2 = pnand %p3475_p1, %p3472_p0 }
   0x7   :  { %3480 = shalt.err (!%p3477_p2)
}
   0x8   :  { %s3481_s10 = scalar_lea.vmem %s22_s25, 2048  ;;  %p3486_p4 = scmp.lt.s32.totalorder %s22_s25, %s22_s25 }
   0x9   :  { %p3482_p3 = scmp.ne.s32.totalorder %s22_s25, %s3481_s10  ;;  %p3487_p5 = scmp.lt.s32.totalorder %s3481_s10, %s3481_s10 }
   0xb   :  { %p3488_p6 = por %p3487_p5, %p3486_p4 }
   0xd   :  { %p3489_p7 = pnand %p3488_p6, %p3482_p3 }
   0xf   :  { %3492 = shalt.err (!%p3489_p7)
}
  0x10   :  { %s3524_s11 = smov 256   ;;  %s3525_s12 = smov 16  }
  0x11   :  { %27 = dma.hbm_to_vmem [thread:$0]  %s5054_s1, 2048, %s22_s25, [#allocation7], %s3524_s11, %s3524_s11, %s3525_s12  }
  0x12   :  { %3515 = dma.done.wait [#allocation7], 2048  }
  0x13   :  { %3516 = vsyncadd [#allocation7], 4294965248  ;;  %v55_v0 = vld [vmem:[%s5057_s4] sm:$0xf]  ;;  %v57_v1 = vld [vmem:[%s5057_s4 + $0x10] sm:$0xf] }
  0x14   :  { %v59_v2 = vld [vmem:[%s5057_s4 + $0x4] sm:$0xf]  ;;  %56 = vst [vmem:[#allocation3] sm:$0xf] %v55_v0  ;;  %58 = vst [vmem:[#allocation3 + $0x4] sm:$0xf] %v57_v1 }
  0x15   :  { %60 = vst [vmem:[#allocation3 + $0x8] sm:$0xf] %v59_v2  ;;  %v61_v3 = vld [vmem:[%s5057_s4 + $0x14] sm:$0xf]  ;;  %v63_v4 = vld [vmem:[%s5057_s4 + $0x8] sm:$0xf] }
  0x16   :  { %v65_v5 = vld [vmem:[%s5057_s4 + $0x18] sm:$0xf]  ;;  %62 = vst [vmem:[#allocation3 + $0xc] sm:$0xf] %v61_v3  ;;  %64 = vst [vmem:[#allocation3 + $0x10] sm:$0xf] %v63_v4 }
  0x17   :  { %66 = vst [vmem:[#allocation3 + $0x14] sm:$0xf] %v65_v5  ;;  %v67_v6 = vld [vmem:[%s5057_s4 + $0xc] sm:$0xf]  ;;  %v69_v7 = vld [vmem:[%s5057_s4 + $0x1c] sm:$0xff]  }
  0x18   :  { %v73_v8 = vld [vmem:[%s5057_s4 + $0x30] sm:$0xf]  ;;  %68 = vst [vmem:[#allocation3 + $0x18] sm:$0xf] %v67_v6  ;;  %70 = vst [vmem:[#allocation3 + $0x1c] sm:$0xff] %v69_v7   ;;  %v85_v14 = vld [vmem:[%s5057_s4 + $0x3c] sm:$0xff]  }
  0x19   :  { %74 = vst [vmem:[#allocation3 + $0x24] sm:$0xf] %v73_v8  ;;  %v75_v9 = vld [vmem:[%s5057_s4 + $0x24] sm:$0xf]  ;;  %v77_v10 = vld [vmem:[%s5057_s4 + $0x34] sm:$0xf] }
  0x1a   :  { %v79_v11 = vld [vmem:[%s5057_s4 + $0x28] sm:$0xf]  ;;  %76 = vst [vmem:[#allocation3 + $0x28] sm:$0xf] %v75_v9  ;;  %78 = vst [vmem:[#allocation3 + $0x2c] sm:$0xf] %v77_v10 }
  0x1b   :  { %80 = vst [vmem:[#allocation3 + $0x30] sm:$0xf] %v79_v11  ;;  %v81_v12 = vld [vmem:[%s5057_s4 + $0x38] sm:$0xf]  ;;  %v83_v13 = vld [vmem:[%s5057_s4 + $0x2c] sm:$0xf] }
  0x1c   :  { %82 = vst [vmem:[#allocation3 + $0x34] sm:$0xf] %v81_v12  ;;  %84 = vst [vmem:[#allocation3 + $0x38] sm:$0xf] %v83_v13  ;;  %v89_v15 = vld [vmem:[%s5057_s4 + $0x50] sm:$0xf] }
  0x1d   :  { %86 = vst [vmem:[#allocation3 + $0x3c] sm:$0xff] %v85_v14   ;;  %v91_v16 = vld [vmem:[%s5057_s4 + $0x44] sm:$0xf]  ;;  %v93_v17 = vld [vmem:[%s5057_s4 + $0x54] sm:$0xf]  ;;  %v101_v21 = vld [vmem:[%s5057_s4 + $0x5c] sm:$0xff]  }
  0x1e   :  { %90 = vst [vmem:[#allocation3 + $0x44] sm:$0xf] %v89_v15  ;;  %92 = vst [vmem:[#allocation3 + $0x48] sm:$0xf] %v91_v16  ;;  %v95_v18 = vld [vmem:[%s5057_s4 + $0x48] sm:$0xf] }
  0x1f   :  { %94 = vst [vmem:[#allocation3 + $0x4c] sm:$0xf] %v93_v17  ;;  %v97_v19 = vld [vmem:[%s5057_s4 + $0x58] sm:$0xf]  ;;  %v99_v20 = vld [vmem:[%s5057_s4 + $0x4c] sm:$0xf] }
  0x20   :  { %96 = vst [vmem:[#allocation3 + $0x50] sm:$0xf] %v95_v18  ;;  %98 = vst [vmem:[#allocation3 + $0x54] sm:$0xf] %v97_v19  ;;  %v105_v22 = vld [vmem:[%s5057_s4 + $0x70] sm:$0xf] }
  0x21   :  { %100 = vst [vmem:[#allocation3 + $0x58] sm:$0xf] %v99_v20  ;;  %v107_v23 = vld [vmem:[%s5057_s4 + $0x64] sm:$0xf]  ;;  %102 = vst [vmem:[#allocation3 + $0x5c] sm:$0xff] %v101_v21   ;;  %v117_v28 = vld [vmem:[%s5057_s4 + $0x7c] sm:$0xff]  }
  0x22   :  { %106 = vst [vmem:[#allocation3 + $0x64] sm:$0xf] %v105_v22  ;;  %108 = vst [vmem:[#allocation3 + $0x68] sm:$0xf] %v107_v23  ;;  %v109_v24 = vld [vmem:[%s5057_s4 + $0x74] sm:$0xf] }
  0x23   :  { %v111_v25 = vld [vmem:[%s5057_s4 + $0x68] sm:$0xf]  ;;  %v113_v26 = vld [vmem:[%s5057_s4 + $0x78] sm:$0xf]  ;;  %110 = vst [vmem:[#allocation3 + $0x6c] sm:$0xf] %v109_v24 }
  0x24   :  { %112 = vst [vmem:[#allocation3 + $0x70] sm:$0xf] %v111_v25  ;;  %114 = vst [vmem:[#allocation3 + $0x74] sm:$0xf] %v113_v26  ;;  %v115_v27 = vld [vmem:[%s5057_s4 + $0x6c] sm:$0xf] }
  0x25   :  { %v121_v29 = vld [vmem:[%s5057_s4 + $0x90] sm:$0xf]  ;;  %116 = vst [vmem:[#allocation3 + $0x78] sm:$0xf] %v115_v27  ;;  %118 = vst [vmem:[#allocation3 + $0x7c] sm:$0xff] %v117_v28   ;;  %v133_v35 = vld [vmem:[%s5057_s4 + $0x9c] sm:$0xff]  }
  0x26   :  { %122 = vst [vmem:[#allocation3 + $0x84] sm:$0xf] %v121_v29  ;;  %v123_v30 = vld [vmem:[%s5057_s4 + $0x84] sm:$0xf]  ;;  %v125_v31 = vld [vmem:[%s5057_s4 + $0x94] sm:$0xf] }
  0x27   :  { %v127_v32 = vld [vmem:[%s5057_s4 + $0x88] sm:$0xf]  ;;  %124 = vst [vmem:[#allocation3 + $0x88] sm:$0xf] %v123_v30  ;;  %126 = vst [vmem:[#allocation3 + $0x8c] sm:$0xf] %v125_v31 }
  0x28   :  { %128 = vst [vmem:[#allocation3 + $0x90] sm:$0xf] %v127_v32  ;;  %v129_v33 = vld [vmem:[%s5057_s4 + $0x98] sm:$0xf]  ;;  %v131_v34 = vld [vmem:[%s5057_s4 + $0x8c] sm:$0xf] }
  0x29   :  { %130 = vst [vmem:[#allocation3 + $0x94] sm:$0xf] %v129_v33  ;;  %132 = vst [vmem:[#allocation3 + $0x98] sm:$0xf] %v131_v34  ;;  %v137_v36 = vld [vmem:[%s5057_s4 + $0xb0] sm:$0xf] }
  0x2a   :  { %134 = vst [vmem:[#allocation3 + $0x9c] sm:$0xff] %v133_v35   ;;  %v139_v37 = vld [vmem:[%s5057_s4 + $0xa4] sm:$0xf]  ;;  %v141_v38 = vld [vmem:[%s5057_s4 + $0xb4] sm:$0xf]  ;;  %v149_v42 = vld [vmem:[%s5057_s4 + $0xbc] sm:$0xff]  }
  0x2b   :  { %138 = vst [vmem:[#allocation3 + $0xa4] sm:$0xf] %v137_v36  ;;  %140 = vst [vmem:[#allocation3 + $0xa8] sm:$0xf] %v139_v37  ;;  %v143_v39 = vld [vmem:[%s5057_s4 + $0xa8] sm:$0xf] }
  0x2c   :  { %142 = vst [vmem:[#allocation3 + $0xac] sm:$0xf] %v141_v38  ;;  %v145_v40 = vld [vmem:[%s5057_s4 + $0xb8] sm:$0xf]  ;;  %v147_v41 = vld [vmem:[%s5057_s4 + $0xac] sm:$0xf] }
  0x2d   :  { %144 = vst [vmem:[#allocation3 + $0xb0] sm:$0xf] %v143_v39  ;;  %146 = vst [vmem:[#allocation3 + $0xb4] sm:$0xf] %v145_v40  ;;  %v153_v43 = vld [vmem:[%s5057_s4 + $0xd0] sm:$0xf] }
  0x2e   :  { %148 = vst [vmem:[#allocation3 + $0xb8] sm:$0xf] %v147_v41  ;;  %v155_v44 = vld [vmem:[%s5057_s4 + $0xc4] sm:$0xf]  ;;  %150 = vst [vmem:[#allocation3 + $0xbc] sm:$0xff] %v149_v42   ;;  %v165_v49 = vld [vmem:[%s5057_s4 + $0xdc] sm:$0xff]  }
  0x2f   :  { %154 = vst [vmem:[#allocation3 + $0xc4] sm:$0xf] %v153_v43  ;;  %156 = vst [vmem:[#allocation3 + $0xc8] sm:$0xf] %v155_v44  ;;  %v157_v45 = vld [vmem:[%s5057_s4 + $0xd4] sm:$0xf] }
  0x30   :  { %v159_v46 = vld [vmem:[%s5057_s4 + $0xc8] sm:$0xf]  ;;  %v161_v47 = vld [vmem:[%s5057_s4 + $0xd8] sm:$0xf]  ;;  %158 = vst [vmem:[#allocation3 + $0xcc] sm:$0xf] %v157_v45 }
  0x31   :  { %160 = vst [vmem:[#allocation3 + $0xd0] sm:$0xf] %v159_v46  ;;  %162 = vst [vmem:[#allocation3 + $0xd4] sm:$0xf] %v161_v47  ;;  %v163_v48 = vld [vmem:[%s5057_s4 + $0xcc] sm:$0xf] }
  0x32   :  { %v169_v50 = vld [vmem:[%s5057_s4 + $0xf0] sm:$0xf]  ;;  %164 = vst [vmem:[#allocation3 + $0xd8] sm:$0xf] %v163_v48  ;;  %166 = vst [vmem:[#allocation3 + $0xdc] sm:$0xff] %v165_v49  }
  0x33   :  { %170 = vst [vmem:[#allocation3 + $0xe4] sm:$0xf] %v169_v50  ;;  %v171_v51 = vld [vmem:[%s5057_s4 + $0xe4] sm:$0xf]  ;;  %v173_v52 = vld [vmem:[%s5057_s4 + $0xf4] sm:$0xf] }
  0x34   :  { %v175_v53 = vld [vmem:[%s5057_s4 + $0xe8] sm:$0xf]  ;;  %172 = vst [vmem:[#allocation3 + $0xe8] sm:$0xf] %v171_v51  ;;  %174 = vst [vmem:[#allocation3 + $0xec] sm:$0xf] %v173_v52 }
  0x35   :  { %176 = vst [vmem:[#allocation3 + $0xf0] sm:$0xf] %v175_v53  ;;  %v177_v54 = vld [vmem:[%s5057_s4 + $0xf8] sm:$0xf]  ;;  %v179_v55 = vld [vmem:[%s5057_s4 + $0xec] sm:$0xf] }
  0x36   :  { %v181_v56 = vld [vmem:[%s5057_s4 + $0xfc] sm:$0xf]  ;;  %178 = vst [vmem:[#allocation3 + $0xf4] sm:$0xf] %v177_v54  ;;  %180 = vst [vmem:[#allocation3 + $0xf8] sm:$0xf] %v179_v55 }
  0x37   :  { %182 = vst [vmem:[#allocation3 + $0xfc] sm:$0xf] %v181_v56 }
  0x38   :  { %341 = vsyncadd [#allocation5], 4096  ;;  %s347_s14 = sld [smem:[#allocation0]]   ;;  %s3526_s15 = smov [#allocation4]   ;;  %v5065_v57 = vmov 0   ;;  %vm556_vm0 = vcmask 523264   ;;  %v436_v46 = vlaneseq }
  0x39   :  { %s355_s16 = sshll.u32 %s3526_s15, 4  ;;  %601 = vmatprep.mubr.bf16.mxu0 %v5065_v57  ;;  %674 = vmatprep.mubr.bf16.mxu1 %v5065_v57  ;;  %s3528_s17 = smov 512   ;;  %s356_s16 = int_to_ptr.vmem [resolvable:$true] %s355_s16 }
  0x3a   :  { %359 = sst [smem:[#allocation12]] %s3528_s17  ;;  %s3529_s18 = smov 4   ;;  %v4025_v47 = vshrl.u32 %v436_v46, 7 }
  0x3b   :  { %361 = sst [smem:[#allocation12 + $0x1]] %s3528_s17  ;;  %s3530_s19 = smov 64  }
  0x3c   :  { %363 = sst [smem:[#allocation12 + $0x2]] %s3529_s18  ;;  %s3531_s20 = smov 128   ;;  %v5064_v48 = vsub.s32 2, %v4025_v47  ;;  %v5063_v49 = vsub.s32 3, %v4025_v47  ;;  %v5062_v50 = vsub.s32 0, %v4025_v47  ;;  %v5061_v52 = vsub.s32 1, %v4025_v47 }
  0x3d   :  { %365 = sst [smem:[#allocation12 + $0x3]] %s3530_s19  ;;  %s3532_s22 = smov 2  }
  0x3e   :  { %s2950_s4 = sshll.u32 %s347_s14, 26  ;;  %367 = sst [smem:[#allocation12 + $0x4]] %s3531_s20 }
  0x3f   :  { %s2951_s21 = sadd.s32 134217728, %s2950_s4  ;;  %369 = sst [smem:[#allocation12 + $0x5]] %s3532_s22 }
  0x40   :  { %371 = sst [smem:[#allocation12 + $0x6]] %s3524_s11  ;;  %s3533_s1 = smov [#allocation5 + $0x1]  }
  0x41   :  { %373 = sst [smem:[#allocation12 + $0x7]] %s3530_s19  ;;  %s3534_s23 = smov [#allocation11]  }
  0x42   :  { %375 = sst [smem:[#allocation12 + $0x8]] %s3529_s18 }
  0x43   :  { %377 = dma.general %s5058_s5, 4096, %s356_s16, %s3533_s1, %s3534_s23, [#allocation12], %s2951_s21, 0  }
  0x44   :  { %v3075_v58 = vld [vmem:[#allocation6 + $0x4] ss:$16 sps:$4 sm:$0xff]   ;;  %v3077_v59 = vld [vmem:[#allocation6 + $0xc] ss:$16 sps:$4 sm:$0xff]   ;;  %v3079_v60 = vld [vmem:[#allocation6] ss:$16 sps:$4 sm:$0xff]  }
  0x45   :  { %569 = vmatprep.subr.bf16.mxu0 %v3075_v58  ;;  %v3080_v61 = vld [vmem:[#allocation6 + $0x8] ss:$16 sps:$4 sm:$0xff]   ;;  %642 = vmatprep.subr.bf16.mxu1 %v3077_v59  ;;  %v3081_v62 = vld [vmem:[#allocation6 + $0x24] ss:$16 sps:$4 sm:$0xff]   ;;  %v3083_v63 = vld [vmem:[#allocation6 + $0x2c] ss:$16 sps:$4 sm:$0xff]  }
  0x46   :  { %570 = vmatpush1.bf16.msra.mxu0 %v3079_v60  ;;  %643 = vmatpush1.bf16.msra.mxu1 %v3080_v61  ;;  %v3085_v0 = vld [vmem:[#allocation6 + $0x20] ss:$16 sps:$4 sm:$0xff]   ;;  %v3086_v1 = vld [vmem:[#allocation6 + $0x28] ss:$16 sps:$4 sm:$0xff]   ;;  %v3087_v2 = vld [vmem:[#allocation6 + $0x44] ss:$16 sps:$4 sm:$0xff]  }
  0x47   :  { %571 = vmatprep.subr.bf16.mxu0 %v3081_v62  ;;  %644 = vmatprep.subr.bf16.mxu1 %v3083_v63  ;;  %v3089_v3 = vld [vmem:[#allocation6 + $0x4c] ss:$16 sps:$4 sm:$0xff]   ;;  %v3091_v4 = vld [vmem:[#allocation6 + $0x40] ss:$16 sps:$4 sm:$0xff]   ;;  %v3092_v5 = vld [vmem:[#allocation6 + $0x48] ss:$16 sps:$4 sm:$0xff]  }
  0x48   :  { %v3093_v6 = vld [vmem:[#allocation6 + $0x64] ss:$16 sps:$4 sm:$0xff]   ;;  %v3095_v7 = vld [vmem:[#allocation6 + $0x6c] ss:$16 sps:$4 sm:$0xff]   ;;  %v3097_v8 = vld [vmem:[#allocation6 + $0x60] ss:$16 sps:$4 sm:$0xff]  }
  0x49   :  { %v3098_v9 = vld [vmem:[#allocation6 + $0x68] ss:$16 sps:$4 sm:$0xff]   ;;  %v3770_v10 = vld [vmem:[%s5055_s2 + $0x4] ss:$16 sps:$4 sm:$0xff]   ;;  %v3775_v11 = vld [vmem:[%s5055_s2 + $0xc] ss:$16 sps:$4 sm:$0xff]  }
  0x4a   :  { %572 = vmatpush1.bf16.msra.mxu0 %v3085_v0  ;;  %645 = vmatpush1.bf16.msra.mxu1 %v3086_v1  ;;  %v3099_v12 = vld [vmem:[%s5053_s0] sm:$0xff]   ;;  %v3788_v14 = vld [vmem:[%s5055_s2 + $0x8] ss:$16 sps:$4 sm:$0xff]   ;;  %v3800_v16 = vld [vmem:[%s5055_s2 + $0x2c] ss:$16 sps:$4 sm:$0xff]   ;;  %5069 = vst [vmem:[#allocation17_spill] sm:$0xff] %v4025_v47 }
  0x4b   :  { %573 = vmatprep.subr.bf16.mxu0 %v3087_v2  ;;  %646 = vmatprep.subr.bf16.mxu1 %v3089_v3  ;;  %v3783_v13 = vld [vmem:[%s5055_s2] ss:$16 sps:$4 sm:$0xff]   ;;  %v3793_v15 = vld [vmem:[%s5055_s2 + $0x24] ss:$16 sps:$4 sm:$0xff]   ;;  %v3814_v18 = vld [vmem:[%s5055_s2 + $0x28] ss:$16 sps:$4 sm:$0xff]  }
  0x4c   :  { %v3807_v17 = vld [vmem:[%s5055_s2 + $0x20] ss:$16 sps:$4 sm:$0xff]   ;;  %v3819_v19 = vld [vmem:[%s5055_s2 + $0x44] ss:$16 sps:$4 sm:$0xff]   ;;  %v3826_v20 = vld [vmem:[%s5055_s2 + $0x4c] ss:$16 sps:$4 sm:$0xff]  }
  0x4d   :  { %v3112_v21 = vld [vmem:[%s5053_s0 + $0x8] sm:$0xff]   ;;  %v3836_v22 = vld [vmem:[%s5055_s2 + $0x40] ss:$16 sps:$4 sm:$0xff]   ;;  %v3848_v24 = vld [vmem:[%s5055_s2 + $0x64] ss:$16 sps:$4 sm:$0xff]  }
  0x4e   :  { %574 = vmatpush1.bf16.msra.mxu0 %v3091_v4  ;;  %647 = vmatpush1.bf16.msra.mxu1 %v3092_v5  ;;  %v3841_v23 = vld [vmem:[%s5055_s2 + $0x48] ss:$16 sps:$4 sm:$0xff]   ;;  %v3855_v25 = vld [vmem:[%s5055_s2 + $0x6c] ss:$16 sps:$4 sm:$0xff]   ;;  %v3862_v26 = vld [vmem:[%s5055_s2 + $0x60] ss:$16 sps:$4 sm:$0xff]  }
  0x4f   :  { %575 = vmatprep.subr.bf16.mxu0 %v3093_v6  ;;  %648 = vmatprep.subr.bf16.mxu1 %v3095_v7  ;;  %v3869_v27 = vld [vmem:[%s5055_s2 + $0x68] ss:$16 sps:$4 sm:$0xff]   ;;  %v3876_v28 = vld [vmem:[%s5055_s2 + $0x84] ss:$16 sps:$4 sm:$0xff]   ;;  %v3881_v29 = vld [vmem:[%s5055_s2 + $0x8c] ss:$16 sps:$4 sm:$0xff]  }
  0x50   :  { %v3125_v30 = vld [vmem:[%s5053_s0 + $0x10] sm:$0xff]   ;;  %v3898_v32 = vld [vmem:[%s5055_s2 + $0x88] ss:$16 sps:$4 sm:$0xff]   ;;  %v3910_v34 = vld [vmem:[%s5055_s2 + $0xac] ss:$16 sps:$4 sm:$0xff]  }
  0x51   :  { %v3891_v31 = vld [vmem:[%s5055_s2 + $0x80] ss:$16 sps:$4 sm:$0xff]   ;;  %v3903_v33 = vld [vmem:[%s5055_s2 + $0xa4] ss:$16 sps:$4 sm:$0xff]   ;;  %v3924_v36 = vld [vmem:[%s5055_s2 + $0xa8] ss:$16 sps:$4 sm:$0xff]  }
  0x52   :  { %576 = vmatpush1.bf16.msra.mxu0 %v3097_v8  ;;  %649 = vmatpush1.bf16.msra.mxu1 %v3098_v9  ;;  %v3919_v35 = vld [vmem:[%s5055_s2 + $0xa0] ss:$16 sps:$4 sm:$0xff]   ;;  %v3931_v37 = vld [vmem:[%s5055_s2 + $0xc4] ss:$16 sps:$4 sm:$0xff]   ;;  %v3936_v38 = vld [vmem:[%s5055_s2 + $0xcc] ss:$16 sps:$4 sm:$0xff]  }
  0x53   :  { %875 = vmatprep.subr.bf16.mxu0 %v3770_v10  ;;  %916 = vmatprep.subr.bf16.mxu1 %v3775_v11  ;;  %v3138_v39 = vld [vmem:[%s5053_s0 + $0x18] sm:$0xff]   ;;  %v3948_v40 = vld [vmem:[%s5055_s2 + $0xc0] ss:$16 sps:$4 sm:$0xff]   ;;  %v3960_v42 = vld [vmem:[%s5055_s2 + $0xe4] ss:$16 sps:$4 sm:$0xff]  }
  0x54   :  { %v3953_v41 = vld [vmem:[%s5055_s2 + $0xc8] ss:$16 sps:$4 sm:$0xff]   ;;  %v3965_v43 = vld [vmem:[%s5055_s2 + $0xec] ss:$16 sps:$4 sm:$0xff]   ;;  %v3974_v44 = vld [vmem:[%s5055_s2 + $0xe0] ss:$16 sps:$4 sm:$0xff]  }
  0x55   :  { %2972 = vmatmul.mubr.msk.bf16.vlgmr.msra.gmra.mrb[0].mxu0 %vm556_vm0, %v3099_v12  ;;  %2976 = vmatmul.mubr.msk.bf16.vlgmr.msra.gmra.mrb[0].mxu1 %vm556_vm0, %v3099_v12  ;;  %v3979_v45 = vld [vmem:[%s5055_s2 + $0xe8] ss:$16 sps:$4 sm:$0xff]   ;;  %v434_v51 = vld [vmem:[%s5056_s3] sm:$0xf] }
  0x56   :  { %876 = vmatpush1.bf16.msra.mxu0 %v3783_v13  ;;  %917 = vmatpush1.bf16.msra.mxu1 %v3788_v14  ;;  %v4036_v53 = vrot.slane %v434_v51, %v5064_v48  ;;  %v4044_v56 = vrot.slane %v434_v51, %v5063_v49  ;;  %v439_v58 = vrot.slane %v434_v51, %v5062_v50 }
  0x57   :  { %877 = vmatprep.subr.bf16.mxu0 %v3793_v15  ;;  %918 = vmatprep.subr.bf16.mxu1 %v3800_v16  ;;  %v443_v61 = vrot.slane %v434_v51, %v5061_v52 }
  0x58   :  { %611 = vmatprep.mubr.bf16.mxu0 %v5065_v57  ;;  %684 = vmatprep.mubr.bf16.mxu1 %v5065_v57 }
  0x5a   :  { %878 = vmatpush1.bf16.msra.mxu0 %v3807_v17  ;;  %919 = vmatpush1.bf16.msra.mxu1 %v3814_v18 }
  0x5b   :  { %879 = vmatprep.subr.bf16.mxu0 %v3819_v19  ;;  %920 = vmatprep.subr.bf16.mxu1 %v3826_v20 }
  0x5d   :  { %2973 = vmatmul.mubr.msk.bf16.gmra.mrb[4].mxu0 %vm556_vm0, %v3112_v21  ;;  %2977 = vmatmul.mubr.msk.bf16.gmra.mrb[4].mxu1 %vm556_vm0, %v3112_v21 }
  0x5e   :  { %880 = vmatpush1.bf16.msra.mxu0 %v3836_v22  ;;  %921 = vmatpush1.bf16.msra.mxu1 %v3841_v23 }
  0x5f   :  { %881 = vmatprep.subr.bf16.mxu0 %v3848_v24  ;;  %922 = vmatprep.subr.bf16.mxu1 %v3855_v25 }
  0x60   :  { %621 = vmatprep.mubr.bf16.mxu0 %v5065_v57  ;;  %694 = vmatprep.mubr.bf16.mxu1 %v5065_v57 }
  0x62   :  { %882 = vmatpush1.bf16.msra.mxu0 %v3862_v26  ;;  %923 = vmatpush1.bf16.msra.mxu1 %v3869_v27 }
  0x63   :  { %883 = vmatprep.subr.bf16.mxu0 %v3876_v28  ;;  %924 = vmatprep.subr.bf16.mxu1 %v3881_v29 }
  0x65   :  { %2974 = vmatmul.mubr.msk.bf16.gmra.mrb[8].mxu0 %vm556_vm0, %v3125_v30  ;;  %2978 = vmatmul.mubr.msk.bf16.gmra.mrb[8].mxu1 %vm556_vm0, %v3125_v30 }
  0x66   :  { %884 = vmatpush1.bf16.msra.mxu0 %v3891_v31  ;;  %925 = vmatpush1.bf16.msra.mxu1 %v3898_v32 }
  0x67   :  { %885 = vmatprep.subr.bf16.mxu0 %v3903_v33  ;;  %926 = vmatprep.subr.bf16.mxu1 %v3910_v34 }
  0x68   :  { %631 = vmatprep.mubr.bf16.mxu0 %v5065_v57  ;;  %704 = vmatprep.mubr.bf16.mxu1 %v5065_v57 }
  0x6a   :  { %886 = vmatpush1.bf16.msra.mxu0 %v3919_v35  ;;  %927 = vmatpush1.bf16.msra.mxu1 %v3924_v36 }
  0x6b   :  { %887 = vmatprep.subr.bf16.mxu0 %v3931_v37  ;;  %928 = vmatprep.subr.bf16.mxu1 %v3936_v38 }
  0x6d   :  { %2975 = vmatmul.mubr.msk.bf16.gmra.mrb[12].mxu0 %vm556_vm0, %v3138_v39  ;;  %2979 = vmatmul.mubr.msk.bf16.gmra.mrb[12].mxu1 %vm556_vm0, %v3138_v39 }
  0x6e   :  { %888 = vmatpush1.bf16.msra.mxu0 %v3948_v40  ;;  %929 = vmatpush1.bf16.msra.mxu1 %v3953_v41 }
  0x6f   :  { %889 = vmatprep.subr.bf16.mxu0 %v3960_v42  ;;  %930 = vmatprep.subr.bf16.mxu1 %v3965_v43 }
  0x70   :  { %907 = vmatprep.mubr.bf16.mxu0 %v5065_v57  ;;  %948 = vmatprep.mubr.bf16.mxu1 %v5065_v57 }
  0x72   :  { %890 = vmatpush1.bf16.msra.mxu0 %v3974_v44  ;;  %931 = vmatpush1.bf16.msra.mxu1 %v3979_v45 }
  0x73   :  { %987 = vmatprep.subr.bf16.mxu0 %v3770_v10  ;;  %1028 = vmatprep.subr.bf16.mxu1 %v3775_v11 }
  0x75   :  { %908 = vmatmul.mubr.bf16.vlgmr.msra.gmra.mrb[16].mxu0 %v5065_v57  ;;  %949 = vmatmul.mubr.bf16.vlgmr.msra.gmra.mrb[16].mxu1 %v5065_v57 }
  0x76   :  { %988 = vmatpush1.bf16.msra.mxu0 %v3783_v13  ;;  %1029 = vmatpush1.bf16.msra.mxu1 %v3788_v14 }
  0x77   :  { %989 = vmatprep.subr.bf16.mxu0 %v3793_v15  ;;  %1030 = vmatprep.subr.bf16.mxu1 %v3800_v16 }
  0x78   :  { %1019 = vmatprep.mubr.bf16.mxu0 %v5065_v57  ;;  %1060 = vmatprep.mubr.bf16.mxu1 %v5065_v57 }
  0x7a   :  { %990 = vmatpush1.bf16.msra.mxu0 %v3807_v17  ;;  %1031 = vmatpush1.bf16.msra.mxu1 %v3814_v18 }
  0x7b   :  { %991 = vmatprep.subr.bf16.mxu0 %v3819_v19  ;;  %1032 = vmatprep.subr.bf16.mxu1 %v3826_v20 }
  0x7e   :  { %992 = vmatpush1.bf16.msra.mxu0 %v3836_v22  ;;  %1033 = vmatpush1.bf16.msra.mxu1 %v3841_v23 }
  0x7f   :  { %993 = vmatprep.subr.bf16.mxu0 %v3848_v24  ;;  %1034 = vmatprep.subr.bf16.mxu1 %v3855_v25 }
  0x82   :  { %994 = vmatpush1.bf16.msra.mxu0 %v3862_v26  ;;  %1035 = vmatpush1.bf16.msra.mxu1 %v3869_v27 }
  0x83   :  { %995 = vmatprep.subr.bf16.mxu0 %v3876_v28  ;;  %1036 = vmatprep.subr.bf16.mxu1 %v3881_v29 }
  0x86   :  { %996 = vmatpush1.bf16.msra.mxu0 %v3891_v31  ;;  %1037 = vmatpush1.bf16.msra.mxu1 %v3898_v32 }
  0x87   :  { %997 = vmatprep.subr.bf16.mxu0 %v3903_v33  ;;  %1038 = vmatprep.subr.bf16.mxu1 %v3910_v34 }
  0x8a   :  { %998 = vmatpush1.bf16.msra.mxu0 %v3919_v35  ;;  %1039 = vmatpush1.bf16.msra.mxu1 %v3924_v36 }
  0x8b   :  { %999 = vmatprep.subr.bf16.mxu0 %v3931_v37  ;;  %1040 = vmatprep.subr.bf16.mxu1 %v3936_v38 }
  0x8e   :  { %1000 = vmatpush1.bf16.msra.mxu0 %v3948_v40  ;;  %1041 = vmatpush1.bf16.msra.mxu1 %v3953_v41 }
  0x8f   :  { %1001 = vmatprep.subr.bf16.mxu0 %v3960_v42  ;;  %1042 = vmatprep.subr.bf16.mxu1 %v3965_v43 }
  0x92   :  { %1002 = vmatpush1.bf16.msra.mxu0 %v3974_v44  ;;  %1043 = vmatpush1.bf16.msra.mxu1 %v3979_v45 }
  0x93   :  { %1099 = vmatprep.subr.bf16.mxu0 %v3770_v10  ;;  %1140 = vmatprep.subr.bf16.mxu1 %v3775_v11 }
 0x128   :  { %v4038_v54 = vpop.f32.mrb[0].mxu0  ;;  %v4040_v55 = vpop.f32.mrb[0].mxu1 }
 0x129   :  { %v605_v59 = vpop.f32.mrb[1].mxu0  ;;  %v678_v60 = vpop.f32.mrb[1].mxu1 }
 0x12a   :  { %v607_v62 = vpop.f32.mrb[2].mxu0  ;;  %v680_v63 = vpop.f32.mrb[2].mxu1 }
 0x12b   :  { %v4050_v0 = vadd.f32 %v607_v62, %v439_v58  ;;  %v609_v1 = vpop.f32.mrb[3].mxu0  ;;  %v4053_v2 = vadd.f32 %v680_v63, %v4036_v53  ;;  %v682_v3 = vpop.f32.mrb[3].mxu1 }
 0x12c   :  { %v4055_v4 = vadd.f32 %v609_v1, %v443_v61  ;;  %v4058_v5 = vadd.f32 %v682_v3, %v4044_v56 }
 0x130   :  { %v613_v6 = vpop.f32.mrb[4].mxu0  ;;  %v686_v7 = vpop.f32.mrb[4].mxu1 }
 0x131   :  { %v4060_v8 = vadd.f32 %v613_v6, %v439_v58  ;;  %v615_v9 = vpop.f32.mrb[5].mxu0  ;;  %v4063_v12 = vadd.f32 %v686_v7, %v4036_v53  ;;  %v688_v21 = vpop.f32.mrb[5].mxu1 }
 0x132   :  { %v4065_v30 = vadd.f32 %v615_v9, %v443_v61  ;;  %v617_v39 = vpop.f32.mrb[6].mxu0  ;;  %v4068_v46 = vadd.f32 %v688_v21, %v4044_v56  ;;  %v690_v51 = vpop.f32.mrb[6].mxu1 }
 0x133   :  { %v4070_v62 = vadd.f32 %v617_v39, %v439_v58  ;;  %v619_v63 = vpop.f32.mrb[7].mxu0  ;;  %v4073_v1 = vadd.f32 %v690_v51, %v4036_v53  ;;  %v692_v3 = vpop.f32.mrb[7].mxu1 }
 0x134   :  { %5070 = vst [vmem:[#allocation18_spill] sm:$0xff] %v4068_v46  ;;  %v4075_v6 = vadd.f32 %v619_v63, %v443_v61  ;;  %v4078_v7 = vadd.f32 %v692_v3, %v4044_v56 }
 0x135   :  { %5071 = vst [vmem:[#allocation19_spill] sm:$0xff] %v4070_v62  ;;  %5072 = vst [vmem:[#allocation20_spill] sm:$0xff] %v4073_v1 }
 0x136   :  { %5073 = vst [vmem:[#allocation21_spill] sm:$0xff] %v4075_v6  ;;  %5074 = vst [vmem:[#allocation22_spill] sm:$0xff] %v4078_v7 }
 0x138   :  { %v623_v52 = vpop.f32.mrb[8].mxu0  ;;  %v696_v9 = vpop.f32.mrb[8].mxu1 }
 0x139   :  { %v4080_v50 = vadd.f32 %v623_v52, %v439_v58  ;;  %v625_v49 = vpop.f32.mrb[9].mxu0  ;;  %v4083_v21 = vadd.f32 %v696_v9, %v4036_v53  ;;  %v698_v39 = vpop.f32.mrb[9].mxu1 }
 0x13a   :  { %v4085_v48 = vadd.f32 %v625_v49, %v443_v61  ;;  %v627_v57 = vpop.f32.mrb[10].mxu0  ;;  %v4088_v51 = vadd.f32 %v698_v39, %v4044_v56  ;;  %v700_v63 = vpop.f32.mrb[10].mxu1 }
 0x13b   :  { %5075 = vst [vmem:[#allocation23_spill] sm:$0xff] %v4080_v50  ;;  %5076 = vst [vmem:[#allocation24_spill] sm:$0xff] %v4083_v21  ;;  %v4090_v47 = vadd.f32 %v627_v57, %v439_v58  ;;  %v629_v3 = vpop.f32.mrb[11].mxu0  ;;  %v4093_v7 = vadd.f32 %v700_v63, %v4036_v53  ;;  %v702_v52 = vpop.f32.mrb[11].mxu1 }
 0x13c   :  { %5077 = vst [vmem:[#allocation25_spill] sm:$0xff] %v4085_v48  ;;  %5078 = vst [vmem:[#allocation26_spill] sm:$0xff] %v4088_v51  ;;  %v4095_v50 = vadd.f32 %v629_v3, %v443_v61  ;;  %v4098_v9 = vadd.f32 %v702_v52, %v4044_v56 }
 0x13d   :  { %5079 = vst [vmem:[#allocation27_spill] sm:$0xff] %v4090_v47  ;;  %5080 = vst [vmem:[#allocation28_spill] sm:$0xff] %v4093_v7 }
 0x13e   :  { %5081 = vst [vmem:[#allocation29_spill] sm:$0xff] %v4095_v50  ;;  %5082 = vst [vmem:[#allocation30_spill] sm:$0xff] %v4098_v9 }
 0x140   :  { %v633_v21 = vpop.f32.mrb[12].mxu0  ;;  %v706_v49 = vpop.f32.mrb[12].mxu1 }
 0x141   :  { %v4100_v48 = vadd.f32 %v633_v21, %v439_v58  ;;  %v635_v6 = vpop.f32.mrb[13].mxu0  ;;  %v4103_v39 = vadd.f32 %v706_v49, %v4036_v53  ;;  %v708_v57 = vpop.f32.mrb[13].mxu1 }
 0x142   :  { %v4105_v47 = vadd.f32 %v635_v6, %v443_v61  ;;  %v637_v51 = vpop.f32.mrb[14].mxu0  ;;  %v4108_v63 = vadd.f32 %v708_v57, %v4044_v56  ;;  %v710_v3 = vpop.f32.mrb[14].mxu1  ;;  %v604_v6 = vadd.f32 %v4038_v54, %v439_v58  ;;  %v606_v57 = vadd.f32 %v605_v59, %v443_v61 }
 0x143   :  { %5083 = vst [vmem:[#allocation31_spill] sm:$0xff] %v4100_v48  ;;  %5084 = vst [vmem:[#allocation32_spill] sm:$0xff] %v4103_v39  ;;  %v4110_v50 = vadd.f32 %v637_v51, %v439_v58  ;;  %v639_v52 = vpop.f32.mrb[15].mxu0  ;;  %v4113_v9 = vadd.f32 %v710_v3, %v4036_v53  ;;  %v712_v21 = vpop.f32.mrb[15].mxu1 }
 0x144   :  { %5085 = vst [vmem:[#allocation33_spill] sm:$0xff] %v4105_v47  ;;  %5086 = vst [vmem:[#allocation34_spill] sm:$0xff] %v4108_v63  ;;  %v4115_v48 = vadd.f32 %v639_v52, %v443_v61  ;;  %v4118_v49 = vadd.f32 %v712_v21, %v4044_v56  ;;  %v677_v47 = vadd.f32 %v4040_v55, %v4036_v53 }
 0x145   :  { %5087 = vst [vmem:[#allocation35_spill] sm:$0xff] %v4110_v50  ;;  %5088 = vst [vmem:[#allocation36_spill] sm:$0xff] %v4113_v9  ;;  %v679_v63 = vadd.f32 %v678_v60, %v4044_v56 }
 0x146   :  { %5089 = vst [vmem:[#allocation37_spill] sm:$0xff] %v4115_v48  ;;  %5090 = vst [vmem:[#allocation38_spill] sm:$0xff] %v4118_v49 }
 0x148   :  { %v909_v51 = vpop.f32.mrb[16].mxu0  ;;  %v950_v50 = vpop.f32.mrb[16].mxu1 }
 0x149   :  { %v957_v39 = vadd.f32 %v909_v51, %v604_v6  ;;  %v959_v7 = vadd.f32 %v950_v50, %v677_v47  ;;  %v911_v3 = vpop.f32.mrb[17].mxu0  ;;  %v952_v9 = vpop.f32.mrb[17].mxu1 }
 0x14a   :  { %v958_v1 = vadd.f32 %v911_v3, %v606_v57  ;;  %v960_v52 = vadd.f32 %v952_v9, %v679_v63  ;;  %v913_v48 = vpop.f32.mrb[18].mxu0  ;;  %v954_v62 = vpop.f32.mrb[18].mxu1 }
 0x14b   :  { %v3012_v21 = vmul.f32 -1.442695, %v957_v39  ;;  %v914_v49 = vpop.f32.mrb[19].mxu0  ;;  %v955_v46 = vpop.f32.mrb[19].mxu1 }
 0x14c   :  { %v3013_v54 = vmul.f32 -1.442695, %v958_v1  ;;  %v3014_v53 = vmul.f32 -1.442695, %v960_v52  ;;  %v5091_v49 = vmov 0  }
 0x14d   :  { %3151 = vpow2.f32 %v3012_v21 }
 0x14e   :  { %3153 = vpow2.f32 %v3013_v54 }
 0x14f   :  { %3155 = vpow2.f32 %v3014_v53 }
 0x150   :  { %3157 = vtanh.f32 %v959_v7 }
 0x157   :  { %v3152_v55 = vpop.eup %3151 }
 0x158   :  { %v3154_v58 = vpop.eup %3153  ;;  %v964_v56 = vadd.f32 1.0, %v3152_v55 }
 0x159   :  { %v970_v59 = vadd.f32 1.0, %v3154_v58  ;;  %v3156_v47 = vpop.eup %3155 }
 0x15a   :  { %3159 = vrcp.f32 %v964_v56  ;;  %v3158_v50 = vpop.eup %3157  ;;  %v977_v62 = vadd.f32 1.0, %v3156_v47 }
 0x15b   :  { %3161 = vrcp.f32 %v970_v59 }
 0x15c   :  { %3163 = vrcp.f32 %v977_v62 }
 0x164   :  { %v3160_v60 = vpop.eup %3159 }
 0x165   :  { %v3162_v48 = vpop.eup %3161  ;;  %v981_v61 = vmul.f32 %v3160_v60, %v3158_v50 }
 0x166   :  { %v980_v9 = vmul.f32 0.0, %v3162_v48  ;;  %v3164_v1 = vpop.eup %3163 }
 0x168   :  { %v4124_v46 = vadd.f32 %v981_v61, %v980_v9 }
 0x16a   :  { %3165 = vtanh.f32 %v4124_v46 }
 0x174   :  { %v3166_v39 = vpop.eup %3165 }
 0x175   :  { %v4127_v63 = vmul.f32 %v3166_v39, %v3164_v1 }
 0x177   :  { %v986_v7 = vpack.c.bf16 %v4127_v63, %v4127_v63 }
 0x179   :  { %1020 = vmatmul.mubr.bf16.vlgmr.msra.gmra.mrb[20].mxu0 %v986_v7  ;;  %1061 = vmatmul.mubr.bf16.vlgmr.msra.gmra.mrb[20].mxu1 %v986_v7 }
 0x17a   :  { %1100 = vmatpush1.bf16.msra.mxu0 %v3783_v13  ;;  %1141 = vmatpush1.bf16.msra.mxu1 %v3788_v14 }
 0x17b   :  { %1101 = vmatprep.subr.bf16.mxu0 %v3793_v15  ;;  %1142 = vmatprep.subr.bf16.mxu1 %v3800_v16 }
 0x17c   :  { %1131 = vmatprep.mubr.bf16.mxu0 %v5091_v49  ;;  %1172 = vmatprep.mubr.bf16.mxu1 %v5091_v49 }
 0x17e   :  { %1102 = vmatpush1.bf16.msra.mxu0 %v3807_v17  ;;  %1143 = vmatpush1.bf16.msra.mxu1 %v3814_v18 }
 0x17f   :  { %1103 = vmatprep.subr.bf16.mxu0 %v3819_v19  ;;  %1144 = vmatprep.subr.bf16.mxu1 %v3826_v20 }
 0x182   :  { %1104 = vmatpush1.bf16.msra.mxu0 %v3836_v22  ;;  %1145 = vmatpush1.bf16.msra.mxu1 %v3841_v23 }
 0x183   :  { %1105 = vmatprep.subr.bf16.mxu0 %v3848_v24  ;;  %1146 = vmatprep.subr.bf16.mxu1 %v3855_v25 }
 0x186   :  { %1106 = vmatpush1.bf16.msra.mxu0 %v3862_v26  ;;  %1147 = vmatpush1.bf16.msra.mxu1 %v3869_v27 }
 0x187   :  { %1107 = vmatprep.subr.bf16.mxu0 %v3876_v28  ;;  %1148 = vmatprep.subr.bf16.mxu1 %v3881_v29 }
 0x18a   :  { %1108 = vmatpush1.bf16.msra.mxu0 %v3891_v31  ;;  %1149 = vmatpush1.bf16.msra.mxu1 %v3898_v32 }
 0x18b   :  { %1109 = vmatprep.subr.bf16.mxu0 %v3903_v33  ;;  %1150 = vmatprep.subr.bf16.mxu1 %v3910_v34 }
 0x18e   :  { %1110 = vmatpush1.bf16.msra.mxu0 %v3919_v35  ;;  %1151 = vmatpush1.bf16.msra.mxu1 %v3924_v36 }
 0x18f   :  { %1111 = vmatprep.subr.bf16.mxu0 %v3931_v37  ;;  %1152 = vmatprep.subr.bf16.mxu1 %v3936_v38 }
 0x192   :  { %1112 = vmatpush1.bf16.msra.mxu0 %v3948_v40  ;;  %1153 = vmatpush1.bf16.msra.mxu1 %v3953_v41 }
 0x193   :  { %1113 = vmatprep.subr.bf16.mxu0 %v3960_v42  ;;  %1154 = vmatprep.subr.bf16.mxu1 %v3965_v43 }
 0x196   :  { %1114 = vmatpush1.bf16.msra.mxu0 %v3974_v44  ;;  %1155 = vmatpush1.bf16.msra.mxu1 %v3979_v45 }
 0x197   :  { %1211 = vmatprep.subr.bf16.mxu0 %v3770_v10  ;;  %1252 = vmatprep.subr.bf16.mxu1 %v3775_v11 }
 0x24c   :  { %v1021_v6 = vpop.f32.mrb[20].mxu0  ;;  %v1062_v57 = vpop.f32.mrb[20].mxu1 }
 0x24d   :  { %v1069_v51 = vadd.f32 %v1021_v6, %v4050_v0  ;;  %v1071_v3 = vadd.f32 %v1062_v57, %v4053_v2  ;;  %v1023_v52 = vpop.f32.mrb[21].mxu0  ;;  %v1064_v21 = vpop.f32.mrb[21].mxu1 }
 0x24e   :  { %v1070_v54 = vadd.f32 %v1023_v52, %v4055_v4  ;;  %v1072_v53 = vadd.f32 %v1064_v21, %v4058_v5  ;;  %v1025_v55 = vpop.f32.mrb[22].mxu0  ;;  %v1066_v58 = vpop.f32.mrb[22].mxu1 }
 0x24f   :  { %v3015_v56 = vmul.f32 -1.442695, %v1069_v51  ;;  %v1026_v59 = vpop.f32.mrb[23].mxu0  ;;  %v1067_v47 = vpop.f32.mrb[23].mxu1 }
 0x250   :  { %v3016_v50 = vmul.f32 -1.442695, %v1070_v54  ;;  %v3017_v60 = vmul.f32 -1.442695, %v1072_v53  ;;  %v5092_v59 = vld [vmem:[#allocation18_spill] sm:$0xff] }
 0x251   :  { %3167 = vpow2.f32 %v3015_v56 }
 0x252   :  { %3169 = vpow2.f32 %v3016_v50 }
 0x253   :  { %3171 = vpow2.f32 %v3017_v60 }
 0x254   :  { %3173 = vtanh.f32 %v1071_v3 }
 0x25b   :  { %v3168_v48 = vpop.eup %3167 }
 0x25c   :  { %v3170_v61 = vpop.eup %3169  ;;  %v1076_v0 = vadd.f32 1.0, %v3168_v48 }
 0x25d   :  { %v1082_v2 = vadd.f32 1.0, %v3170_v61  ;;  %v3172_v4 = vpop.eup %3171 }
 0x25e   :  { %3175 = vrcp.f32 %v1076_v0  ;;  %v3174_v62 = vpop.eup %3173  ;;  %v1089_v39 = vadd.f32 1.0, %v3172_v4 }
 0x25f   :  { %3177 = vrcp.f32 %v1082_v2 }
 0x260   :  { %3179 = vrcp.f32 %v1089_v39 }
 0x268   :  { %v3176_v5 = vpop.eup %3175 }
 0x269   :  { %v3178_v9 = vpop.eup %3177  ;;  %v1093_v1 = vmul.f32 %v3176_v5, %v3174_v62 }
 0x26a   :  { %v1092_v7 = vmul.f32 %v3178_v9, %v4124_v46  ;;  %v3180_v57 = vpop.eup %3179 }
 0x26c   :  { %v4170_v6 = vadd.f32 %v1093_v1, %v1092_v7 }
 0x26e   :  { %3181 = vtanh.f32 %v4170_v6 }
 0x278   :  { %v3182_v51 = vpop.eup %3181 }
 0x279   :  { %v4173_v52 = vmul.f32 %v3182_v51, %v3180_v57 }
 0x27b   :  { %v1098_v3 = vpack.c.bf16 %v4173_v52, %v4173_v52 }
 0x27d   :  { %1132 = vmatmul.mubr.bf16.vlgmr.msra.gmra.mrb[24].mxu0 %v1098_v3  ;;  %1173 = vmatmul.mubr.bf16.vlgmr.msra.gmra.mrb[24].mxu1 %v1098_v3 }
 0x27e   :  { %1212 = vmatpush1.bf16.msra.mxu0 %v3783_v13  ;;  %1253 = vmatpush1.bf16.msra.mxu1 %v3788_v14 }
 0x27f   :  { %1213 = vmatprep.subr.bf16.mxu0 %v3793_v15  ;;  %1254 = vmatprep.subr.bf16.mxu1 %v3800_v16 }
 0x280   :  { %1243 = vmatprep.mubr.bf16.mxu0 %v5091_v49  ;;  %1284 = vmatprep.mubr.bf16.mxu1 %v5091_v49 }
 0x282   :  { %1214 = vmatpush1.bf16.msra.mxu0 %v3807_v17  ;;  %1255 = vmatpush1.bf16.msra.mxu1 %v3814_v18 }
 0x283   :  { %1215 = vmatprep.subr.bf16.mxu0 %v3819_v19  ;;  %1256 = vmatprep.subr.bf16.mxu1 %v3826_v20 }
 0x286   :  { %1216 = vmatpush1.bf16.msra.mxu0 %v3836_v22  ;;  %1257 = vmatpush1.bf16.msra.mxu1 %v3841_v23 }
 0x287   :  { %1217 = vmatprep.subr.bf16.mxu0 %v3848_v24  ;;  %1258 = vmatprep.subr.bf16.mxu1 %v3855_v25 }
 0x28a   :  { %1218 = vmatpush1.bf16.msra.mxu0 %v3862_v26  ;;  %1259 = vmatpush1.bf16.msra.mxu1 %v3869_v27 }
 0x28b   :  { %1219 = vmatprep.subr.bf16.mxu0 %v3876_v28  ;;  %1260 = vmatprep.subr.bf16.mxu1 %v3881_v29 }
 0x28e   :  { %1220 = vmatpush1.bf16.msra.mxu0 %v3891_v31  ;;  %1261 = vmatpush1.bf16.msra.mxu1 %v3898_v32 }
 0x28f   :  { %1221 = vmatprep.subr.bf16.mxu0 %v3903_v33  ;;  %1262 = vmatprep.subr.bf16.mxu1 %v3910_v34 }
 0x292   :  { %1222 = vmatpush1.bf16.msra.mxu0 %v3919_v35  ;;  %1263 = vmatpush1.bf16.msra.mxu1 %v3924_v36 }
 0x293   :  { %1223 = vmatprep.subr.bf16.mxu0 %v3931_v37  ;;  %1264 = vmatprep.subr.bf16.mxu1 %v3936_v38 }
 0x296   :  { %1224 = vmatpush1.bf16.msra.mxu0 %v3948_v40  ;;  %1265 = vmatpush1.bf16.msra.mxu1 %v3953_v41 }
 0x297   :  { %1225 = vmatprep.subr.bf16.mxu0 %v3960_v42  ;;  %1266 = vmatprep.subr.bf16.mxu1 %v3965_v43 }
 0x29a   :  { %1226 = vmatpush1.bf16.msra.mxu0 %v3974_v44  ;;  %1267 = vmatpush1.bf16.msra.mxu1 %v3979_v45 }
 0x29b   :  { %1323 = vmatprep.subr.bf16.mxu0 %v3770_v10  ;;  %1364 = vmatprep.subr.bf16.mxu1 %v3775_v11 }
 0x350   :  { %v1133_v46 = vpop.f32.mrb[24].mxu0  ;;  %v1174_v21 = vpop.f32.mrb[24].mxu1 }
 0x351   :  { %v1181_v54 = vadd.f32 %v1133_v46, %v4060_v8  ;;  %v1183_v53 = vadd.f32 %v1174_v21, %v4063_v12  ;;  %v1135_v55 = vpop.f32.mrb[25].mxu0  ;;  %v1176_v58 = vpop.f32.mrb[25].mxu1 }
 0x352   :  { %v1182_v56 = vadd.f32 %v1135_v55, %v4065_v30  ;;  %v1184_v47 = vadd.f32 %v1176_v58, %v5092_v59  ;;  %v1137_v50 = vpop.f32.mrb[26].mxu0  ;;  %v1178_v60 = vpop.f32.mrb[26].mxu1  ;;  %v5093_v58 = vld [vmem:[#allocation19_spill] sm:$0xff]  ;;  %v5094_v59 = vld [vmem:[#allocation20_spill] sm:$0xff] }
 0x353   :  { %v3018_v48 = vmul.f32 -1.442695, %v1181_v54  ;;  %v1138_v61 = vpop.f32.mrb[27].mxu0  ;;  %v1179_v0 = vpop.f32.mrb[27].mxu1 }
 0x354   :  { %v3019_v2 = vmul.f32 -1.442695, %v1182_v56  ;;  %v3020_v4 = vmul.f32 -1.442695, %v1184_v47  ;;  %v5096_v0 = vld [vmem:[#allocation22_spill] sm:$0xff] }
 0x355   :  { %3183 = vpow2.f32 %v3018_v48  ;;  %v5095_v48 = vld [vmem:[#allocation21_spill] sm:$0xff] }
 0x356   :  { %3185 = vpow2.f32 %v3019_v2 }
 0x357   :  { %3187 = vpow2.f32 %v3020_v4 }
 0x358   :  { %3189 = vtanh.f32 %v1183_v53 }
 0x35f   :  { %v3184_v62 = vpop.eup %3183 }
 0x360   :  { %v3186_v5 = vpop.eup %3185  ;;  %v1188_v8 = vadd.f32 1.0, %v3184_v62 }
 0x361   :  { %v1194_v12 = vadd.f32 1.0, %v3186_v5  ;;  %v3188_v30 = vpop.eup %3187 }
 0x362   :  { %3191 = vrcp.f32 %v1188_v8  ;;  %v3190_v9 = vpop.eup %3189  ;;  %v1201_v57 = vadd.f32 1.0, %v3188_v30 }
 0x363   :  { %3193 = vrcp.f32 %v1194_v12 }
 0x364   :  { %3195 = vrcp.f32 %v1201_v57 }
 0x36c   :  { %v3192_v1 = vpop.eup %3191 }
 0x36d   :  { %v3194_v39 = vpop.eup %3193  ;;  %v1205_v7 = vmul.f32 %v3192_v1, %v3190_v9 }
 0x36e   :  { %v1204_v51 = vmul.f32 %v3194_v39, %v4170_v6  ;;  %v3196_v46 = vpop.eup %3195 }
 0x370   :  { %v4216_v3 = vadd.f32 %v1205_v7, %v1204_v51 }
 0x372   :  { %3197 = vtanh.f32 %v4216_v3 }
 0x37c   :  { %v3198_v21 = vpop.eup %3197 }
 0x37d   :  { %v4219_v54 = vmul.f32 %v3198_v21, %v3196_v46 }
 0x37f   :  { %v1210_v53 = vpack.c.bf16 %v4219_v54, %v4219_v54 }
 0x381   :  { %1244 = vmatmul.mubr.bf16.vlgmr.msra.gmra.mrb[28].mxu0 %v1210_v53  ;;  %1285 = vmatmul.mubr.bf16.vlgmr.msra.gmra.mrb[28].mxu1 %v1210_v53 }
 0x382   :  { %1324 = vmatpush1.bf16.msra.mxu0 %v3783_v13  ;;  %1365 = vmatpush1.bf16.msra.mxu1 %v3788_v14 }
 0x383   :  { %1325 = vmatprep.subr.bf16.mxu0 %v3793_v15  ;;  %1366 = vmatprep.subr.bf16.mxu1 %v3800_v16 }
 0x384   :  { %1355 = vmatprep.mubr.bf16.mxu0 %v5091_v49  ;;  %1396 = vmatprep.mubr.bf16.mxu1 %v5091_v49 }
 0x386   :  { %1326 = vmatpush1.bf16.msra.mxu0 %v3807_v17  ;;  %1367 = vmatpush1.bf16.msra.mxu1 %v3814_v18 }
 0x387   :  { %1327 = vmatprep.subr.bf16.mxu0 %v3819_v19  ;;  %1368 = vmatprep.subr.bf16.mxu1 %v3826_v20 }
 0x38a   :  { %1328 = vmatpush1.bf16.msra.mxu0 %v3836_v22  ;;  %1369 = vmatpush1.bf16.msra.mxu1 %v3841_v23 }
 0x38b   :  { %1329 = vmatprep.subr.bf16.mxu0 %v3848_v24  ;;  %1370 = vmatprep.subr.bf16.mxu1 %v3855_v25 }
 0x38e   :  { %1330 = vmatpush1.bf16.msra.mxu0 %v3862_v26  ;;  %1371 = vmatpush1.bf16.msra.mxu1 %v3869_v27 }
 0x38f   :  { %1331 = vmatprep.subr.bf16.mxu0 %v3876_v28  ;;  %1372 = vmatprep.subr.bf16.mxu1 %v3881_v29 }
 0x392   :  { %1332 = vmatpush1.bf16.msra.mxu0 %v3891_v31  ;;  %1373 = vmatpush1.bf16.msra.mxu1 %v3898_v32 }
 0x393   :  { %1333 = vmatprep.subr.bf16.mxu0 %v3903_v33  ;;  %1374 = vmatprep.subr.bf16.mxu1 %v3910_v34 }
 0x396   :  { %1334 = vmatpush1.bf16.msra.mxu0 %v3919_v35  ;;  %1375 = vmatpush1.bf16.msra.mxu1 %v3924_v36 }
 0x397   :  { %1335 = vmatprep.subr.bf16.mxu0 %v3931_v37  ;;  %1376 = vmatprep.subr.bf16.mxu1 %v3936_v38 }
 0x39a   :  { %1336 = vmatpush1.bf16.msra.mxu0 %v3948_v40  ;;  %1377 = vmatpush1.bf16.msra.mxu1 %v3953_v41 }
 0x39b   :  { %1337 = vmatprep.subr.bf16.mxu0 %v3960_v42  ;;  %1378 = vmatprep.subr.bf16.mxu1 %v3965_v43 }
 0x39e   :  { %1338 = vmatpush1.bf16.msra.mxu0 %v3974_v44  ;;  %1379 = vmatpush1.bf16.msra.mxu1 %v3979_v45 }
 0x39f   :  { %1435 = vmatprep.subr.bf16.mxu0 %v3770_v10  ;;  %1476 = vmatprep.subr.bf16.mxu1 %v3775_v11 }
 0x454   :  { %v1245_v6 = vpop.f32.mrb[28].mxu0  ;;  %v1286_v55 = vpop.f32.mrb[28].mxu1 }
 0x455   :  { %v1293_v56 = vadd.f32 %v1245_v6, %v5093_v58  ;;  %v1295_v47 = vadd.f32 %v1286_v55, %v5094_v59  ;;  %v1247_v50 = vpop.f32.mrb[29].mxu0  ;;  %v1288_v60 = vpop.f32.mrb[29].mxu1 }
 0x456   :  { %v1294_v61 = vadd.f32 %v1247_v50, %v5095_v48  ;;  %v1296_v2 = vadd.f32 %v1288_v60, %v5096_v0  ;;  %v1249_v4 = vpop.f32.mrb[30].mxu0  ;;  %v1290_v62 = vpop.f32.mrb[30].mxu1 }
 0x457   :  { %v3021_v5 = vmul.f32 -1.442695, %v1293_v56  ;;  %v1250_v8 = vpop.f32.mrb[31].mxu0  ;;  %v1291_v12 = vpop.f32.mrb[31].mxu1 }
 0x458   :  { %v3022_v10 = vmul.f32 -1.442695, %v1294_v61  ;;  %v3023_v11 = vmul.f32 -1.442695, %v1296_v2 }
 0x459   :  { %3199 = vpow2.f32 %v3021_v5 }
 0x45a   :  { %3201 = vpow2.f32 %v3022_v10 }
 0x45b   :  { %3203 = vpow2.f32 %v3023_v11 }
 0x45c   :  { %3205 = vtanh.f32 %v1295_v47 }
 0x463   :  { %v3200_v30 = vpop.eup %3199 }
 0x464   :  { %v3202_v9 = vpop.eup %3201  ;;  %v1300_v1 = vadd.f32 1.0, %v3200_v30 }
 0x465   :  { %v1306_v39 = vadd.f32 1.0, %v3202_v9  ;;  %v3204_v7 = vpop.eup %3203 }
 0x466   :  { %3207 = vrcp.f32 %v1300_v1  ;;  %v3206_v57 = vpop.eup %3205  ;;  %v1313_v53 = vadd.f32 1.0, %v3204_v7  ;;  %v4334_v7 = vld [vmem:[%s5055_s2 + $0x8] ss:$16 sps:$4 sm:$0xff]  }
 0x467   :  { %3209 = vrcp.f32 %v1306_v39  ;;  %v4328_v39 = vld [vmem:[%s5055_s2] ss:$16 sps:$4 sm:$0xff]  }
 0x468   :  { %3211 = vrcp.f32 %v1313_v53  ;;  %v4366_v53 = vld [vmem:[%s5055_s2 + $0x44] ss:$16 sps:$4 sm:$0xff]  }
 0x470   :  { %v3208_v51 = vpop.eup %3207 }
 0x471   :  { %v3210_v46 = vpop.eup %3209  ;;  %v1317_v21 = vmul.f32 %v3208_v51, %v3206_v57  ;;  %v4340_v57 = vld [vmem:[%s5055_s2 + $0x24] ss:$16 sps:$4 sm:$0xff]   ;;  %v4346_v51 = vld [vmem:[%s5055_s2 + $0x2c] ss:$16 sps:$4 sm:$0xff]  }
 0x472   :  { %v1316_v6 = vmul.f32 %v3210_v46, %v4216_v3  ;;  %v3212_v58 = vpop.eup %3211  ;;  %v4354_v46 = vld [vmem:[%s5055_s2 + $0x20] ss:$16 sps:$4 sm:$0xff]  }
 0x474   :  { %v4262_v55 = vadd.f32 %v1317_v21, %v1316_v6  ;;  %v4360_v21 = vld [vmem:[%s5055_s2 + $0x28] ss:$16 sps:$4 sm:$0xff]   ;;  %v4372_v6 = vld [vmem:[%s5055_s2 + $0x4c] ss:$16 sps:$4 sm:$0xff]  }
 0x476   :  { %3213 = vtanh.f32 %v4262_v55 }
 0x480   :  { %v3214_v56 = vpop.eup %3213 }
 0x481   :  { %v4265_v59 = vmul.f32 %v3214_v56, %v3212_v58  ;;  %v4384_v58 = vld [vmem:[%s5055_s2 + $0x48] ss:$16 sps:$4 sm:$0xff]   ;;  %v4390_v56 = vld [vmem:[%s5055_s2 + $0x64] ss:$16 sps:$4 sm:$0xff]  }
 0x483   :  { %v1322_v47 = vpack.c.bf16 %v4265_v59, %v4265_v59 }
 0x485   :  { %1356 = vmatmul.mubr.bf16.vlgmr.msra.gmra.mrb[32].mxu0 %v1322_v47  ;;  %1397 = vmatmul.mubr.bf16.vlgmr.msra.gmra.mrb[32].mxu1 %v1322_v47  ;;  %v4396_v47 = vld [vmem:[%s5055_s2 + $0x6c] ss:$16 sps:$4 sm:$0xff]  }
 0x486   :  { %1436 = vmatpush1.bf16.msra.mxu0 %v3783_v13  ;;  %1477 = vmatpush1.bf16.msra.mxu1 %v3788_v14  ;;  %v4304_v13 = vld [vmem:[%s5055_s2 + $0x4] ss:$16 sps:$4 sm:$0xff]   ;;  %v4310_v14 = vld [vmem:[%s5055_s2 + $0xc] ss:$16 sps:$4 sm:$0xff]  }
 0x487   :  { %1437 = vmatprep.subr.bf16.mxu0 %v3793_v15  ;;  %1478 = vmatprep.subr.bf16.mxu1 %v3800_v16 }
 0x488   :  { %1467 = vmatprep.mubr.bf16.mxu0 %v5091_v49  ;;  %1508 = vmatprep.mubr.bf16.mxu1 %v5091_v49 }
 0x48a   :  { %1438 = vmatpush1.bf16.msra.mxu0 %v3807_v17  ;;  %1479 = vmatpush1.bf16.msra.mxu1 %v3814_v18  ;;  %v5097_v17 = vld [vmem:[#allocation23_spill] sm:$0xff] }
 0x48b   :  { %1439 = vmatprep.subr.bf16.mxu0 %v3819_v19  ;;  %1480 = vmatprep.subr.bf16.mxu1 %v3826_v20  ;;  %v5098_v19 = vld [vmem:[#allocation24_spill] sm:$0xff] }
 0x48e   :  { %1440 = vmatpush1.bf16.msra.mxu0 %v3836_v22  ;;  %1481 = vmatpush1.bf16.msra.mxu1 %v3841_v23 }
 0x48f   :  { %1441 = vmatprep.subr.bf16.mxu0 %v3848_v24  ;;  %1482 = vmatprep.subr.bf16.mxu1 %v3855_v25  ;;  %v5099_v24 = vld [vmem:[#allocation25_spill] sm:$0xff] }
 0x492   :  { %1442 = vmatpush1.bf16.msra.mxu0 %v3862_v26  ;;  %1483 = vmatpush1.bf16.msra.mxu1 %v3869_v27  ;;  %v5100_v26 = vld [vmem:[#allocation26_spill] sm:$0xff] }
 0x493   :  { %1443 = vmatprep.subr.bf16.mxu0 %v3876_v28  ;;  %1484 = vmatprep.subr.bf16.mxu1 %v3881_v29 }
 0x496   :  { %1444 = vmatpush1.bf16.msra.mxu0 %v3891_v31  ;;  %1485 = vmatpush1.bf16.msra.mxu1 %v3898_v32 }
 0x497   :  { %1445 = vmatprep.subr.bf16.mxu0 %v3903_v33  ;;  %1486 = vmatprep.subr.bf16.mxu1 %v3910_v34 }
 0x49a   :  { %1446 = vmatpush1.bf16.msra.mxu0 %v3919_v35  ;;  %1487 = vmatpush1.bf16.msra.mxu1 %v3924_v36 }
 0x49b   :  { %1447 = vmatprep.subr.bf16.mxu0 %v3931_v37  ;;  %1488 = vmatprep.subr.bf16.mxu1 %v3936_v38 }
 0x49e   :  { %1448 = vmatpush1.bf16.msra.mxu0 %v3948_v40  ;;  %1489 = vmatpush1.bf16.msra.mxu1 %v3953_v41 }
 0x49f   :  { %1449 = vmatprep.subr.bf16.mxu0 %v3960_v42  ;;  %1490 = vmatprep.subr.bf16.mxu1 %v3965_v43 }
 0x4a2   :  { %1450 = vmatpush1.bf16.msra.mxu0 %v3974_v44  ;;  %1491 = vmatpush1.bf16.msra.mxu1 %v3979_v45 }
 0x4a3   :  { %1547 = vmatprep.subr.bf16.mxu0 %v4304_v13  ;;  %1588 = vmatprep.subr.bf16.mxu1 %v4310_v14 }
 0x558   :  { %v1357_v15 = vpop.f32.mrb[32].mxu0  ;;  %v1398_v16 = vpop.f32.mrb[32].mxu1 }
 0x559   :  { %v1405_v18 = vadd.f32 %v1357_v15, %v5097_v17  ;;  %v1407_v20 = vadd.f32 %v1398_v16, %v5098_v19  ;;  %v1359_v22 = vpop.f32.mrb[33].mxu0  ;;  %v1400_v23 = vpop.f32.mrb[33].mxu1  ;;  %v4402_v15 = vld [vmem:[%s5055_s2 + $0x60] ss:$16 sps:$4 sm:$0xff]   ;;  %v4408_v16 = vld [vmem:[%s5055_s2 + $0x68] ss:$16 sps:$4 sm:$0xff]  }
 0x55a   :  { %v1406_v25 = vadd.f32 %v1359_v22, %v5099_v24  ;;  %v1408_v27 = vadd.f32 %v1400_v23, %v5100_v26  ;;  %v1361_v28 = vpop.f32.mrb[34].mxu0  ;;  %v1402_v29 = vpop.f32.mrb[34].mxu1  ;;  %v4414_v17 = vld [vmem:[%s5055_s2 + $0x84] ss:$16 sps:$4 sm:$0xff]   ;;  %v4426_v19 = vld [vmem:[%s5055_s2 + $0x80] ss:$16 sps:$4 sm:$0xff]  }
 0x55b   :  { %v3024_v31 = vmul.f32 -1.442695, %v1405_v18  ;;  %v1362_v32 = vpop.f32.mrb[35].mxu0  ;;  %v1403_v33 = vpop.f32.mrb[35].mxu1  ;;  %v4420_v18 = vld [vmem:[%s5055_s2 + $0x8c] ss:$16 sps:$4 sm:$0xff]  }
 0x55c   :  { %v3025_v34 = vmul.f32 -1.442695, %v1406_v25  ;;  %v3026_v3 = vmul.f32 -1.442695, %v1408_v27  ;;  %v4438_v22 = vld [vmem:[%s5055_s2 + $0xa4] ss:$16 sps:$4 sm:$0xff]  }
 0x55d   :  { %3215 = vpow2.f32 %v3024_v31  ;;  %v4444_v23 = vld [vmem:[%s5055_s2 + $0xac] ss:$16 sps:$4 sm:$0xff]   ;;  %v5102_v24 = vld [vmem:[#allocation28_spill] sm:$0xff]  ;;  %v5104_v27 = vld [vmem:[#allocation30_spill] sm:$0xff] }
 0x55e   :  { %3217 = vpow2.f32 %v3025_v34  ;;  %v5103_v26 = vld [vmem:[#allocation29_spill] sm:$0xff] }
 0x55f   :  { %3219 = vpow2.f32 %v3026_v3 }
 0x560   :  { %3221 = vtanh.f32 %v1407_v20  ;;  %v4432_v20 = vld [vmem:[%s5055_s2 + $0x88] ss:$16 sps:$4 sm:$0xff]  }
 0x567   :  { %v3216_v50 = vpop.eup %3215 }
 0x568   :  { %v3218_v60 = vpop.eup %3217  ;;  %v1412_v48 = vadd.f32 1.0, %v3216_v50 }
 0x569   :  { %v1418_v61 = vadd.f32 1.0, %v3218_v60  ;;  %v3220_v0 = vpop.eup %3219 }
 0x56a   :  { %3223 = vrcp.f32 %v1412_v48  ;;  %v3222_v2 = vpop.eup %3221  ;;  %v1425_v8 = vadd.f32 1.0, %v3220_v0 }
 0x56b   :  { %3225 = vrcp.f32 %v1418_v61 }
 0x56c   :  { %3227 = vrcp.f32 %v1425_v8 }
 0x574   :  { %v3224_v4 = vpop.eup %3223 }
 0x575   :  { %v3226_v62 = vpop.eup %3225  ;;  %v1429_v5 = vmul.f32 %v3224_v4, %v3222_v2 }
 0x576   :  { %v1428_v12 = vmul.f32 %v3226_v62, %v4262_v55  ;;  %v3228_v11 = vpop.eup %3227  ;;  %v4378_v55 = vld [vmem:[%s5055_s2 + $0x40] ss:$16 sps:$4 sm:$0xff]  }
 0x578   :  { %v4318_v10 = vadd.f32 %v1429_v5, %v1428_v12 }
 0x57a   :  { %3229 = vtanh.f32 %v4318_v10 }
 0x584   :  { %v3230_v30 = vpop.eup %3229 }
 0x585   :  { %v4321_v9 = vmul.f32 %v3230_v30, %v3228_v11  ;;  %v3302_v30 = vld [vmem:[%s5055_s2 + $0xa8] ss:$16 sps:$4 sm:$0xff]  }
 0x587   :  { %v1434_v1 = vpack.c.bf16 %v4321_v9, %v4321_v9 }
 0x589   :  { %1468 = vmatmul.mubr.bf16.vlgmr.msra.gmra.mrb[36].mxu0 %v1434_v1  ;;  %1509 = vmatmul.mubr.bf16.vlgmr.msra.gmra.mrb[36].mxu1 %v1434_v1  ;;  %v3303_v1 = vld [vmem:[%s5055_s2 + $0xc4] ss:$16 sps:$4 sm:$0xff]  }
 0x58a   :  { %1548 = vmatpush1.bf16.msra.mxu0 %v4328_v39  ;;  %1589 = vmatpush1.bf16.msra.mxu1 %v4334_v7 }
 0x58b   :  { %1549 = vmatprep.subr.bf16.mxu0 %v4340_v57  ;;  %1590 = vmatprep.subr.bf16.mxu1 %v4346_v51 }
 0x58c   :  { %1579 = vmatprep.mubr.bf16.mxu0 %v5091_v49  ;;  %1620 = vmatprep.mubr.bf16.mxu1 %v5091_v49 }
 0x58e   :  { %1550 = vmatpush1.bf16.msra.mxu0 %v4354_v46  ;;  %1591 = vmatpush1.bf16.msra.mxu1 %v4360_v21 }
 0x58f   :  { %1551 = vmatprep.subr.bf16.mxu0 %v4366_v53  ;;  %1592 = vmatprep.subr.bf16.mxu1 %v4372_v6 }
 0x592   :  { %1552 = vmatpush1.bf16.msra.mxu0 %v4378_v55  ;;  %1593 = vmatpush1.bf16.msra.mxu1 %v4384_v58 }
 0x593   :  { %1553 = vmatprep.subr.bf16.mxu0 %v4390_v56  ;;  %1594 = vmatprep.subr.bf16.mxu1 %v4396_v47 }
 0x596   :  { %1554 = vmatpush1.bf16.msra.mxu0 %v4402_v15  ;;  %1595 = vmatpush1.bf16.msra.mxu1 %v4408_v16 }
 0x597   :  { %1555 = vmatprep.subr.bf16.mxu0 %v4414_v17  ;;  %1596 = vmatprep.subr.bf16.mxu1 %v4420_v18 }
 0x59a   :  { %1556 = vmatpush1.bf16.msra.mxu0 %v4426_v19  ;;  %1597 = vmatpush1.bf16.msra.mxu1 %v4432_v20 }
 0x59b   :  { %1557 = vmatprep.subr.bf16.mxu0 %v4438_v22  ;;  %1598 = vmatprep.subr.bf16.mxu1 %v4444_v23 }
 0x59e   :  { %1558 = vmatpush1.bf16.msra.mxu0 %v3919_v35  ;;  %1599 = vmatpush1.bf16.msra.mxu1 %v3924_v36 }
 0x59f   :  { %1559 = vmatprep.subr.bf16.mxu0 %v3931_v37  ;;  %1600 = vmatprep.subr.bf16.mxu1 %v3936_v38  ;;  %v5101_v37 = vld [vmem:[#allocation27_spill] sm:$0xff] }
 0x5a2   :  { %1560 = vmatpush1.bf16.msra.mxu0 %v3948_v40  ;;  %1601 = vmatpush1.bf16.msra.mxu1 %v3953_v41 }
 0x5a3   :  { %1561 = vmatprep.subr.bf16.mxu0 %v3960_v42  ;;  %1602 = vmatprep.subr.bf16.mxu1 %v3965_v43 }
 0x5a6   :  { %1562 = vmatpush1.bf16.msra.mxu0 %v3974_v44  ;;  %1603 = vmatpush1.bf16.msra.mxu1 %v3979_v45 }
 0x5a7   :  { %1659 = vmatprep.subr.bf16.mxu0 %v4304_v13  ;;  %1700 = vmatprep.subr.bf16.mxu1 %v4310_v14 }
 0x65c   :  { %v1469_v35 = vpop.f32.mrb[36].mxu0  ;;  %v1510_v36 = vpop.f32.mrb[36].mxu1 }
 0x65d   :  { %v1517_v38 = vadd.f32 %v1469_v35, %v5101_v37  ;;  %v1519_v40 = vadd.f32 %v1510_v36, %v5102_v24  ;;  %v1471_v25 = vpop.f32.mrb[37].mxu0  ;;  %v1512_v41 = vpop.f32.mrb[37].mxu1 }
 0x65e   :  { %v1518_v42 = vadd.f32 %v1471_v25, %v5103_v26  ;;  %v1520_v43 = vadd.f32 %v1512_v41, %v5104_v27  ;;  %v1473_v28 = vpop.f32.mrb[38].mxu0  ;;  %v1514_v44 = vpop.f32.mrb[38].mxu1 }
 0x65f   :  { %v3027_v29 = vmul.f32 -1.442695, %v1517_v38  ;;  %v1474_v45 = vpop.f32.mrb[39].mxu0  ;;  %v1515_v31 = vpop.f32.mrb[39].mxu1 }
 0x660   :  { %v3028_v13 = vmul.f32 -1.442695, %v1518_v42  ;;  %v3029_v14 = vmul.f32 -1.442695, %v1520_v43 }
 0x661   :  { %3231 = vpow2.f32 %v3027_v29 }
 0x662   :  { %3233 = vpow2.f32 %v3028_v13 }
 0x663   :  { %3235 = vpow2.f32 %v3029_v14 }
 0x664   :  { %3237 = vtanh.f32 %v1519_v40 }
 0x66b   :  { %v3232_v32 = vpop.eup %3231 }
 0x66c   :  { %v3234_v33 = vpop.eup %3233  ;;  %v1524_v34 = vadd.f32 1.0, %v3232_v32 }
 0x66d   :  { %v1530_v3 = vadd.f32 1.0, %v3234_v33  ;;  %v3236_v50 = vpop.eup %3235 }
 0x66e   :  { %3239 = vrcp.f32 %v1524_v34  ;;  %v3238_v60 = vpop.eup %3237  ;;  %v1537_v2 = vadd.f32 1.0, %v3236_v50 }
 0x66f   :  { %3241 = vrcp.f32 %v1530_v3 }
 0x670   :  { %3243 = vrcp.f32 %v1537_v2 }
 0x678   :  { %v3240_v48 = vpop.eup %3239 }
 0x679   :  { %v3242_v61 = vpop.eup %3241  ;;  %v1541_v0 = vmul.f32 %v3240_v48, %v3238_v60  ;;  %v5109_v60 = vld [vmem:[#allocation35_spill] sm:$0xff] }
 0x67a   :  { %v1540_v4 = vmul.f32 %v3242_v61, %v4318_v10  ;;  %v3244_v5 = vpop.eup %3243  ;;  %v3301_v10 = vld [vmem:[%s5055_s2 + $0xa0] ss:$16 sps:$4 sm:$0xff]  }
 0x67b   :  { %v5110_v61 = vld [vmem:[#allocation36_spill] sm:$0xff] }
 0x67c   :  { %v4464_v62 = vadd.f32 %v1541_v0, %v1540_v4 }
 0x67e   :  { %3245 = vtanh.f32 %v4464_v62 }
 0x688   :  { %v3246_v8 = vpop.eup %3245 }
 0x689   :  { %v4467_v12 = vmul.f32 %v3246_v8, %v3244_v5  ;;  %v5112_v8 = vld [vmem:[#allocation38_spill] sm:$0xff] }
 0x68b   :  { %v1546_v11 = vpack.c.bf16 %v4467_v12, %v4467_v12 }
 0x68d   :  { %1580 = vmatmul.mubr.bf16.vlgmr.msra.gmra.mrb[40].mxu0 %v1546_v11  ;;  %1621 = vmatmul.mubr.bf16.vlgmr.msra.gmra.mrb[40].mxu1 %v1546_v11 }
 0x68e   :  { %1660 = vmatpush1.bf16.msra.mxu0 %v4328_v39  ;;  %1701 = vmatpush1.bf16.msra.mxu1 %v4334_v7  ;;  %v3304_v39 = vld [vmem:[%s5055_s2 + $0xcc] ss:$16 sps:$4 sm:$0xff]   ;;  %v3305_v7 = vld [vmem:[%s5055_s2 + $0xc0] ss:$16 sps:$4 sm:$0xff]  }
 0x68f   :  { %1661 = vmatprep.subr.bf16.mxu0 %v4340_v57  ;;  %1702 = vmatprep.subr.bf16.mxu1 %v4346_v51  ;;  %v3306_v57 = vld [vmem:[%s5055_s2 + $0xc8] ss:$16 sps:$4 sm:$0xff]   ;;  %v3307_v51 = vld [vmem:[%s5055_s2 + $0xe4] ss:$16 sps:$4 sm:$0xff]  }
 0x690   :  { %1691 = vmatprep.mubr.bf16.mxu0 %v5091_v49  ;;  %1732 = vmatprep.mubr.bf16.mxu1 %v5091_v49 }
 0x692   :  { %1662 = vmatpush1.bf16.msra.mxu0 %v4354_v46  ;;  %1703 = vmatpush1.bf16.msra.mxu1 %v4360_v21  ;;  %v3308_v46 = vld [vmem:[%s5055_s2 + $0xec] ss:$16 sps:$4 sm:$0xff]   ;;  %v3309_v21 = vld [vmem:[%s5055_s2 + $0xe0] ss:$16 sps:$4 sm:$0xff]  }
 0x693   :  { %1663 = vmatprep.subr.bf16.mxu0 %v4366_v53  ;;  %1704 = vmatprep.subr.bf16.mxu1 %v4372_v6  ;;  %v3310_v53 = vld [vmem:[%s5055_s2 + $0xe8] ss:$16 sps:$4 sm:$0xff]  }
 0x696   :  { %1664 = vmatpush1.bf16.msra.mxu0 %v4378_v55  ;;  %1705 = vmatpush1.bf16.msra.mxu1 %v4384_v58  ;;  %v5105_v58 = vld [vmem:[#allocation31_spill] sm:$0xff] }
 0x697   :  { %1665 = vmatprep.subr.bf16.mxu0 %v4390_v56  ;;  %1706 = vmatprep.subr.bf16.mxu1 %v4396_v47  ;;  %v5106_v47 = vld [vmem:[#allocation32_spill] sm:$0xff] }
 0x69a   :  { %1666 = vmatpush1.bf16.msra.mxu0 %v4402_v15  ;;  %1707 = vmatpush1.bf16.msra.mxu1 %v4408_v16 }
 0x69b   :  { %1667 = vmatprep.subr.bf16.mxu0 %v4414_v17  ;;  %1708 = vmatprep.subr.bf16.mxu1 %v4420_v18  ;;  %v5107_v18 = vld [vmem:[#allocation33_spill] sm:$0xff] }
 0x69e   :  { %1668 = vmatpush1.bf16.msra.mxu0 %v4426_v19  ;;  %1709 = vmatpush1.bf16.msra.mxu1 %v4432_v20  ;;  %v5108_v20 = vld [vmem:[#allocation34_spill] sm:$0xff] }
 0x69f   :  { %1669 = vmatprep.subr.bf16.mxu0 %v4438_v22  ;;  %1710 = vmatprep.subr.bf16.mxu1 %v4444_v23 }
 0x6a2   :  { %1670 = vmatpush1.bf16.msra.mxu0 %v3301_v10  ;;  %1711 = vmatpush1.bf16.msra.mxu1 %v3302_v30 }
 0x6a3   :  { %1671 = vmatprep.subr.bf16.mxu0 %v3303_v1  ;;  %1712 = vmatprep.subr.bf16.mxu1 %v3304_v39 }
 0x6a6   :  { %1672 = vmatpush1.bf16.msra.mxu0 %v3305_v7  ;;  %1713 = vmatpush1.bf16.msra.mxu1 %v3306_v57 }
 0x6a7   :  { %1673 = vmatprep.subr.bf16.mxu0 %v3307_v51  ;;  %1714 = vmatprep.subr.bf16.mxu1 %v3308_v46 }
 0x6aa   :  { %1674 = vmatpush1.bf16.msra.mxu0 %v3309_v21  ;;  %1715 = vmatpush1.bf16.msra.mxu1 %v3310_v53 }
 0x760   :  { %v1581_v6 = vpop.f32.mrb[40].mxu0  ;;  %v1622_v55 = vpop.f32.mrb[40].mxu1 }
 0x761   :  { %v1629_v56 = vadd.f32 %v1581_v6, %v5105_v58  ;;  %v1631_v15 = vadd.f32 %v1622_v55, %v5106_v47  ;;  %v1583_v16 = vpop.f32.mrb[41].mxu0  ;;  %v1624_v17 = vpop.f32.mrb[41].mxu1 }
 0x762   :  { %v1630_v19 = vadd.f32 %v1583_v16, %v5107_v18  ;;  %v1632_v22 = vadd.f32 %v1624_v17, %v5108_v20  ;;  %v1585_v23 = vpop.f32.mrb[42].mxu0  ;;  %v1626_v35 = vpop.f32.mrb[42].mxu1 }
 0x763   :  { %v3030_v36 = vmul.f32 -1.442695, %v1629_v56  ;;  %v1586_v37 = vpop.f32.mrb[43].mxu0  ;;  %v1627_v38 = vpop.f32.mrb[43].mxu1 }
 0x764   :  { %v3031_v24 = vmul.f32 -1.442695, %v1630_v19  ;;  %v3032_v40 = vmul.f32 -1.442695, %v1632_v22 }
 0x765   :  { %3247 = vpow2.f32 %v3030_v36 }
 0x766   :  { %3249 = vpow2.f32 %v3031_v24 }
 0x767   :  { %3251 = vpow2.f32 %v3032_v40 }
 0x768   :  { %3253 = vtanh.f32 %v1631_v15 }
 0x76f   :  { %v3248_v25 = vpop.eup %3247 }
 0x770   :  { %v3250_v41 = vpop.eup %3249  ;;  %v1636_v26 = vadd.f32 1.0, %v3248_v25 }
 0x771   :  { %v1642_v42 = vadd.f32 1.0, %v3250_v41  ;;  %v3252_v27 = vpop.eup %3251 }
 0x772   :  { %3255 = vrcp.f32 %v1636_v26  ;;  %v3254_v43 = vpop.eup %3253  ;;  %v1649_v45 = vadd.f32 1.0, %v3252_v27 }
 0x773   :  { %3257 = vrcp.f32 %v1642_v42 }
 0x774   :  { %3259 = vrcp.f32 %v1649_v45 }
 0x77c   :  { %v3256_v28 = vpop.eup %3255 }
 0x77d   :  { %v3258_v44 = vpop.eup %3257  ;;  %v1653_v29 = vmul.f32 %v3256_v28, %v3254_v43 }
 0x77e   :  { %v1652_v31 = vmul.f32 %v3258_v44, %v4464_v62  ;;  %v3260_v14 = vpop.eup %3259  ;;  %v5111_v62 = vld [vmem:[#allocation37_spill] sm:$0xff] }
 0x780   :  { %v1654_v13 = vadd.f32 %v1653_v29, %v1652_v31 }
 0x782   :  { %3261 = vtanh.f32 %v1654_v13 }
 0x78c   :  { %v3262_v32 = vpop.eup %3261 }
 0x78d   :  { %v4528_v33 = vmul.f32 %v3262_v32, %v3260_v14 }
 0x78f   :  { %v1658_v34 = vpack.c.bf16 %v4528_v33, %v4528_v33 }
 0x791   :  { %1692 = vmatmul.mubr.bf16.vlgmr.msra.gmra.mrb[44].mxu0 %v1658_v34  ;;  %1733 = vmatmul.mubr.bf16.vlgmr.msra.gmra.mrb[44].mxu1 %v1658_v34 }
 0x864   :  { %v1693_v3 = vpop.f32.mrb[44].mxu0  ;;  %v1734_v50 = vpop.f32.mrb[44].mxu1 }
 0x865   :  { %v1741_v48 = vadd.f32 %v1693_v3, %v5109_v60  ;;  %v1743_v0 = vadd.f32 %v1734_v50, %v5110_v61  ;;  %v1695_v2 = vpop.f32.mrb[45].mxu0  ;;  %v1736_v4 = vpop.f32.mrb[45].mxu1 }
 0x866   :  { %v1742_v5 = vadd.f32 %v1695_v2, %v5111_v62  ;;  %v1744_v11 = vadd.f32 %v1736_v4, %v5112_v8  ;;  %v1697_v10 = vpop.f32.mrb[46].mxu0  ;;  %v1738_v30 = vpop.f32.mrb[46].mxu1 }
 0x867   :  { %v3033_v1 = vmul.f32 -1.442695, %v1741_v48  ;;  %v1698_v39 = vpop.f32.mrb[47].mxu0  ;;  %v1739_v7 = vpop.f32.mrb[47].mxu1 }
 0x868   :  { %v3034_v57 = vmul.f32 -1.442695, %v1742_v5  ;;  %v3035_v51 = vmul.f32 -1.442695, %v1744_v11 }
 0x869   :  { %3263 = vpow2.f32 %v3033_v1 }
 0x86a   :  { %3265 = vpow2.f32 %v3034_v57 }
 0x86b   :  { %3267 = vpow2.f32 %v3035_v51 }
 0x86c   :  { %3269 = vtanh.f32 %v1743_v0 }
 0x873   :  { %v3264_v46 = vpop.eup %3263 }
 0x874   :  { %v3266_v21 = vpop.eup %3265  ;;  %v1748_v53 = vadd.f32 1.0, %v3264_v46 }
 0x875   :  { %v1754_v6 = vadd.f32 1.0, %v3266_v21  ;;  %v3268_v55 = vpop.eup %3267 }
 0x876   :  { %3271 = vrcp.f32 %v1748_v53  ;;  %v3270_v58 = vpop.eup %3269  ;;  %v1761_v16 = vadd.f32 1.0, %v3268_v55 }
 0x877   :  { %3273 = vrcp.f32 %v1754_v6 }
 0x878   :  { %3275 = vrcp.f32 %v1761_v16 }
 0x880   :  { %v3272_v56 = vpop.eup %3271 }
 0x881   :  { %v3274_v47 = vpop.eup %3273  ;;  %v1765_v15 = vmul.f32 %v3272_v56, %v3270_v58 }
 0x882   :  { %v1764_v17 = vmul.f32 %v3274_v47, %v1654_v13  ;;  %v3276_v19 = vpop.eup %3275 }
 0x884   :  { %v1766_v18 = vadd.f32 %v1765_v15, %v1764_v17 }
 0x886   :  { %3277 = vtanh.f32 %v1766_v18 }
 0x890   :  { %v3278_v20 = vpop.eup %3277 }
 0x891   :  { %v4536_v22 = vmul.f32 %v3278_v20, %v3276_v19 }
 0x892   :  { %3517 = dma.done.wait [#allocation5], 4096 }
 0x893   :  { %3518 = vsyncadd [#allocation5], 4294963200 }
 0x894   :  { %3519 = dma.done.wait [#allocation5 + $0x1], 4096 }
 0x895   :  { %3520 = vsyncadd [#allocation5 + $0x1], 4294963200  ;;  %1906 = vmatprep.mubr.bf16.mxu0 %v5091_v49  ;;  %1979 = vmatprep.mubr.bf16.mxu1 %v5091_v49  ;;  %v1790_v23 = vld [vmem:[#allocation3 + $0x8] sm:$0xff]  ;;  %v1792_v35 = vld [vmem:[#allocation3 + $0x18] sm:$0xff]  ;;  %v1785_v10 = vpack.c.bf16 %v4173_v52, %v4127_v63  ;;  %v1786_v46 = vpack.c.bf16 %v4265_v59, %v4219_v54  ;;  %v1787_v47 = vpack.c.bf16 %v4467_v12, %v4321_v9 }
 0x896   :  { %v1789_v36 = vld [vmem:[#allocation3] sm:$0xff]  ;;  %1874 = vmatprep.subr.bf16.mxu0 %v1790_v23  ;;  %1947 = vmatprep.subr.bf16.mxu1 %v1792_v35  ;;  %v1791_v37 = vld [vmem:[#allocation3 + $0x10] sm:$0xff]  ;;  %v1794_v38 = vld [vmem:[#allocation3 + $0x28] sm:$0xff]  ;;  %v1788_v23 = vpack.c.bf16 %v4536_v22, %v4528_v33 }
 0x897   :  { %v1796_v24 = vld [vmem:[#allocation3 + $0x38] sm:$0xff]  ;;  %1875 = vmatpush1.bf16.msra.mxu0 %v1789_v36  ;;  %1948 = vmatpush1.bf16.msra.mxu1 %v1791_v37  ;;  %v1793_v40 = vld [vmem:[#allocation3 + $0x20] sm:$0xff]  ;;  %v1795_v25 = vld [vmem:[#allocation3 + $0x30] sm:$0xff] }
 0x898   :  { %1876 = vmatprep.subr.bf16.mxu0 %v1794_v38  ;;  %1949 = vmatprep.subr.bf16.mxu1 %v1796_v24  ;;  %v1798_v41 = vld [vmem:[#allocation3 + $0x48] sm:$0xff]  ;;  %v1800_v26 = vld [vmem:[#allocation3 + $0x58] sm:$0xff]  ;;  %v1797_v42 = vld [vmem:[#allocation3 + $0x40] sm:$0xff] }
 0x899   :  { %v1799_v27 = vld [vmem:[#allocation3 + $0x50] sm:$0xff]  ;;  %v1802_v43 = vld [vmem:[#allocation3 + $0x68] sm:$0xff]  ;;  %v1804_v28 = vld [vmem:[#allocation3 + $0x78] sm:$0xff] }
 0x89a   :  { %v1801_v44 = vld [vmem:[#allocation3 + $0x60] sm:$0xff]  ;;  %v1803_v29 = vld [vmem:[#allocation3 + $0x70] sm:$0xff]  ;;  %v1806_v45 = vld [vmem:[#allocation3 + $0x88] sm:$0xff] }
 0x89b   :  { %1877 = vmatpush1.bf16.msra.mxu0 %v1793_v40  ;;  %1950 = vmatpush1.bf16.msra.mxu1 %v1795_v25  ;;  %v1808_v31 = vld [vmem:[#allocation3 + $0x98] sm:$0xff]  ;;  %v1805_v13 = vld [vmem:[#allocation3 + $0x80] sm:$0xff]  ;;  %v1807_v14 = vld [vmem:[#allocation3 + $0x90] sm:$0xff] }
 0x89c   :  { %1878 = vmatprep.subr.bf16.mxu0 %v1798_v41  ;;  %1951 = vmatprep.subr.bf16.mxu1 %v1800_v26  ;;  %v1810_v32 = vld [vmem:[#allocation3 + $0xa8] sm:$0xff]  ;;  %v1812_v34 = vld [vmem:[#allocation3 + $0xb8] sm:$0xff]  ;;  %v1809_v3 = vld [vmem:[#allocation3 + $0xa0] sm:$0xff] }
 0x89d   :  { %v1811_v50 = vld [vmem:[#allocation3 + $0xb0] sm:$0xff]  ;;  %v1814_v60 = vld [vmem:[#allocation3 + $0xc8] sm:$0xff]  ;;  %v1816_v48 = vld [vmem:[#allocation3 + $0xd8] sm:$0xff] }
 0x89e   :  { %v1813_v61 = vld [vmem:[#allocation3 + $0xc0] sm:$0xff]  ;;  %v1815_v0 = vld [vmem:[#allocation3 + $0xd0] sm:$0xff]  ;;  %v1818_v2 = vld [vmem:[#allocation3 + $0xe8] sm:$0xff] }
 0x89f   :  { %1879 = vmatpush1.bf16.msra.mxu0 %v1797_v42  ;;  %1952 = vmatpush1.bf16.msra.mxu1 %v1799_v27  ;;  %v1820_v4 = vld [vmem:[#allocation3 + $0xf8] sm:$0xff]  ;;  %v1817_v62 = vld [vmem:[#allocation3 + $0xe0] sm:$0xff]  ;;  %v1819_v5 = vld [vmem:[#allocation3 + $0xf0] sm:$0xff] }
 0x8a0   :  { %1880 = vmatprep.subr.bf16.mxu0 %v1802_v43  ;;  %1953 = vmatprep.subr.bf16.mxu1 %v1804_v28  ;;  %v4540_v8 = vld [vmem:[#allocation4 + $0x8] sm:$0xff]  ;;  %v4542_v11 = vld [vmem:[#allocation4 + $0x18] sm:$0xff]  ;;  %v4548_v30 = vld [vmem:[#allocation4] sm:$0xff] }
 0x8a1   :  { %v4550_v1 = vld [vmem:[#allocation4 + $0x10] sm:$0xff]  ;;  %v4552_v39 = vld [vmem:[#allocation4 + $0x28] sm:$0xff]  ;;  %v4554_v7 = vld [vmem:[#allocation4 + $0x38] sm:$0xff] }
 0x8a2   :  { %v4560_v63 = vld [vmem:[#allocation4 + $0x20] sm:$0xff]  ;;  %v4562_v52 = vld [vmem:[#allocation4 + $0x30] sm:$0xff]  ;;  %v4566_v57 = vld [vmem:[#allocation4 + $0x48] sm:$0xff] }
 0x8a3   :  { %1881 = vmatpush1.bf16.msra.mxu0 %v1801_v44  ;;  %1954 = vmatpush1.bf16.msra.mxu1 %v1803_v29  ;;  %v4568_v51 = vld [vmem:[#allocation4 + $0x58] sm:$0xff]  ;;  %v4576_v21 = vld [vmem:[#allocation4 + $0x40] sm:$0xff]  ;;  %v4578_v53 = vld [vmem:[#allocation4 + $0x50] sm:$0xff] }
 0x8a4   :  { %1882 = vmatprep.subr.bf16.mxu0 %v1806_v45  ;;  %1955 = vmatprep.subr.bf16.mxu1 %v1808_v31  ;;  %v4580_v6 = vld [vmem:[#allocation4 + $0x68] sm:$0xff]  ;;  %v4582_v55 = vld [vmem:[#allocation4 + $0x78] sm:$0xff]  ;;  %v4588_v54 = vld [vmem:[#allocation4 + $0x60] sm:$0xff] }
 0x8a5   :  { %v4590_v59 = vld [vmem:[#allocation4 + $0x70] sm:$0xff]  ;;  %v4594_v58 = vld [vmem:[#allocation4 + $0x88] sm:$0xff]  ;;  %v4596_v56 = vld [vmem:[#allocation4 + $0x98] sm:$0xff] }
 0x8a6   :  { %v4604_v15 = vld [vmem:[#allocation4 + $0x80] sm:$0xff]  ;;  %v4606_v16 = vld [vmem:[#allocation4 + $0x90] sm:$0xff]  ;;  %v4608_v17 = vld [vmem:[#allocation4 + $0xa8] sm:$0xff] }
 0x8a7   :  { %1883 = vmatpush1.bf16.msra.mxu0 %v1805_v13  ;;  %1956 = vmatpush1.bf16.msra.mxu1 %v1807_v14  ;;  %v4610_v18 = vld [vmem:[#allocation4 + $0xb8] sm:$0xff]  ;;  %v4616_v9 = vld [vmem:[#allocation4 + $0xa0] sm:$0xff]  ;;  %v4618_v12 = vld [vmem:[#allocation4 + $0xb0] sm:$0xff] }
 0x8a8   :  { %1884 = vmatprep.subr.bf16.mxu0 %v1810_v32  ;;  %1957 = vmatprep.subr.bf16.mxu1 %v1812_v34  ;;  %v4622_v19 = vld [vmem:[#allocation4 + $0xc8] sm:$0xff]  ;;  %v4624_v20 = vld [vmem:[#allocation4 + $0xd8] sm:$0xff]  ;;  %v4632_v35 = vld [vmem:[#allocation4 + $0xc0] sm:$0xff] }
 0x8a9   :  { %v4634_v36 = vld [vmem:[#allocation4 + $0xd0] sm:$0xff]  ;;  %v4636_v37 = vld [vmem:[#allocation4 + $0xe8] sm:$0xff]  ;;  %v4638_v38 = vld [vmem:[#allocation4 + $0xf8] sm:$0xff] }
 0x8aa   :  { %v4644_v33 = vld [vmem:[#allocation4 + $0xe0] sm:$0xff]  ;;  %v4646_v22 = vld [vmem:[#allocation4 + $0xf0] sm:$0xff]  ;;  %v5113_v40 = vld [vmem:[#allocation17_spill] sm:$0xff] }
 0x8ab   :  { %1885 = vmatpush1.bf16.msra.mxu0 %v1809_v3  ;;  %1958 = vmatpush1.bf16.msra.mxu1 %v1811_v50  ;;  %v1776_v24 = vld [vmem:[%s5059_s6] sm:$0xf]  ;;  %v5114_v25 = vsub.s32 2, %v5113_v40  ;;  %v5115_v27 = vsub.s32 3, %v5113_v40  ;;  %v5116_v28 = vsub.s32 0, %v5113_v40  ;;  %v5117_v31 = vsub.s32 1, %v5113_v40 }
 0x8ac   :  { %1886 = vmatprep.subr.bf16.mxu0 %v1814_v60  ;;  %1959 = vmatprep.subr.bf16.mxu1 %v1816_v48  ;;  %s3535_s6 = smov [#allocation9]  }
 0x8ad   :  { %v4695_v41 = vrot.slane %v1776_v24, %v5114_v25  ;;  %v4703_v43 = vrot.slane %v1776_v24, %v5115_v27  ;;  %v1857_v44 = vrot.slane %v1776_v24, %v5116_v28  ;;  %v1861_v13 = vrot.slane %v1776_v24, %v5117_v31  ;;  %s2914_s27 = sshll.u32 %s3535_s6, 4  ;;  %s2915_s27 = int_to_ptr.vmem [resolvable:$true] %s2914_s27 }
 0x8ae   :  { %s3493_s28 = scalar_lea.vmem %s2915_s27, 128  ;;  %p3498_p9 = scmp.lt.s32.totalorder %s2915_s27, %s2915_s27 }
 0x8af   :  { %1887 = vmatpush1.bf16.msra.mxu0 %v1813_v61  ;;  %1960 = vmatpush1.bf16.msra.mxu1 %v1815_v0  ;;  %p3494_p8 = scmp.ne.s32.totalorder %s2915_s27, %s3493_s28  ;;  %p3499_p10 = scmp.lt.s32.totalorder %s3493_s28, %s3493_s28 }
 0x8b0   :  { %1888 = vmatprep.subr.bf16.mxu0 %v1818_v2  ;;  %1961 = vmatprep.subr.bf16.mxu1 %v1820_v4 }
 0x8b1   :  { %p3500_p11 = por %p3499_p10, %p3498_p9 }
 0x8b3   :  { %1889 = vmatpush1.bf16.msra.mxu0 %v1817_v62  ;;  %1962 = vmatpush1.bf16.msra.mxu1 %v1819_v5  ;;  %p3501_p12 = pnand %p3500_p11, %p3494_p8 }
 0x8b4   :  { %2020 = vmatprep.subr.bf16.mxu0 %v4540_v8  ;;  %2061 = vmatprep.subr.bf16.mxu1 %v4542_v11 }
 0x8b6   :  { %1907 = vmatmul.mubr.bf16.vlgmr.msra.gmra.mrb[48].mxu0 %v1785_v10  ;;  %1980 = vmatmul.mubr.bf16.vlgmr.msra.gmra.mrb[48].mxu1 %v1785_v10 }
 0x8b7   :  { %2021 = vmatpush1.bf16.msra.mxu0 %v4548_v30  ;;  %2062 = vmatpush1.bf16.msra.mxu1 %v4550_v1 }
 0x8b8   :  { %2022 = vmatprep.subr.bf16.mxu0 %v4552_v39  ;;  %2063 = vmatprep.subr.bf16.mxu1 %v4554_v7 }
 0x8b9   :  { %1916 = vmatprep.mubr.bf16.mxu0 %v5091_v49  ;;  %1989 = vmatprep.mubr.bf16.mxu1 %v5091_v49 }
 0x8bb   :  { %2023 = vmatpush1.bf16.msra.mxu0 %v4560_v63  ;;  %2064 = vmatpush1.bf16.msra.mxu1 %v4562_v52 }
 0x8bc   :  { %2024 = vmatprep.subr.bf16.mxu0 %v4566_v57  ;;  %2065 = vmatprep.subr.bf16.mxu1 %v4568_v51 }
 0x8be   :  { %1917 = vmatmul.mubr.bf16.gmra.mrb[52].mxu0 %v1786_v46  ;;  %1990 = vmatmul.mubr.bf16.gmra.mrb[52].mxu1 %v1786_v46 }
 0x8bf   :  { %2025 = vmatpush1.bf16.msra.mxu0 %v4576_v21  ;;  %2066 = vmatpush1.bf16.msra.mxu1 %v4578_v53 }
 0x8c0   :  { %2026 = vmatprep.subr.bf16.mxu0 %v4580_v6  ;;  %2067 = vmatprep.subr.bf16.mxu1 %v4582_v55 }
 0x8c1   :  { %1926 = vmatprep.mubr.bf16.mxu0 %v5091_v49  ;;  %1999 = vmatprep.mubr.bf16.mxu1 %v5091_v49 }
 0x8c3   :  { %2027 = vmatpush1.bf16.msra.mxu0 %v4588_v54  ;;  %2068 = vmatpush1.bf16.msra.mxu1 %v4590_v59 }
 0x8c4   :  { %2028 = vmatprep.subr.bf16.mxu0 %v4594_v58  ;;  %2069 = vmatprep.subr.bf16.mxu1 %v4596_v56 }
 0x8c6   :  { %1927 = vmatmul.mubr.bf16.gmra.mrb[56].mxu0 %v1787_v47  ;;  %2000 = vmatmul.mubr.bf16.gmra.mrb[56].mxu1 %v1787_v47 }
 0x8c7   :  { %2029 = vmatpush1.bf16.msra.mxu0 %v4604_v15  ;;  %2070 = vmatpush1.bf16.msra.mxu1 %v4606_v16 }
 0x8c8   :  { %2030 = vmatprep.subr.bf16.mxu0 %v4608_v17  ;;  %2071 = vmatprep.subr.bf16.mxu1 %v4610_v18 }
 0x8c9   :  { %1936 = vmatprep.mubr.bf16.mxu0 %v5091_v49  ;;  %2009 = vmatprep.mubr.bf16.mxu1 %v5091_v49 }
 0x8cb   :  { %2031 = vmatpush1.bf16.msra.mxu0 %v4616_v9  ;;  %2072 = vmatpush1.bf16.msra.mxu1 %v4618_v12 }
 0x8cc   :  { %2032 = vmatprep.subr.bf16.mxu0 %v4622_v19  ;;  %2073 = vmatprep.subr.bf16.mxu1 %v4624_v20 }
 0x8ce   :  { %1937 = vmatmul.mubr.bf16.gmra.mrb[60].mxu0 %v1788_v23  ;;  %2010 = vmatmul.mubr.bf16.gmra.mrb[60].mxu1 %v1788_v23 }
 0x8cf   :  { %2033 = vmatpush1.bf16.msra.mxu0 %v4632_v35  ;;  %2074 = vmatpush1.bf16.msra.mxu1 %v4634_v36 }
 0x8d0   :  { %2034 = vmatprep.subr.bf16.mxu0 %v4636_v37  ;;  %2075 = vmatprep.subr.bf16.mxu1 %v4638_v38 }
 0x8d1   :  { %2052 = vmatprep.mubr.bf16.mxu0 %v5091_v49  ;;  %2093 = vmatprep.mubr.bf16.mxu1 %v5091_v49 }
 0x8d3   :  { %2035 = vmatpush1.bf16.msra.mxu0 %v4644_v33  ;;  %2076 = vmatpush1.bf16.msra.mxu1 %v4646_v22 }
 0x8d4   :  { %2131 = vmatprep.subr.bf16.mxu0 %v4540_v8  ;;  %2172 = vmatprep.subr.bf16.mxu1 %v4542_v11 }
 0x8d6   :  { %2053 = vmatmul.mubr.bf16.vlgmr.msra.gmra.mrb[64].mxu0 %v5091_v49  ;;  %2094 = vmatmul.mubr.bf16.vlgmr.msra.gmra.mrb[64].mxu1 %v5091_v49 }
 0x8d7   :  { %2132 = vmatpush1.bf16.msra.mxu0 %v4548_v30  ;;  %2173 = vmatpush1.bf16.msra.mxu1 %v4550_v1 }
 0x8d8   :  { %2133 = vmatprep.subr.bf16.mxu0 %v4552_v39  ;;  %2174 = vmatprep.subr.bf16.mxu1 %v4554_v7 }
 0x8d9   :  { %2163 = vmatprep.mubr.bf16.mxu0 %v5091_v49  ;;  %2204 = vmatprep.mubr.bf16.mxu1 %v5091_v49 }
 0x8db   :  { %2134 = vmatpush1.bf16.msra.mxu0 %v4560_v63  ;;  %2175 = vmatpush1.bf16.msra.mxu1 %v4562_v52 }
 0x8dc   :  { %2135 = vmatprep.subr.bf16.mxu0 %v4566_v57  ;;  %2176 = vmatprep.subr.bf16.mxu1 %v4568_v51 }
 0x8df   :  { %2136 = vmatpush1.bf16.msra.mxu0 %v4576_v21  ;;  %2177 = vmatpush1.bf16.msra.mxu1 %v4578_v53 }
 0x8e0   :  { %2137 = vmatprep.subr.bf16.mxu0 %v4580_v6  ;;  %2178 = vmatprep.subr.bf16.mxu1 %v4582_v55 }
 0x8e3   :  { %2138 = vmatpush1.bf16.msra.mxu0 %v4588_v54  ;;  %2179 = vmatpush1.bf16.msra.mxu1 %v4590_v59 }
 0x8e4   :  { %2139 = vmatprep.subr.bf16.mxu0 %v4594_v58  ;;  %2180 = vmatprep.subr.bf16.mxu1 %v4596_v56 }
 0x8e7   :  { %2140 = vmatpush1.bf16.msra.mxu0 %v4604_v15  ;;  %2181 = vmatpush1.bf16.msra.mxu1 %v4606_v16 }
 0x8e8   :  { %2141 = vmatprep.subr.bf16.mxu0 %v4608_v17  ;;  %2182 = vmatprep.subr.bf16.mxu1 %v4610_v18 }
 0x8eb   :  { %2142 = vmatpush1.bf16.msra.mxu0 %v4616_v9  ;;  %2183 = vmatpush1.bf16.msra.mxu1 %v4618_v12 }
 0x8ec   :  { %2143 = vmatprep.subr.bf16.mxu0 %v4622_v19  ;;  %2184 = vmatprep.subr.bf16.mxu1 %v4624_v20 }
 0x8ef   :  { %2144 = vmatpush1.bf16.msra.mxu0 %v4632_v35  ;;  %2185 = vmatpush1.bf16.msra.mxu1 %v4634_v36 }
 0x8f0   :  { %2145 = vmatprep.subr.bf16.mxu0 %v4636_v37  ;;  %2186 = vmatprep.subr.bf16.mxu1 %v4638_v38 }
 0x8f3   :  { %2146 = vmatpush1.bf16.msra.mxu0 %v4644_v33  ;;  %2187 = vmatpush1.bf16.msra.mxu1 %v4646_v22 }
 0x8f4   :  { %2242 = vmatprep.subr.bf16.mxu0 %v4540_v8  ;;  %2283 = vmatprep.subr.bf16.mxu1 %v4542_v11 }
 0x989   :  { %v4697_v26 = vpop.f32.mrb[48].mxu0  ;;  %v4699_v42 = vpop.f32.mrb[48].mxu1 }
 0x98a   :  { %v1910_v29 = vpop.f32.mrb[49].mxu0  ;;  %v1983_v45 = vpop.f32.mrb[49].mxu1 }
 0x98b   :  { %v1912_v14 = vpop.f32.mrb[50].mxu0  ;;  %v1985_v32 = vpop.f32.mrb[50].mxu1 }
 0x98c   :  { %v4709_v34 = vadd.f32 %v1912_v14, %v1857_v44  ;;  %v1914_v3 = vpop.f32.mrb[51].mxu0  ;;  %v4712_v50 = vadd.f32 %v1985_v32, %v4695_v41  ;;  %v1987_v60 = vpop.f32.mrb[51].mxu1 }
 0x98d   :  { %v4714_v48 = vadd.f32 %v1914_v3, %v1861_v13  ;;  %v4717_v61 = vadd.f32 %v1987_v60, %v4703_v43 }
 0x991   :  { %v1918_v0 = vpop.f32.mrb[52].mxu0  ;;  %v1991_v2 = vpop.f32.mrb[52].mxu1 }
 0x992   :  { %v4719_v4 = vadd.f32 %v1918_v0, %v1857_v44  ;;  %v1920_v62 = vpop.f32.mrb[53].mxu0  ;;  %v4722_v5 = vadd.f32 %v1991_v2, %v4695_v41  ;;  %v1993_v10 = vpop.f32.mrb[53].mxu1 }
 0x993   :  { %v4724_v46 = vadd.f32 %v1920_v62, %v1861_v13  ;;  %v1922_v47 = vpop.f32.mrb[54].mxu0  ;;  %v4727_v23 = vadd.f32 %v1993_v10, %v4703_v43  ;;  %v1995_v24 = vpop.f32.mrb[54].mxu1 }
 0x994   :  { %v4729_v40 = vadd.f32 %v1922_v47, %v1857_v44  ;;  %v1924_v25 = vpop.f32.mrb[55].mxu0  ;;  %v4732_v27 = vadd.f32 %v1995_v24, %v4695_v41  ;;  %v1997_v28 = vpop.f32.mrb[55].mxu1 }
 0x995   :  { %5118 = vst [vmem:[#allocation18_spill] sm:$0xff] %v4724_v46  ;;  %5119 = vst [vmem:[#allocation19_spill] sm:$0xff] %v4727_v23  ;;  %v4734_v31 = vadd.f32 %v1924_v25, %v1861_v13  ;;  %v4737_v14 = vadd.f32 %v1997_v28, %v4703_v43 }
 0x996   :  { %5120 = vst [vmem:[#allocation20_spill] sm:$0xff] %v4729_v40  ;;  %5121 = vst [vmem:[#allocation21_spill] sm:$0xff] %v4732_v27 }
 0x997   :  { %5122 = vst [vmem:[#allocation22_spill] sm:$0xff] %v4734_v31  ;;  %5123 = vst [vmem:[#allocation23_spill] sm:$0xff] %v4737_v14 }
 0x999   :  { %v1928_v32 = vpop.f32.mrb[56].mxu0  ;;  %v2001_v3 = vpop.f32.mrb[56].mxu1 }
 0x99a   :  { %v4739_v60 = vadd.f32 %v1928_v32, %v1857_v44  ;;  %v1930_v0 = vpop.f32.mrb[57].mxu0  ;;  %v4742_v2 = vadd.f32 %v2001_v3, %v4695_v41  ;;  %v2003_v62 = vpop.f32.mrb[57].mxu1 }
 0x99b   :  { %v4744_v10 = vadd.f32 %v1930_v0, %v1861_v13  ;;  %v1932_v47 = vpop.f32.mrb[58].mxu0  ;;  %v4747_v24 = vadd.f32 %v2003_v62, %v4703_v43  ;;  %v2005_v25 = vpop.f32.mrb[58].mxu1 }
 0x99c   :  { %5124 = vst [vmem:[#allocation24_spill] sm:$0xff] %v4739_v60  ;;  %5125 = vst [vmem:[#allocation25_spill] sm:$0xff] %v4742_v2  ;;  %v4749_v31 = vadd.f32 %v1932_v47, %v1857_v44  ;;  %v1934_v28 = vpop.f32.mrb[59].mxu0  ;;  %v4752_v14 = vadd.f32 %v2005_v25, %v4695_v41  ;;  %v2007_v32 = vpop.f32.mrb[59].mxu1 }
 0x99d   :  { %5126 = vst [vmem:[#allocation26_spill] sm:$0xff] %v4744_v10  ;;  %5127 = vst [vmem:[#allocation27_spill] sm:$0xff] %v4747_v24  ;;  %v4754_v60 = vadd.f32 %v1934_v28, %v1861_v13  ;;  %v4757_v3 = vadd.f32 %v2007_v32, %v4703_v43 }
 0x99e   :  { %5128 = vst [vmem:[#allocation28_spill] sm:$0xff] %v4749_v31  ;;  %5129 = vst [vmem:[#allocation29_spill] sm:$0xff] %v4752_v14 }
 0x99f   :  { %5130 = vst [vmem:[#allocation30_spill] sm:$0xff] %v4754_v60  ;;  %5131 = vst [vmem:[#allocation31_spill] sm:$0xff] %v4757_v3 }
 0x9a1   :  { %v1938_v2 = vpop.f32.mrb[60].mxu0  ;;  %v2011_v0 = vpop.f32.mrb[60].mxu1 }
 0x9a2   :  { %v4759_v10 = vadd.f32 %v1938_v2, %v1857_v44  ;;  %v1940_v27 = vpop.f32.mrb[61].mxu0  ;;  %v4762_v62 = vadd.f32 %v2011_v0, %v4695_v41  ;;  %v2013_v47 = vpop.f32.mrb[61].mxu1 }
 0x9a3   :  { %v4764_v31 = vadd.f32 %v1940_v27, %v1861_v13  ;;  %v1942_v24 = vpop.f32.mrb[62].mxu0  ;;  %v4767_v25 = vadd.f32 %v2013_v47, %v4703_v43  ;;  %v2015_v28 = vpop.f32.mrb[62].mxu1  ;;  %v1909_v27 = vadd.f32 %v4697_v26, %v1857_v44  ;;  %v1911_v47 = vadd.f32 %v1910_v29, %v1861_v13 }
 0x9a4   :  { %5132 = vst [vmem:[#allocation32_spill] sm:$0xff] %v4759_v10  ;;  %5133 = vst [vmem:[#allocation33_spill] sm:$0xff] %v4762_v62  ;;  %v4769_v60 = vadd.f32 %v1942_v24, %v1857_v44  ;;  %v1944_v32 = vpop.f32.mrb[63].mxu0  ;;  %v4772_v3 = vadd.f32 %v2015_v28, %v4695_v41  ;;  %v2017_v2 = vpop.f32.mrb[63].mxu1 }
 0x9a5   :  { %5134 = vst [vmem:[#allocation34_spill] sm:$0xff] %v4764_v31  ;;  %5135 = vst [vmem:[#allocation35_spill] sm:$0xff] %v4767_v25  ;;  %v4774_v10 = vadd.f32 %v1944_v32, %v1861_v13  ;;  %v4777_v0 = vadd.f32 %v2017_v2, %v4703_v43  ;;  %v1982_v31 = vadd.f32 %v4699_v42, %v4695_v41 }
 0x9a6   :  { %5136 = vst [vmem:[#allocation36_spill] sm:$0xff] %v4769_v60  ;;  %5137 = vst [vmem:[#allocation37_spill] sm:$0xff] %v4772_v3  ;;  %v1984_v25 = vadd.f32 %v1983_v45, %v4703_v43 }
 0x9a7   :  { %5138 = vst [vmem:[#allocation38_spill] sm:$0xff] %v4774_v10  ;;  %5139 = vst [vmem:[#allocation17_spill] sm:$0xff] %v4777_v0 }
 0x9a9   :  { %v2054_v24 = vpop.f32.mrb[64].mxu0  ;;  %v2095_v60 = vpop.f32.mrb[64].mxu1 }
 0x9aa   :  { %v2102_v62 = vadd.f32 %v2054_v24, %v1909_v27  ;;  %v2104_v14 = vadd.f32 %v2095_v60, %v1982_v31  ;;  %v2056_v28 = vpop.f32.mrb[65].mxu0  ;;  %v2097_v3 = vpop.f32.mrb[65].mxu1 }
 0x9ab   :  { %v2103_v40 = vadd.f32 %v2056_v28, %v1911_v47  ;;  %v2105_v32 = vadd.f32 %v2097_v3, %v1984_v25  ;;  %v2058_v10 = vpop.f32.mrb[66].mxu0  ;;  %v2099_v23 = vpop.f32.mrb[66].mxu1 }
 0x9ac   :  { %v3036_v2 = vmul.f32 -1.442695, %v2102_v62  ;;  %v2059_v0 = vpop.f32.mrb[67].mxu0  ;;  %v2100_v46 = vpop.f32.mrb[67].mxu1 }
 0x9ad   :  { %v3037_v26 = vmul.f32 -1.442695, %v2103_v40  ;;  %v3038_v41 = vmul.f32 -1.442695, %v2105_v32 }
 0x9ae   :  { %3311 = vpow2.f32 %v3036_v2 }
 0x9af   :  { %3313 = vpow2.f32 %v3037_v26 }
 0x9b0   :  { %3315 = vpow2.f32 %v3038_v41 }
 0x9b1   :  { %3317 = vtanh.f32 %v2104_v14 }
 0x9b8   :  { %v3312_v42 = vpop.eup %3311 }
 0x9b9   :  { %v3314_v44 = vpop.eup %3313  ;;  %v2109_v43 = vadd.f32 1.0, %v3312_v42 }
 0x9ba   :  { %v2115_v29 = vadd.f32 1.0, %v3314_v44  ;;  %v3316_v45 = vpop.eup %3315 }
 0x9bb   :  { %3319 = vrcp.f32 %v2109_v43  ;;  %v3318_v13 = vpop.eup %3317  ;;  %v2122_v10 = vadd.f32 1.0, %v3316_v45 }
 0x9bc   :  { %3321 = vrcp.f32 %v2115_v29 }
 0x9bd   :  { %3323 = vrcp.f32 %v2122_v10 }
 0x9c5   :  { %v3320_v31 = vpop.eup %3319 }
 0x9c6   :  { %v3322_v60 = vpop.eup %3321  ;;  %v2126_v23 = vmul.f32 %v3320_v31, %v3318_v13 }
 0x9c7   :  { %v2125_v3 = vmul.f32 0.0, %v3322_v60  ;;  %v3324_v40 = vpop.eup %3323 }
 0x9c9   :  { %v4783_v46 = vadd.f32 %v2126_v23, %v2125_v3 }
 0x9cb   :  { %3325 = vtanh.f32 %v4783_v46 }
 0x9d5   :  { %v3326_v62 = vpop.eup %3325 }
 0x9d6   :  { %v2129_v25 = vmul.f32 %v3326_v62, %v3324_v40 }
 0x9d8   :  { %v2130_v0 = vpack.c.bf16 %v2129_v25, %v2129_v25 }
 0x9da   :  { %2164 = vmatmul.mubr.bf16.vlgmr.msra.gmra.mrb[68].mxu0 %v2130_v0  ;;  %2205 = vmatmul.mubr.bf16.vlgmr.msra.gmra.mrb[68].mxu1 %v2130_v0 }
 0x9db   :  { %2243 = vmatpush1.bf16.msra.mxu0 %v4548_v30  ;;  %2284 = vmatpush1.bf16.msra.mxu1 %v4550_v1 }
 0x9dc   :  { %2244 = vmatprep.subr.bf16.mxu0 %v4552_v39  ;;  %2285 = vmatprep.subr.bf16.mxu1 %v4554_v7 }
 0x9dd   :  { %2274 = vmatprep.mubr.bf16.mxu0 %v5091_v49  ;;  %2315 = vmatprep.mubr.bf16.mxu1 %v5091_v49 }
 0x9df   :  { %2245 = vmatpush1.bf16.msra.mxu0 %v4560_v63  ;;  %2286 = vmatpush1.bf16.msra.mxu1 %v4562_v52 }
 0x9e0   :  { %2246 = vmatprep.subr.bf16.mxu0 %v4566_v57  ;;  %2287 = vmatprep.subr.bf16.mxu1 %v4568_v51 }
 0x9e3   :  { %2247 = vmatpush1.bf16.msra.mxu0 %v4576_v21  ;;  %2288 = vmatpush1.bf16.msra.mxu1 %v4578_v53 }
 0x9e4   :  { %2248 = vmatprep.subr.bf16.mxu0 %v4580_v6  ;;  %2289 = vmatprep.subr.bf16.mxu1 %v4582_v55 }
 0x9e7   :  { %2249 = vmatpush1.bf16.msra.mxu0 %v4588_v54  ;;  %2290 = vmatpush1.bf16.msra.mxu1 %v4590_v59 }
 0x9e8   :  { %2250 = vmatprep.subr.bf16.mxu0 %v4594_v58  ;;  %2291 = vmatprep.subr.bf16.mxu1 %v4596_v56 }
 0x9eb   :  { %2251 = vmatpush1.bf16.msra.mxu0 %v4604_v15  ;;  %2292 = vmatpush1.bf16.msra.mxu1 %v4606_v16 }
 0x9ec   :  { %2252 = vmatprep.subr.bf16.mxu0 %v4608_v17  ;;  %2293 = vmatprep.subr.bf16.mxu1 %v4610_v18 }
 0x9ef   :  { %2253 = vmatpush1.bf16.msra.mxu0 %v4616_v9  ;;  %2294 = vmatpush1.bf16.msra.mxu1 %v4618_v12 }
 0x9f0   :  { %2254 = vmatprep.subr.bf16.mxu0 %v4622_v19  ;;  %2295 = vmatprep.subr.bf16.mxu1 %v4624_v20 }
 0x9f3   :  { %2255 = vmatpush1.bf16.msra.mxu0 %v4632_v35  ;;  %2296 = vmatpush1.bf16.msra.mxu1 %v4634_v36 }
 0x9f4   :  { %2256 = vmatprep.subr.bf16.mxu0 %v4636_v37  ;;  %2297 = vmatprep.subr.bf16.mxu1 %v4638_v38 }
 0x9f7   :  { %2257 = vmatpush1.bf16.msra.mxu0 %v4644_v33  ;;  %2298 = vmatpush1.bf16.msra.mxu1 %v4646_v22 }
 0x9f8   :  { %2353 = vmatprep.subr.bf16.mxu0 %v4540_v8  ;;  %2394 = vmatprep.subr.bf16.mxu1 %v4542_v11 }
 0xaad   :  { %v2165_v14 = vpop.f32.mrb[68].mxu0  ;;  %v2206_v27 = vpop.f32.mrb[68].mxu1 }
 0xaae   :  { %v2213_v47 = vadd.f32 %v2165_v14, %v4709_v34  ;;  %v2215_v24 = vadd.f32 %v2206_v27, %v4712_v50  ;;  %v2167_v28 = vpop.f32.mrb[69].mxu0  ;;  %v2208_v32 = vpop.f32.mrb[69].mxu1 }
 0xaaf   :  { %v2214_v2 = vadd.f32 %v2167_v28, %v4714_v48  ;;  %v2216_v26 = vadd.f32 %v2208_v32, %v4717_v61  ;;  %v2169_v41 = vpop.f32.mrb[70].mxu0  ;;  %v2210_v42 = vpop.f32.mrb[70].mxu1 }
 0xab0   :  { %v3039_v44 = vmul.f32 -1.442695, %v2213_v47  ;;  %v2170_v43 = vpop.f32.mrb[71].mxu0  ;;  %v2211_v29 = vpop.f32.mrb[71].mxu1  ;;  %v5140_v41 = vld [vmem:[#allocation18_spill] sm:$0xff] }
 0xab1   :  { %v3040_v45 = vmul.f32 -1.442695, %v2214_v2  ;;  %v3041_v13 = vmul.f32 -1.442695, %v2216_v26 }
 0xab2   :  { %3327 = vpow2.f32 %v3039_v44  ;;  %v5141_v44 = vld [vmem:[#allocation19_spill] sm:$0xff] }
 0xab3   :  { %3329 = vpow2.f32 %v3040_v45 }
 0xab4   :  { %3331 = vpow2.f32 %v3041_v13 }
 0xab5   :  { %3333 = vtanh.f32 %v2215_v24 }
 0xabc   :  { %v3328_v31 = vpop.eup %3327 }
 0xabd   :  { %v3330_v60 = vpop.eup %3329  ;;  %v2220_v34 = vadd.f32 1.0, %v3328_v31 }
 0xabe   :  { %v2226_v50 = vadd.f32 1.0, %v3330_v60  ;;  %v3332_v48 = vpop.eup %3331 }
 0xabf   :  { %3335 = vrcp.f32 %v2220_v34  ;;  %v3334_v23 = vpop.eup %3333  ;;  %v2233_v40 = vadd.f32 1.0, %v3332_v48 }
 0xac0   :  { %3337 = vrcp.f32 %v2226_v50 }
 0xac1   :  { %3339 = vrcp.f32 %v2233_v40 }
 0xac9   :  { %v3336_v61 = vpop.eup %3335 }
 0xaca   :  { %v3338_v10 = vpop.eup %3337  ;;  %v2237_v3 = vmul.f32 %v3336_v61, %v3334_v23 }
 0xacb   :  { %v2236_v62 = vmul.f32 %v3338_v10, %v4783_v46  ;;  %v3340_v0 = vpop.eup %3339 }
 0xacd   :  { %v4825_v25 = vadd.f32 %v2237_v3, %v2236_v62 }
 0xacf   :  { %3341 = vtanh.f32 %v4825_v25 }
 0xad9   :  { %v3342_v14 = vpop.eup %3341 }
 0xada   :  { %v2240_v27 = vmul.f32 %v3342_v14, %v3340_v0 }
 0xadc   :  { %v2241_v47 = vpack.c.bf16 %v2240_v27, %v2240_v27 }
 0xade   :  { %2275 = vmatmul.mubr.bf16.vlgmr.msra.gmra.mrb[72].mxu0 %v2241_v47  ;;  %2316 = vmatmul.mubr.bf16.vlgmr.msra.gmra.mrb[72].mxu1 %v2241_v47 }
 0xadf   :  { %2354 = vmatpush1.bf16.msra.mxu0 %v4548_v30  ;;  %2395 = vmatpush1.bf16.msra.mxu1 %v4550_v1 }
 0xae0   :  { %2355 = vmatprep.subr.bf16.mxu0 %v4552_v39  ;;  %2396 = vmatprep.subr.bf16.mxu1 %v4554_v7 }
 0xae1   :  { %2385 = vmatprep.mubr.bf16.mxu0 %v5091_v49  ;;  %2426 = vmatprep.mubr.bf16.mxu1 %v5091_v49 }
 0xae3   :  { %2356 = vmatpush1.bf16.msra.mxu0 %v4560_v63  ;;  %2397 = vmatpush1.bf16.msra.mxu1 %v4562_v52 }
 0xae4   :  { %2357 = vmatprep.subr.bf16.mxu0 %v4566_v57  ;;  %2398 = vmatprep.subr.bf16.mxu1 %v4568_v51 }
 0xae7   :  { %2358 = vmatpush1.bf16.msra.mxu0 %v4576_v21  ;;  %2399 = vmatpush1.bf16.msra.mxu1 %v4578_v53 }
 0xae8   :  { %2359 = vmatprep.subr.bf16.mxu0 %v4580_v6  ;;  %2400 = vmatprep.subr.bf16.mxu1 %v4582_v55 }
 0xaeb   :  { %2360 = vmatpush1.bf16.msra.mxu0 %v4588_v54  ;;  %2401 = vmatpush1.bf16.msra.mxu1 %v4590_v59 }
 0xaec   :  { %2361 = vmatprep.subr.bf16.mxu0 %v4594_v58  ;;  %2402 = vmatprep.subr.bf16.mxu1 %v4596_v56 }
 0xaef   :  { %2362 = vmatpush1.bf16.msra.mxu0 %v4604_v15  ;;  %2403 = vmatpush1.bf16.msra.mxu1 %v4606_v16 }
 0xaf0   :  { %2363 = vmatprep.subr.bf16.mxu0 %v4608_v17  ;;  %2404 = vmatprep.subr.bf16.mxu1 %v4610_v18 }
 0xaf3   :  { %2364 = vmatpush1.bf16.msra.mxu0 %v4616_v9  ;;  %2405 = vmatpush1.bf16.msra.mxu1 %v4618_v12 }
 0xaf4   :  { %2365 = vmatprep.subr.bf16.mxu0 %v4622_v19  ;;  %2406 = vmatprep.subr.bf16.mxu1 %v4624_v20 }
 0xaf7   :  { %2366 = vmatpush1.bf16.msra.mxu0 %v4632_v35  ;;  %2407 = vmatpush1.bf16.msra.mxu1 %v4634_v36 }
 0xaf8   :  { %2367 = vmatprep.subr.bf16.mxu0 %v4636_v37  ;;  %2408 = vmatprep.subr.bf16.mxu1 %v4638_v38 }
 0xafb   :  { %2368 = vmatpush1.bf16.msra.mxu0 %v4644_v33  ;;  %2409 = vmatpush1.bf16.msra.mxu1 %v4646_v22 }
 0xafc   :  { %2464 = vmatprep.subr.bf16.mxu0 %v4540_v8  ;;  %2505 = vmatprep.subr.bf16.mxu1 %v4542_v11 }
 0xbb1   :  { %v2276_v46 = vpop.f32.mrb[72].mxu0  ;;  %v2317_v24 = vpop.f32.mrb[72].mxu1 }
 0xbb2   :  { %v2324_v28 = vadd.f32 %v2276_v46, %v4719_v4  ;;  %v2326_v32 = vadd.f32 %v2317_v24, %v4722_v5  ;;  %v2278_v2 = vpop.f32.mrb[73].mxu0  ;;  %v2319_v26 = vpop.f32.mrb[73].mxu1 }
 0xbb3   :  { %v2325_v42 = vadd.f32 %v2278_v2, %v5140_v41  ;;  %v2327_v43 = vadd.f32 %v2319_v26, %v5141_v44  ;;  %v2280_v29 = vpop.f32.mrb[74].mxu0  ;;  %v2321_v45 = vpop.f32.mrb[74].mxu1  ;;  %v5142_v2 = vld [vmem:[#allocation20_spill] sm:$0xff]  ;;  %v5143_v41 = vld [vmem:[#allocation21_spill] sm:$0xff] }
 0xbb4   :  { %v3042_v13 = vmul.f32 -1.442695, %v2324_v28  ;;  %v2281_v31 = vpop.f32.mrb[75].mxu0  ;;  %v2322_v60 = vpop.f32.mrb[75].mxu1  ;;  %v5144_v29 = vld [vmem:[#allocation22_spill] sm:$0xff] }
 0xbb5   :  { %v3043_v34 = vmul.f32 -1.442695, %v2325_v42  ;;  %v3044_v50 = vmul.f32 -1.442695, %v2327_v43 }
 0xbb6   :  { %3343 = vpow2.f32 %v3042_v13  ;;  %v5145_v13 = vld [vmem:[#allocation23_spill] sm:$0xff] }
 0xbb7   :  { %3345 = vpow2.f32 %v3043_v34 }
 0xbb8   :  { %3347 = vpow2.f32 %v3044_v50 }
 0xbb9   :  { %3349 = vtanh.f32 %v2326_v32 }
 0xbc0   :  { %v3344_v48 = vpop.eup %3343 }
 0xbc1   :  { %v3346_v23 = vpop.eup %3345  ;;  %v2331_v4 = vadd.f32 1.0, %v3344_v48 }
 0xbc2   :  { %v2337_v5 = vadd.f32 1.0, %v3346_v23  ;;  %v3348_v61 = vpop.eup %3347 }
 0xbc3   :  { %3351 = vrcp.f32 %v2331_v4  ;;  %v3350_v10 = vpop.eup %3349  ;;  %v2344_v0 = vadd.f32 1.0, %v3348_v61 }
 0xbc4   :  { %3353 = vrcp.f32 %v2337_v5 }
 0xbc5   :  { %3355 = vrcp.f32 %v2344_v0 }
 0xbcd   :  { %v3352_v3 = vpop.eup %3351 }
 0xbce   :  { %v3354_v40 = vpop.eup %3353  ;;  %v2348_v62 = vmul.f32 %v3352_v3, %v3350_v10 }
 0xbcf   :  { %v2347_v14 = vmul.f32 %v3354_v40, %v4825_v25  ;;  %v3356_v47 = vpop.eup %3355 }
 0xbd1   :  { %v4867_v27 = vadd.f32 %v2348_v62, %v2347_v14 }
 0xbd3   :  { %3357 = vtanh.f32 %v4867_v27 }
 0xbdd   :  { %v3358_v46 = vpop.eup %3357 }
 0xbde   :  { %v2351_v24 = vmul.f32 %v3358_v46, %v3356_v47 }
 0xbe0   :  { %v2352_v28 = vpack.c.bf16 %v2351_v24, %v2351_v24 }
 0xbe2   :  { %2386 = vmatmul.mubr.bf16.vlgmr.msra.gmra.mrb[76].mxu0 %v2352_v28  ;;  %2427 = vmatmul.mubr.bf16.vlgmr.msra.gmra.mrb[76].mxu1 %v2352_v28 }
 0xbe3   :  { %2465 = vmatpush1.bf16.msra.mxu0 %v4548_v30  ;;  %2506 = vmatpush1.bf16.msra.mxu1 %v4550_v1 }
 0xbe4   :  { %2466 = vmatprep.subr.bf16.mxu0 %v4552_v39  ;;  %2507 = vmatprep.subr.bf16.mxu1 %v4554_v7 }
 0xbe5   :  { %2496 = vmatprep.mubr.bf16.mxu0 %v5091_v49  ;;  %2537 = vmatprep.mubr.bf16.mxu1 %v5091_v49 }
 0xbe7   :  { %2467 = vmatpush1.bf16.msra.mxu0 %v4560_v63  ;;  %2508 = vmatpush1.bf16.msra.mxu1 %v4562_v52 }
 0xbe8   :  { %2468 = vmatprep.subr.bf16.mxu0 %v4566_v57  ;;  %2509 = vmatprep.subr.bf16.mxu1 %v4568_v51 }
 0xbeb   :  { %2469 = vmatpush1.bf16.msra.mxu0 %v4576_v21  ;;  %2510 = vmatpush1.bf16.msra.mxu1 %v4578_v53 }
 0xbec   :  { %2470 = vmatprep.subr.bf16.mxu0 %v4580_v6  ;;  %2511 = vmatprep.subr.bf16.mxu1 %v4582_v55 }
 0xbef   :  { %2471 = vmatpush1.bf16.msra.mxu0 %v4588_v54  ;;  %2512 = vmatpush1.bf16.msra.mxu1 %v4590_v59 }
 0xbf0   :  { %2472 = vmatprep.subr.bf16.mxu0 %v4594_v58  ;;  %2513 = vmatprep.subr.bf16.mxu1 %v4596_v56 }
 0xbf3   :  { %2473 = vmatpush1.bf16.msra.mxu0 %v4604_v15  ;;  %2514 = vmatpush1.bf16.msra.mxu1 %v4606_v16 }
 0xbf4   :  { %2474 = vmatprep.subr.bf16.mxu0 %v4608_v17  ;;  %2515 = vmatprep.subr.bf16.mxu1 %v4610_v18 }
 0xbf7   :  { %2475 = vmatpush1.bf16.msra.mxu0 %v4616_v9  ;;  %2516 = vmatpush1.bf16.msra.mxu1 %v4618_v12 }
 0xbf8   :  { %2476 = vmatprep.subr.bf16.mxu0 %v4622_v19  ;;  %2517 = vmatprep.subr.bf16.mxu1 %v4624_v20 }
 0xbfb   :  { %2477 = vmatpush1.bf16.msra.mxu0 %v4632_v35  ;;  %2518 = vmatpush1.bf16.msra.mxu1 %v4634_v36 }
 0xbfc   :  { %2478 = vmatprep.subr.bf16.mxu0 %v4636_v37  ;;  %2519 = vmatprep.subr.bf16.mxu1 %v4638_v38 }
 0xbff   :  { %2479 = vmatpush1.bf16.msra.mxu0 %v4644_v33  ;;  %2520 = vmatpush1.bf16.msra.mxu1 %v4646_v22 }
 0xc00   :  { %2575 = vmatprep.subr.bf16.mxu0 %v4540_v8  ;;  %2616 = vmatprep.subr.bf16.mxu1 %v4542_v11 }
 0xcb5   :  { %v2387_v25 = vpop.f32.mrb[76].mxu0  ;;  %v2428_v32 = vpop.f32.mrb[76].mxu1 }
 0xcb6   :  { %v2435_v26 = vadd.f32 %v2387_v25, %v5142_v2  ;;  %v2437_v42 = vadd.f32 %v2428_v32, %v5143_v41  ;;  %v2389_v44 = vpop.f32.mrb[77].mxu0  ;;  %v2430_v43 = vpop.f32.mrb[77].mxu1 }
 0xcb7   :  { %v2436_v45 = vadd.f32 %v2389_v44, %v5144_v29  ;;  %v2438_v31 = vadd.f32 %v2430_v43, %v5145_v13  ;;  %v2391_v60 = vpop.f32.mrb[78].mxu0  ;;  %v2432_v34 = vpop.f32.mrb[78].mxu1 }
 0xcb8   :  { %v3045_v50 = vmul.f32 -1.442695, %v2435_v26  ;;  %v2392_v48 = vpop.f32.mrb[79].mxu0  ;;  %v2433_v23 = vpop.f32.mrb[79].mxu1 }
 0xcb9   :  { %v3046_v4 = vmul.f32 -1.442695, %v2436_v45  ;;  %v3047_v5 = vmul.f32 -1.442695, %v2438_v31 }
 0xcba   :  { %3359 = vpow2.f32 %v3045_v50 }
 0xcbb   :  { %3361 = vpow2.f32 %v3046_v4 }
 0xcbc   :  { %3363 = vpow2.f32 %v3047_v5 }
 0xcbd   :  { %3365 = vtanh.f32 %v2437_v42 }
 0xcc4   :  { %v3360_v61 = vpop.eup %3359 }
 0xcc5   :  { %v3362_v10 = vpop.eup %3361  ;;  %v2442_v3 = vadd.f32 1.0, %v3360_v61 }
 0xcc6   :  { %v2448_v40 = vadd.f32 1.0, %v3362_v10  ;;  %v3364_v62 = vpop.eup %3363 }
 0xcc7   :  { %3367 = vrcp.f32 %v2442_v3  ;;  %v3366_v0 = vpop.eup %3365  ;;  %v2455_v24 = vadd.f32 1.0, %v3364_v62 }
 0xcc8   :  { %3369 = vrcp.f32 %v2448_v40 }
 0xcc9   :  { %3371 = vrcp.f32 %v2455_v24  ;;  %v4963_v24 = vld [vmem:[#allocation4 + $0x38] sm:$0xff] }
 0xcd1   :  { %v3368_v14 = vpop.eup %3367 }
 0xcd2   :  { %v3370_v47 = vpop.eup %3369  ;;  %v2459_v46 = vmul.f32 %v3368_v14, %v3366_v0  ;;  %v4954_v14 = vld [vmem:[#allocation4] sm:$0xff] }
 0xcd3   :  { %v2458_v28 = vmul.f32 %v3370_v47, %v4867_v27  ;;  %v3372_v32 = vpop.eup %3371  ;;  %v4957_v47 = vld [vmem:[#allocation4 + $0x10] sm:$0xff] }
 0xcd5   :  { %v4909_v25 = vadd.f32 %v2459_v46, %v2458_v28  ;;  %v4960_v46 = vld [vmem:[#allocation4 + $0x28] sm:$0xff]  ;;  %v4968_v28 = vld [vmem:[#allocation4 + $0x20] sm:$0xff] }
 0xcd7   :  { %3373 = vtanh.f32 %v4909_v25 }
 0xce1   :  { %v3374_v2 = vpop.eup %3373 }
 0xce2   :  { %v2462_v26 = vmul.f32 %v3374_v2, %v3372_v32  ;;  %v4974_v32 = vld [vmem:[#allocation4 + $0x48] sm:$0xff]  ;;  %v4977_v2 = vld [vmem:[#allocation4 + $0x58] sm:$0xff] }
 0xce4   :  { %v2463_v41 = vpack.c.bf16 %v2462_v26, %v2462_v26  ;;  %v4980_v26 = vld [vmem:[#allocation4 + $0x40] sm:$0xff] }
 0xce6   :  { %2497 = vmatmul.mubr.bf16.vlgmr.msra.gmra.mrb[80].mxu0 %v2463_v41  ;;  %2538 = vmatmul.mubr.bf16.vlgmr.msra.gmra.mrb[80].mxu1 %v2463_v41  ;;  %v4983_v41 = vld [vmem:[#allocation4 + $0x50] sm:$0xff] }
 0xce7   :  { %2576 = vmatpush1.bf16.msra.mxu0 %v4548_v30  ;;  %2617 = vmatpush1.bf16.msra.mxu1 %v4550_v1 }
 0xce8   :  { %2577 = vmatprep.subr.bf16.mxu0 %v4552_v39  ;;  %2618 = vmatprep.subr.bf16.mxu1 %v4554_v7  ;;  %v5146_v39 = vld [vmem:[#allocation24_spill] sm:$0xff] }
 0xce9   :  { %2607 = vmatprep.mubr.bf16.mxu0 %v5091_v49  ;;  %2648 = vmatprep.mubr.bf16.mxu1 %v5091_v49 }
 0xceb   :  { %2578 = vmatpush1.bf16.msra.mxu0 %v4560_v63  ;;  %2619 = vmatpush1.bf16.msra.mxu1 %v4562_v52  ;;  %v5147_v63 = vld [vmem:[#allocation25_spill] sm:$0xff] }
 0xcec   :  { %2579 = vmatprep.subr.bf16.mxu0 %v4566_v57  ;;  %2620 = vmatprep.subr.bf16.mxu1 %v4568_v51 }
 0xcef   :  { %2580 = vmatpush1.bf16.msra.mxu0 %v4576_v21  ;;  %2621 = vmatpush1.bf16.msra.mxu1 %v4578_v53  ;;  %v5148_v21 = vld [vmem:[#allocation26_spill] sm:$0xff] }
 0xcf0   :  { %2581 = vmatprep.subr.bf16.mxu0 %v4580_v6  ;;  %2622 = vmatprep.subr.bf16.mxu1 %v4582_v55  ;;  %v5149_v6 = vld [vmem:[#allocation27_spill] sm:$0xff] }
 0xcf3   :  { %2582 = vmatpush1.bf16.msra.mxu0 %v4588_v54  ;;  %2623 = vmatpush1.bf16.msra.mxu1 %v4590_v59 }
 0xcf4   :  { %2583 = vmatprep.subr.bf16.mxu0 %v4594_v58  ;;  %2624 = vmatprep.subr.bf16.mxu1 %v4596_v56 }
 0xcf7   :  { %2584 = vmatpush1.bf16.msra.mxu0 %v4604_v15  ;;  %2625 = vmatpush1.bf16.msra.mxu1 %v4606_v16 }
 0xcf8   :  { %2585 = vmatprep.subr.bf16.mxu0 %v4608_v17  ;;  %2626 = vmatprep.subr.bf16.mxu1 %v4610_v18 }
 0xcfb   :  { %2586 = vmatpush1.bf16.msra.mxu0 %v4616_v9  ;;  %2627 = vmatpush1.bf16.msra.mxu1 %v4618_v12 }
 0xcfc   :  { %2587 = vmatprep.subr.bf16.mxu0 %v4622_v19  ;;  %2628 = vmatprep.subr.bf16.mxu1 %v4624_v20 }
 0xcff   :  { %2588 = vmatpush1.bf16.msra.mxu0 %v4632_v35  ;;  %2629 = vmatpush1.bf16.msra.mxu1 %v4634_v36 }
 0xd00   :  { %2589 = vmatprep.subr.bf16.mxu0 %v4636_v37  ;;  %2630 = vmatprep.subr.bf16.mxu1 %v4638_v38 }
 0xd03   :  { %2590 = vmatpush1.bf16.msra.mxu0 %v4644_v33  ;;  %2631 = vmatpush1.bf16.msra.mxu1 %v4646_v22 }
 0xd04   :  { %2686 = vmatprep.subr.bf16.mxu0 %v4540_v8  ;;  %2727 = vmatprep.subr.bf16.mxu1 %v4542_v11 }
 0xdb9   :  { %v2498_v30 = vpop.f32.mrb[80].mxu0  ;;  %v2539_v1 = vpop.f32.mrb[80].mxu1 }
 0xdba   :  { %v2546_v7 = vadd.f32 %v2498_v30, %v5146_v39  ;;  %v2548_v52 = vadd.f32 %v2539_v1, %v5147_v63  ;;  %v2500_v57 = vpop.f32.mrb[81].mxu0  ;;  %v2541_v51 = vpop.f32.mrb[81].mxu1  ;;  %v4986_v30 = vld [vmem:[#allocation4 + $0x68] sm:$0xff]  ;;  %v4989_v1 = vld [vmem:[#allocation4 + $0x78] sm:$0xff] }
 0xdbb   :  { %v2547_v53 = vadd.f32 %v2500_v57, %v5148_v21  ;;  %v2549_v55 = vadd.f32 %v2541_v51, %v5149_v6  ;;  %v2502_v27 = vpop.f32.mrb[82].mxu0  ;;  %v2543_v42 = vpop.f32.mrb[82].mxu1 }
 0xdbc   :  { %v3048_v44 = vmul.f32 -1.442695, %v2546_v7  ;;  %v2503_v43 = vpop.f32.mrb[83].mxu0  ;;  %v2544_v29 = vpop.f32.mrb[83].mxu1 }
 0xdbd   :  { %v3049_v8 = vmul.f32 -1.442695, %v2547_v53  ;;  %v3050_v11 = vmul.f32 -1.442695, %v2549_v55 }
 0xdbe   :  { %3375 = vpow2.f32 %v3048_v44 }
 0xdbf   :  { %3377 = vpow2.f32 %v3049_v8 }
 0xdc0   :  { %3379 = vpow2.f32 %v3050_v11 }
 0xdc1   :  { %3381 = vtanh.f32 %v2548_v52 }
 0xdc8   :  { %v3376_v45 = vpop.eup %3375 }
 0xdc9   :  { %v3378_v13 = vpop.eup %3377  ;;  %v2553_v31 = vadd.f32 1.0, %v3376_v45 }
 0xdca   :  { %v2559_v60 = vadd.f32 1.0, %v3378_v13  ;;  %v3380_v34 = vpop.eup %3379 }
 0xdcb   :  { %3383 = vrcp.f32 %v2553_v31  ;;  %v3382_v50 = vpop.eup %3381  ;;  %v2566_v5 = vadd.f32 1.0, %v3380_v34  ;;  %v3453_v31 = vld [vmem:[#allocation4 + $0x60] sm:$0xff]  ;;  %v3456_v34 = vld [vmem:[#allocation4 + $0x98] sm:$0xff] }
 0xdcc   :  { %3385 = vrcp.f32 %v2559_v60  ;;  %v3454_v60 = vld [vmem:[#allocation4 + $0x70] sm:$0xff] }
 0xdcd   :  { %3387 = vrcp.f32 %v2566_v5  ;;  %v3461_v5 = vld [vmem:[#allocation4 + $0xa0] sm:$0xff] }
 0xdd5   :  { %v3384_v48 = vpop.eup %3383 }
 0xdd6   :  { %v3386_v23 = vpop.eup %3385  ;;  %v2570_v4 = vmul.f32 %v3384_v48, %v3382_v50  ;;  %v3457_v50 = vld [vmem:[#allocation4 + $0x80] sm:$0xff]  ;;  %v3458_v48 = vld [vmem:[#allocation4 + $0x90] sm:$0xff] }
 0xdd7   :  { %v2569_v61 = vmul.f32 %v3386_v23, %v4909_v25  ;;  %v3388_v3 = vpop.eup %3387  ;;  %v4971_v25 = vld [vmem:[#allocation4 + $0x30] sm:$0xff]  ;;  %v3459_v23 = vld [vmem:[#allocation4 + $0xa8] sm:$0xff] }
 0xdd9   :  { %v4951_v10 = vadd.f32 %v2570_v4, %v2569_v61  ;;  %v3460_v4 = vld [vmem:[#allocation4 + $0xb8] sm:$0xff]  ;;  %v3462_v61 = vld [vmem:[#allocation4 + $0xb0] sm:$0xff] }
 0xddb   :  { %3389 = vtanh.f32 %v4951_v10 }
 0xde5   :  { %v3390_v40 = vpop.eup %3389 }
 0xde6   :  { %v2573_v62 = vmul.f32 %v3390_v40, %v3388_v3  ;;  %v3464_v3 = vld [vmem:[#allocation4 + $0xd8] sm:$0xff]  ;;  %v3465_v40 = vld [vmem:[#allocation4 + $0xc0] sm:$0xff] }
 0xde8   :  { %v2574_v0 = vpack.c.bf16 %v2573_v62, %v2573_v62  ;;  %v3466_v62 = vld [vmem:[#allocation4 + $0xd0] sm:$0xff] }
 0xdea   :  { %2608 = vmatmul.mubr.bf16.vlgmr.msra.gmra.mrb[84].mxu0 %v2574_v0  ;;  %2649 = vmatmul.mubr.bf16.vlgmr.msra.gmra.mrb[84].mxu1 %v2574_v0  ;;  %v3467_v0 = vld [vmem:[#allocation4 + $0xe8] sm:$0xff] }
 0xdeb   :  { %2687 = vmatpush1.bf16.msra.mxu0 %v4954_v14  ;;  %2728 = vmatpush1.bf16.msra.mxu1 %v4957_v47 }
 0xdec   :  { %2688 = vmatprep.subr.bf16.mxu0 %v4960_v46  ;;  %2729 = vmatprep.subr.bf16.mxu1 %v4963_v24 }
 0xded   :  { %2718 = vmatprep.mubr.bf16.mxu0 %v5091_v49  ;;  %2759 = vmatprep.mubr.bf16.mxu1 %v5091_v49 }
 0xdef   :  { %2689 = vmatpush1.bf16.msra.mxu0 %v4968_v28  ;;  %2730 = vmatpush1.bf16.msra.mxu1 %v4971_v25 }
 0xdf0   :  { %2690 = vmatprep.subr.bf16.mxu0 %v4974_v32  ;;  %2731 = vmatprep.subr.bf16.mxu1 %v4977_v2 }
 0xdf3   :  { %2691 = vmatpush1.bf16.msra.mxu0 %v4980_v26  ;;  %2732 = vmatpush1.bf16.msra.mxu1 %v4983_v41 }
 0xdf4   :  { %2692 = vmatprep.subr.bf16.mxu0 %v4986_v30  ;;  %2733 = vmatprep.subr.bf16.mxu1 %v4989_v1 }
 0xdf7   :  { %2693 = vmatpush1.bf16.msra.mxu0 %v4588_v54  ;;  %2734 = vmatpush1.bf16.msra.mxu1 %v4590_v59  ;;  %v3451_v54 = vld [vmem:[#allocation4 + $0x8] sm:$0xff]  ;;  %v3452_v59 = vld [vmem:[#allocation4 + $0x18] sm:$0xff] }
 0xdf8   :  { %2694 = vmatprep.subr.bf16.mxu0 %v4594_v58  ;;  %2735 = vmatprep.subr.bf16.mxu1 %v4596_v56 }
 0xdfb   :  { %2695 = vmatpush1.bf16.msra.mxu0 %v4604_v15  ;;  %2736 = vmatpush1.bf16.msra.mxu1 %v4606_v16  ;;  %v5150_v15 = vld [vmem:[#allocation28_spill] sm:$0xff] }
 0xdfc   :  { %2696 = vmatprep.subr.bf16.mxu0 %v4608_v17  ;;  %2737 = vmatprep.subr.bf16.mxu1 %v4610_v18  ;;  %v5151_v17 = vld [vmem:[#allocation29_spill] sm:$0xff] }
 0xdff   :  { %2697 = vmatpush1.bf16.msra.mxu0 %v4616_v9  ;;  %2738 = vmatpush1.bf16.msra.mxu1 %v4618_v12 }
 0xe00   :  { %2698 = vmatprep.subr.bf16.mxu0 %v4622_v19  ;;  %2739 = vmatprep.subr.bf16.mxu1 %v4624_v20  ;;  %v5152_v19 = vld [vmem:[#allocation30_spill] sm:$0xff] }
 0xe03   :  { %2699 = vmatpush1.bf16.msra.mxu0 %v4632_v35  ;;  %2740 = vmatpush1.bf16.msra.mxu1 %v4634_v36  ;;  %v5153_v35 = vld [vmem:[#allocation31_spill] sm:$0xff] }
 0xe04   :  { %2700 = vmatprep.subr.bf16.mxu0 %v4636_v37  ;;  %2741 = vmatprep.subr.bf16.mxu1 %v4638_v38 }
 0xe07   :  { %2701 = vmatpush1.bf16.msra.mxu0 %v4644_v33  ;;  %2742 = vmatpush1.bf16.msra.mxu1 %v4646_v22 }
 0xe08   :  { %2797 = vmatprep.subr.bf16.mxu0 %v3451_v54  ;;  %2838 = vmatprep.subr.bf16.mxu1 %v3452_v59  ;;  %v5157_v59 = vld [vmem:[#allocation35_spill] sm:$0xff] }
 0xebd   :  { %v2609_v58 = vpop.f32.mrb[84].mxu0  ;;  %v2650_v56 = vpop.f32.mrb[84].mxu1 }
 0xebe   :  { %v2657_v16 = vadd.f32 %v2609_v58, %v5150_v15  ;;  %v2659_v18 = vadd.f32 %v2650_v56, %v5151_v17  ;;  %v2611_v9 = vpop.f32.mrb[85].mxu0  ;;  %v2652_v12 = vpop.f32.mrb[85].mxu1 }
 0xebf   :  { %v2658_v20 = vadd.f32 %v2611_v9, %v5152_v19  ;;  %v2660_v36 = vadd.f32 %v2652_v12, %v5153_v35  ;;  %v2613_v37 = vpop.f32.mrb[86].mxu0  ;;  %v2654_v38 = vpop.f32.mrb[86].mxu1 }
 0xec0   :  { %v3051_v33 = vmul.f32 -1.442695, %v2657_v16  ;;  %v2614_v22 = vpop.f32.mrb[87].mxu0  ;;  %v2655_v39 = vpop.f32.mrb[87].mxu1 }
 0xec1   :  { %v3052_v7 = vmul.f32 -1.442695, %v2658_v20  ;;  %v3053_v63 = vmul.f32 -1.442695, %v2660_v36 }
 0xec2   :  { %3391 = vpow2.f32 %v3051_v33 }
 0xec3   :  { %3393 = vpow2.f32 %v3052_v7 }
 0xec4   :  { %3395 = vpow2.f32 %v3053_v63 }
 0xec5   :  { %3397 = vtanh.f32 %v2659_v18 }
 0xecc   :  { %v3392_v52 = vpop.eup %3391 }
 0xecd   :  { %v3394_v57 = vpop.eup %3393  ;;  %v2664_v51 = vadd.f32 1.0, %v3392_v52 }
 0xece   :  { %v2670_v21 = vadd.f32 1.0, %v3394_v57  ;;  %v3396_v53 = vpop.eup %3395 }
 0xecf   :  { %3399 = vrcp.f32 %v2664_v51  ;;  %v3398_v6 = vpop.eup %3397  ;;  %v2677_v44 = vadd.f32 1.0, %v3396_v53 }
 0xed0   :  { %3401 = vrcp.f32 %v2670_v21 }
 0xed1   :  { %3403 = vrcp.f32 %v2677_v44  ;;  %v5159_v44 = vld [vmem:[#allocation37_spill] sm:$0xff] }
 0xed9   :  { %v3400_v55 = vpop.eup %3399 }
 0xeda   :  { %v3402_v27 = vpop.eup %3401  ;;  %v2681_v42 = vmul.f32 %v3400_v55, %v3398_v6 }
 0xedb   :  { %v2680_v43 = vmul.f32 %v3402_v27, %v4951_v10  ;;  %v3404_v8 = vpop.eup %3403  ;;  %v3463_v10 = vld [vmem:[#allocation4 + $0xc8] sm:$0xff]  ;;  %v5158_v27 = vld [vmem:[#allocation36_spill] sm:$0xff] }
 0xedd   :  { %v5015_v29 = vadd.f32 %v2681_v42, %v2680_v43 }
 0xedf   :  { %3405 = vtanh.f32 %v5015_v29 }
 0xee9   :  { %v3406_v11 = vpop.eup %3405 }
 0xeea   :  { %v2684_v45 = vmul.f32 %v3406_v11, %v3404_v8 }
 0xeec   :  { %v2685_v13 = vpack.c.bf16 %v2684_v45, %v2684_v45  ;;  %v5160_v45 = vld [vmem:[#allocation38_spill] sm:$0xff] }
 0xeee   :  { %2719 = vmatmul.mubr.bf16.vlgmr.msra.gmra.mrb[88].mxu0 %v2685_v13  ;;  %2760 = vmatmul.mubr.bf16.vlgmr.msra.gmra.mrb[88].mxu1 %v2685_v13 }
 0xeef   :  { %2798 = vmatpush1.bf16.msra.mxu0 %v4954_v14  ;;  %2839 = vmatpush1.bf16.msra.mxu1 %v4957_v47  ;;  %v3468_v14 = vld [vmem:[#allocation4 + $0xf8] sm:$0xff]  ;;  %v3469_v47 = vld [vmem:[#allocation4 + $0xe0] sm:$0xff] }
 0xef0   :  { %2799 = vmatprep.subr.bf16.mxu0 %v4960_v46  ;;  %2840 = vmatprep.subr.bf16.mxu1 %v4963_v24  ;;  %v3470_v46 = vld [vmem:[#allocation4 + $0xf0] sm:$0xff] }
 0xef1   :  { %2829 = vmatprep.mubr.bf16.mxu0 %v5091_v49  ;;  %2870 = vmatprep.mubr.bf16.mxu1 %v5091_v49  ;;  %v3455_v49 = vld [vmem:[#allocation4 + $0x88] sm:$0xff] }
 0xef3   :  { %2800 = vmatpush1.bf16.msra.mxu0 %v4968_v28  ;;  %2841 = vmatpush1.bf16.msra.mxu1 %v4971_v25  ;;  %v5154_v25 = vld [vmem:[#allocation32_spill] sm:$0xff] }
 0xef4   :  { %2801 = vmatprep.subr.bf16.mxu0 %v4974_v32  ;;  %2842 = vmatprep.subr.bf16.mxu1 %v4977_v2  ;;  %v5155_v2 = vld [vmem:[#allocation33_spill] sm:$0xff] }
 0xef7   :  { %2802 = vmatpush1.bf16.msra.mxu0 %v4980_v26  ;;  %2843 = vmatpush1.bf16.msra.mxu1 %v4983_v41 }
 0xef8   :  { %2803 = vmatprep.subr.bf16.mxu0 %v4986_v30  ;;  %2844 = vmatprep.subr.bf16.mxu1 %v4989_v1  ;;  %v5156_v1 = vld [vmem:[#allocation34_spill] sm:$0xff] }
 0xefb   :  { %2804 = vmatpush1.bf16.msra.mxu0 %v3453_v31  ;;  %2845 = vmatpush1.bf16.msra.mxu1 %v3454_v60 }
 0xefc   :  { %2805 = vmatprep.subr.bf16.mxu0 %v3455_v49  ;;  %2846 = vmatprep.subr.bf16.mxu1 %v3456_v34 }
 0xeff   :  { %2806 = vmatpush1.bf16.msra.mxu0 %v3457_v50  ;;  %2847 = vmatpush1.bf16.msra.mxu1 %v3458_v48 }
 0xf00   :  { %2807 = vmatprep.subr.bf16.mxu0 %v3459_v23  ;;  %2848 = vmatprep.subr.bf16.mxu1 %v3460_v4 }
 0xf03   :  { %2808 = vmatpush1.bf16.msra.mxu0 %v3461_v5  ;;  %2849 = vmatpush1.bf16.msra.mxu1 %v3462_v61 }
 0xf04   :  { %2809 = vmatprep.subr.bf16.mxu0 %v3463_v10  ;;  %2850 = vmatprep.subr.bf16.mxu1 %v3464_v3 }
 0xf07   :  { %2810 = vmatpush1.bf16.msra.mxu0 %v3465_v40  ;;  %2851 = vmatpush1.bf16.msra.mxu1 %v3466_v62 }
 0xf08   :  { %2811 = vmatprep.subr.bf16.mxu0 %v3467_v0  ;;  %2852 = vmatprep.subr.bf16.mxu1 %v3468_v14 }
 0xf0b   :  { %2812 = vmatpush1.bf16.msra.mxu0 %v3469_v47  ;;  %2853 = vmatpush1.bf16.msra.mxu1 %v3470_v46 }
 0xfc1   :  { %v2720_v24 = vpop.f32.mrb[88].mxu0  ;;  %v2761_v28 = vpop.f32.mrb[88].mxu1 }
 0xfc2   :  { %v2768_v32 = vadd.f32 %v2720_v24, %v5154_v25  ;;  %v2770_v26 = vadd.f32 %v2761_v28, %v5155_v2  ;;  %v2722_v41 = vpop.f32.mrb[89].mxu0  ;;  %v2763_v30 = vpop.f32.mrb[89].mxu1 }
 0xfc3   :  { %v2769_v54 = vadd.f32 %v2722_v41, %v5156_v1  ;;  %v2771_v58 = vadd.f32 %v2763_v30, %v5157_v59  ;;  %v2724_v56 = vpop.f32.mrb[90].mxu0  ;;  %v2765_v15 = vpop.f32.mrb[90].mxu1 }
 0xfc4   :  { %v3054_v16 = vmul.f32 -1.442695, %v2768_v32  ;;  %v2725_v17 = vpop.f32.mrb[91].mxu0  ;;  %v2766_v18 = vpop.f32.mrb[91].mxu1 }
 0xfc5   :  { %v3055_v9 = vmul.f32 -1.442695, %v2769_v54  ;;  %v3056_v12 = vmul.f32 -1.442695, %v2771_v58 }
 0xfc6   :  { %3407 = vpow2.f32 %v3054_v16 }
 0xfc7   :  { %3409 = vpow2.f32 %v3055_v9 }
 0xfc8   :  { %3411 = vpow2.f32 %v3056_v12 }
 0xfc9   :  { %3413 = vtanh.f32 %v2770_v26 }
 0xfd0   :  { %v3408_v19 = vpop.eup %3407 }
 0xfd1   :  { %v3410_v20 = vpop.eup %3409  ;;  %v2775_v35 = vadd.f32 1.0, %v3408_v19 }
 0xfd2   :  { %v2781_v36 = vadd.f32 1.0, %v3410_v20  ;;  %v3412_v37 = vpop.eup %3411 }
 0xfd3   :  { %3415 = vrcp.f32 %v2775_v35  ;;  %v3414_v38 = vpop.eup %3413  ;;  %v2788_v7 = vadd.f32 1.0, %v3412_v37 }
 0xfd4   :  { %3417 = vrcp.f32 %v2781_v36 }
 0xfd5   :  { %3419 = vrcp.f32 %v2788_v7 }
 0xfdd   :  { %v3416_v33 = vpop.eup %3415 }
 0xfde   :  { %v3418_v22 = vpop.eup %3417  ;;  %v2792_v39 = vmul.f32 %v3416_v33, %v3414_v38 }
 0xfdf   :  { %v2791_v63 = vmul.f32 %v3418_v22, %v5015_v29  ;;  %v3420_v57 = vpop.eup %3419  ;;  %v5161_v29 = vld [vmem:[#allocation17_spill] sm:$0xff] }
 0xfe1   :  { %v2793_v52 = vadd.f32 %v2792_v39, %v2791_v63 }
 0xfe3   :  { %3421 = vtanh.f32 %v2793_v52 }
 0xfed   :  { %v3422_v51 = vpop.eup %3421 }
 0xfee   :  { %v2795_v21 = vmul.f32 %v3422_v51, %v3420_v57 }
 0xff0   :  { %v2796_v53 = vpack.c.bf16 %v2795_v21, %v2795_v21 }
 0xff2   :  { %2830 = vmatmul.mubr.bf16.vlgmr.msra.gmra.mrb[92].mxu0 %v2796_v53  ;;  %2871 = vmatmul.mubr.bf16.vlgmr.msra.gmra.mrb[92].mxu1 %v2796_v53 }
0x10c5   :  { %v2831_v6 = vpop.f32.mrb[92].mxu0  ;;  %v2872_v55 = vpop.f32.mrb[92].mxu1 }
0x10c6   :  { %v2879_v42 = vadd.f32 %v2831_v6, %v5158_v27  ;;  %v2881_v43 = vadd.f32 %v2872_v55, %v5159_v44  ;;  %v2833_v8 = vpop.f32.mrb[93].mxu0  ;;  %v2874_v11 = vpop.f32.mrb[93].mxu1 }
0x10c7   :  { %v2880_v13 = vadd.f32 %v2833_v8, %v5160_v45  ;;  %v2882_v31 = vadd.f32 %v2874_v11, %v5161_v29  ;;  %v2835_v60 = vpop.f32.mrb[94].mxu0  ;;  %v2876_v49 = vpop.f32.mrb[94].mxu1 }
0x10c8   :  { %v3057_v34 = vmul.f32 -1.442695, %v2879_v42  ;;  %v2836_v50 = vpop.f32.mrb[95].mxu0  ;;  %v2877_v48 = vpop.f32.mrb[95].mxu1 }
0x10c9   :  { %v3058_v23 = vmul.f32 -1.442695, %v2880_v13  ;;  %v3059_v4 = vmul.f32 -1.442695, %v2882_v31 }
0x10ca   :  { %3423 = vpow2.f32 %v3057_v34 }
0x10cb   :  { %3425 = vpow2.f32 %v3058_v23 }
0x10cc   :  { %3427 = vpow2.f32 %v3059_v4 }
0x10cd   :  { %3429 = vtanh.f32 %v2881_v43 }
0x10d4   :  { %v3424_v5 = vpop.eup %3423 }
0x10d5   :  { %v3426_v61 = vpop.eup %3425  ;;  %v2886_v10 = vadd.f32 1.0, %v3424_v5 }
0x10d6   :  { %v2892_v3 = vadd.f32 1.0, %v3426_v61  ;;  %v3428_v40 = vpop.eup %3427 }
0x10d7   :  { %3431 = vrcp.f32 %v2886_v10  ;;  %v3430_v62 = vpop.eup %3429  ;;  %v2899_v46 = vadd.f32 1.0, %v3428_v40 }
0x10d8   :  { %3433 = vrcp.f32 %v2892_v3 }
0x10d9   :  { %3435 = vrcp.f32 %v2899_v46 }
0x10e1   :  { %v3432_v0 = vpop.eup %3431 }
0x10e2   :  { %v3434_v14 = vpop.eup %3433  ;;  %v2903_v47 = vmul.f32 %v3432_v0, %v3430_v62 }
0x10e3   :  { %v2902_v24 = vmul.f32 %v3434_v14, %v2793_v52  ;;  %v3436_v25 = vpop.eup %3435 }
0x10e5   :  { %v2904_v28 = vadd.f32 %v2903_v47, %v2902_v24 }
0x10e7   :  { %3437 = vtanh.f32 %v2904_v28 }
0x10f1   :  { %v3438_v32 = vpop.eup %3437 }
0x10f2   :  { %v2906_v2 = vmul.f32 %v3438_v32, %v3436_v25 }
0x10f4   :  { %2907 = vst [vmem:[#allocation9] sm:$0xff] %v2906_v2 }
0x10f5   :  { %3504 = shalt.err (!%p3501_p12)
}
0x10f6   :  { %s3505_s8 = scalar_lea.hbm %s5060_s7, 128 }
0x10f7   :  { %p3506_p13 = scmp.ne.s32.totalorder %s5060_s7, %s3505_s8  ;;  %p3509_p0 = scmp.lt.u32.totalorder %s3505_s8, %s5060_s7 }
0x10f9   :  { %p3511_p1 = pnand %p3509_p0, %p3506_p13 }
0x10fb   :  { %3514 = shalt.err (!%p3511_p1)
}
0x10fc   :  { %2917 = dma.vmem_to_hbm [thread:$0]  %s2915_s27, 128, %s5060_s7, [#allocation8]  }
0x10fd   :  { %3521 = dma.done.wait [#allocation8], 128  }
0x10fe   :  { %3522 = vsyncadd [#allocation8], 4294967168 }
0x10ff   :  { %2921 = vsyncpa [#allocation7], 1 }
0x1100   :  { %2922 = vsyncpa [#allocation8], 1 }
0x1101   :  { %2923 = vsyncmov [#allocation5] }
0x1104   :  { %s2924_s15 = vpop.sfrf %2923 }
0x1105   :  { %p3060_p2 = scmp.ne.s32.totalorder %s2924_s15, 0 }
0x1107   :  { %2928 = shalt.err (%p3060_p2)  }
0x1108   :  { %2930 = vsyncmov [#allocation5 + $0x1] }
0x110b   :  { %s2931_s16 = vpop.sfrf %2930 }
0x110c   :  { %p3061_p3 = scmp.ne.s32.totalorder %s2931_s16, 0 }
0x110e   :  { %2935 = shalt.err (%p3061_p3)  }

</bundles_post_ra>
